<compile_context>
chip_gen: v5e
topology: v5e:2x2
jax: 0.10.0
libtpu: 0.0.40
codegen_flags: <defaults>
</compile_context>

<pallas_src>
import functools

import jax
import jax.numpy as jnp
from jax.experimental import pallas as pl
from jax.experimental.pallas import tpu as pltpu

LANE = 128


def _round_up(x, m):
    return ((x + m - 1) // m) * m


# ------------------- stage 1: XW1 = X @ W1 (row-tiled, W1 resident) -----------------
def xw_kernel(x_ref, w1_ref, o_ref):
    o_ref[...] = jnp.dot(
        x_ref[...], w1_ref[...], preferred_element_type=jnp.float32
    ).astype(o_ref.dtype)


# ---- stage 2: HW2 = relu(A @ XW1 + b1) @ W2  (row-tile i, sparse column-block k) ----
def pass1_kernel(ids_ref, cnts_ref, a_ref, xw_ref, b1_ref, w2_ref, o_ref, acc_ref):
    i = pl.program_id(0)
    k = pl.program_id(1)

    @pl.when(k == 0)
    def _():
        acc_ref[...] = jnp.zeros_like(acc_ref)

    # Skip padded schedule slots (their block index repeats the last valid block,
    # so no extra DMA is issued either).
    @pl.when(k < cnts_ref[i])
    def _():
        acc_ref[...] += jnp.dot(
            a_ref[...], xw_ref[...], preferred_element_type=jnp.float32
        )

    @pl.when(k == pl.num_programs(1) - 1)
    def _():
        h = jnp.maximum(acc_ref[...] + b1_ref[...], 0.0)
        # F.dropout(x, training=self.training): identity in eval mode.
        o_ref[...] = jnp.dot(
            h.astype(w2_ref.dtype), w2_ref[...], preferred_element_type=jnp.float32
        ).astype(o_ref.dtype)


# ---- stage 3: out = log_softmax(A @ HW2 + b2)  (row-tile i, sparse column-block k) --
def pass2_kernel(ids_ref, cnts_ref, a_ref, hw_ref, b2_ref, o_ref, acc_ref, *,
                 num_classes):
    i = pl.program_id(0)
    k = pl.program_id(1)

    @pl.when(k == 0)
    def _():
        acc_ref[...] = jnp.zeros_like(acc_ref)

    @pl.when(k < cnts_ref[i])
    def _():
        acc_ref[...] += jnp.dot(
            a_ref[...], hw_ref[...], preferred_element_type=jnp.float32
        )

    @pl.when(k == pl.num_programs(1) - 1)
    def _():
        z = acc_ref[...] + b2_ref[...]
        # mask zero-padded class columns so they don't corrupt the softmax normalizer
        col = jax.lax.broadcasted_iota(jnp.int32, z.shape, 1)
        z = jnp.where(col < num_classes, z, -1e30)
        m = jnp.max(z, axis=1, keepdims=True)
        s = z - m
        lse = jnp.log(jnp.sum(jnp.exp(s), axis=1, keepdims=True))
        o_ref[...] = (s - lse).astype(o_ref.dtype)


# ---------------- per-graph preprocessing (hoisted out of the hot path) -------------
def preprocess_graph(a_norm, *, tile_m=256, tile_k=256):
    """Pad + bf16-cast A once and build the block-sparse schedule.

    Returns (a_p, block_ids, block_counts). block_ids[i, :] lists the nonzero
    column-block indices of row-tile i (padded by repeating the last valid id).
    """
    n = a_norm.shape[0]
    n_pad = _round_up(n, max(tile_m, tile_k, LANE))
    a_p = (
        jnp.zeros((n_pad, n_pad), jnp.bfloat16)
        .at[:n, :n]
        .set(a_norm.astype(jnp.bfloat16))
    )
    gm, gk = n_pad // tile_m, n_pad // tile_k
    blk_nz = jnp.any(
        a_p.reshape(gm, tile_m, gk, tile_k) != 0, axis=(1, 3)
    )  # (gm, gk) bool
    counts = jnp.sum(blk_nz, axis=1).astype(jnp.int32)  # (gm,)
    # stable argsort: nonzero blocks first, in ascending column order
    order = jnp.argsort(jnp.logical_not(blk_nz).astype(jnp.int32), axis=1).astype(
        jnp.int32
    )
    max_kb = max(int(jnp.max(counts)), 1)
    pos = jnp.minimum(
        jnp.arange(max_kb, dtype=jnp.int32)[None, :],
        jnp.maximum(counts[:, None] - 1, 0),
    )
    block_ids = jnp.take_along_axis(order, pos, axis=1)  # (gm, max_kb)
    return a_p, block_ids, counts


# ------------------------------------ forward ---------------------------------------
@functools.partial(jax.jit, static_argnames=("tile_m", "tile_k"))
def gcn_forward(a_p, block_ids, block_counts, x, w1, b1, w2, b2, *,
                tile_m=256, tile_k=256):
    n, f_in = x.shape
    hidden = w1.shape[1]
    num_classes = w2.shape[1]

    n_pad = a_p.shape[0]
    f_pad = _round_up(f_in, LANE)
    h_pad = _round_up(hidden, LANE)
    c_pad = _round_up(num_classes, LANE)
    grid_m = n_pad // tile_m
    max_kb = block_ids.shape[1]

    # small operands padded/cast in-jit (cheap); A is pre-padded in preprocess_graph
    x_p = jnp.zeros((n_pad, f_pad), jnp.bfloat16).at[:n, :f_in].set(x.astype(jnp.bfloat16))
    w1_p = jnp.zeros((f_pad, h_pad), jnp.bfloat16).at[:f_in, :hidden].set(w1.astype(jnp.bfloat16))
    w2_p = jnp.zeros((h_pad, c_pad), jnp.bfloat16).at[:hidden, :num_classes].set(w2.astype(jnp.bfloat16))
    b1_p = jnp.zeros((1, h_pad), jnp.float32).at[:, :hidden].set(b1.astype(jnp.float32)[None, :])
    b2_p = jnp.zeros((1, c_pad), jnp.float32).at[:, :num_classes].set(b2.astype(jnp.float32)[None, :])

    cparams_1d = pltpu.CompilerParams(
        dimension_semantics=("parallel",),
        vmem_limit_bytes=32 * 1024 * 1024,
    )
    cparams_2d = pltpu.CompilerParams(
        dimension_semantics=("parallel", "arbitrary"),
        vmem_limit_bytes=32 * 1024 * 1024,
    )

    # ---- stage 1: XW1 (hoisted out of the per-row-tile A loops) ----
    xw1 = pl.pallas_call(
        xw_kernel,
        out_shape=jax.ShapeDtypeStruct((n_pad, h_pad), jnp.bfloat16),
        grid=(grid_m,),
        in_specs=[
            pl.BlockSpec((tile_m, f_pad), lambda i: (i, 0)),
            pl.BlockSpec((f_pad, h_pad), lambda i: (0, 0)),
        ],
        out_specs=pl.BlockSpec((tile_m, h_pad), lambda i: (i, 0)),
        compiler_params=cparams_1d,
        cost_estimate=pl.CostEstimate(
            flops=2 * n_pad * f_pad * h_pad,
            transcendentals=0,
            bytes_accessed=2 * (n_pad * f_pad + f_pad * h_pad + n_pad * h_pad),
        ),
    )(x_p, w1_p)

    n_sched = grid_m * max_kb  # scheduled (row-tile, column-block) pairs

    # ---- stage 2: block-sparse A @ XW1, fused bias+relu+(@W2) on finalize ----
    hw2 = pl.pallas_call(
        pass1_kernel,
        out_shape=jax.ShapeDtypeStruct((n_pad, c_pad), jnp.bfloat16),
        grid_spec=pltpu.PrefetchScalarGridSpec(
            num_scalar_prefetch=2,
            grid=(grid_m, max_kb),
            in_specs=[
                pl.BlockSpec((tile_m, tile_k), lambda i, k, ids, cnts: (i, ids[i, k])),
                pl.BlockSpec((tile_k, h_pad), lambda i, k, ids, cnts: (ids[i, k], 0)),
                pl.BlockSpec((1, h_pad), lambda i, k, ids, cnts: (0, 0)),
                pl.BlockSpec((h_pad, c_pad), lambda i, k, ids, cnts: (0, 0)),
            ],
            out_specs=pl.BlockSpec((tile_m, c_pad), lambda i, k, ids, cnts: (i, 0)),
            scratch_shapes=[pltpu.VMEM((tile_m, h_pad), jnp.float32)],
        ),
        compiler_params=cparams_2d,
        cost_estimate=pl.CostEstimate(
            flops=2 * n_sched * tile_m * tile_k * h_pad + 2 * n_pad * h_pad * c_pad,
            transcendentals=0,
            bytes_accessed=2 * (n_sched * tile_m * tile_k + n_sched * tile_k * h_pad
                                + h_pad * c_pad + n_pad * c_pad),
        ),
    )(block_ids, block_counts, a_p, xw1, b1_p, w2_p)

    # ---- stage 3: block-sparse A @ HW2, fused bias + log_softmax on finalize ----
    out_p = pl.pallas_call(
        functools.partial(pass2_kernel, num_classes=num_classes),
        out_shape=jax.ShapeDtypeStruct((n_pad, c_pad), jnp.float32),
        grid_spec=pltpu.PrefetchScalarGridSpec(
            num_scalar_prefetch=2,
            grid=(grid_m, max_kb),
            in_specs=[
                pl.BlockSpec((tile_m, tile_k), lambda i, k, ids, cnts: (i, ids[i, k])),
                pl.BlockSpec((tile_k, c_pad), lambda i, k, ids, cnts: (ids[i, k], 0)),
                pl.BlockSpec((1, c_pad), lambda i, k, ids, cnts: (0, 0)),
            ],
            out_specs=pl.BlockSpec((tile_m, c_pad), lambda i, k, ids, cnts: (i, 0)),
            scratch_shapes=[pltpu.VMEM((tile_m, c_pad), jnp.float32)],
        ),
        compiler_params=cparams_2d,
        cost_estimate=pl.CostEstimate(
            flops=2 * n_sched * tile_m * tile_k * c_pad + 5 * n_pad * c_pad,
            transcendentals=2 * n_pad * c_pad,
            bytes_accessed=2 * (n_sched * tile_m * tile_k + n_sched * tile_k * c_pad
                                + n_pad * c_pad) + 4 * n_pad * c_pad,
        ),
    )(block_ids, block_counts, a_p, hw2, b2_p)

    return out_p[:n, :num_classes]


# ------------------------------- plain-JAX glue --------------------------------------
def glorot(key, shape):
    fan_in, fan_out = shape
    limit = (6.0 / (fan_in + fan_out)) ** 0.5
    return jax.random.uniform(key, shape, jnp.float32, -limit, limit)


def build_norm_adj(edge_index, num_nodes):
    """Dense GCN normalization: D^-1/2 (A + I) D^-1/2 over a symmetrized graph."""
    src, dst = edge_index
    a = jnp.zeros((num_nodes, num_nodes), jnp.float32)
    a = a.at[src, dst].set(1.0)
    a = a.at[dst, src].set(1.0)                       # undirected / symmetric
    a = a + jnp.eye(num_nodes, dtype=jnp.float32)     # add self-loops
    deg = a.sum(axis=0)
    dinv = jnp.where(deg > 0, 1.0 / jnp.sqrt(deg), 0.0)
    return dinv[:, None] * a * dinv[None, :]


def gcn_reference(a_norm, x, w1, b1, w2, b2):
    h = jnp.maximum(a_norm @ (x @ w1) + b1, 0.0)
    z = a_norm @ (h @ w2) + b2
    return jax.nn.log_softmax(z, axis=1)


if __name__ == "__main__":
    key = jax.random.PRNGKey(0)
    k_edge, k_x, k_w1, k_w2 = jax.random.split(key, 4)

    # small synthetic stand-in for Cora (Cora: 2708 nodes, 1433 feats, 7 classes)
    num_nodes = 384
    num_node_features = 96
    hidden = 16
    num_classes = 8
    num_edges = 768

    edge_index = jax.random.randint(k_edge, (2, num_edges), 0, num_nodes)
    x = jax.random.normal(k_x, (num_nodes, num_node_features), jnp.float32)

    a_norm = build_norm_adj(edge_index, num_nodes)

    # GCNConv params: glorot weight, zero bias (deterministic, synthetic)
    w1 = glorot(k_w1, (num_node_features, hidden))
    b1 = jnp.zeros((hidden,), jnp.float32)
    w2 = glorot(k_w2, (hidden, num_classes))
    b2 = jnp.zeros((num_classes,), jnp.float32)

    TILE_M, TILE_K = 256, 256
    # one-time per graph: pad/cast A and build the block-sparse schedule
    a_p, block_ids, block_counts = preprocess_graph(a_norm, tile_m=TILE_M, tile_k=TILE_K)

    out = gcn_forward(a_p, block_ids, block_counts, x, w1, b1, w2, b2,
                      tile_m=TILE_M, tile_k=TILE_K)
    out = jax.block_until_ready(out)

    assert out.shape == (num_nodes, num_classes)
    assert bool(jnp.all(jnp.isfinite(out)))
    # rows of log_softmax should exp-sum to 1
    assert bool(jnp.allclose(jnp.exp(out).sum(axis=1), 1.0, atol=1e-4))
    # validate bf16 kernel against f32 plain-JAX reference with loosened tolerance
    ref = gcn_reference(a_norm, x, w1, b1, w2, b2)
    assert bool(jnp.allclose(out, ref, atol=0.2)), float(jnp.max(jnp.abs(out - ref)))
    print("KERNEL_OK")
</pallas_src>

<mosaic_0001>
module attributes {stable_mosaic.version = 11 : i64} {
  func.func @pass1_kernel(%arg0: i32, %arg1: i32, %arg2: memref<2x2xi32, #tpu.memory_space<smem>>, %arg3: memref<2xi32, #tpu.memory_space<smem>>, %arg4: memref<256x256xbf16, #tpu.memory_space<vmem>>, %arg5: memref<256x128xbf16, #tpu.memory_space<vmem>>, %arg6: memref<1x128xf32, #tpu.memory_space<vmem>>, %arg7: memref<128x128xbf16, #tpu.memory_space<vmem>>, %arg8: memref<256x128xbf16, #tpu.memory_space<vmem>>, %arg9: memref<256x128xf32, #tpu.memory_space<vmem>>) attributes {dimension_semantics = [#tpu.dimension_semantics<parallel>, #tpu.dimension_semantics<arbitrary>], iteration_bounds = array<i64: 2, 2>, scalar_prefetch = 2 : i64, scratch_operands = 1 : i64, tpu.core_type = #tpu.core_type<tc>, window_params = [{transform_indices = @transform_0, window_bounds = array<i64: 256, 256>}, {transform_indices = @transform_1, window_bounds = array<i64: 256, 128>}, {pipeline_mode = #tpu.pipeline_mode<synchronous>, transform_indices = @transform_2, window_bounds = array<i64: 1, 128>}, {pipeline_mode = #tpu.pipeline_mode<synchronous>, transform_indices = @transform_3, window_bounds = array<i64: 128, 128>}, {transform_indices = @transform_4, window_bounds = array<i64: 256, 128>}]} {
    %c0_i32 = arith.constant 0 : i32
    %0 = arith.cmpi eq, %arg1, %c0_i32 : i32
    %1 = arith.extui %0 : i1 to i32
    %c0_i32_0 = arith.constant 0 : i32
    %2 = arith.cmpi ne, %1, %c0_i32_0 : i32
    scf.if %2 {
      %cst = arith.constant 0.000000e+00 : f32
      %11 = vector.broadcast %cst : f32 to vector<256x128xf32>
      %c0 = arith.constant 0 : index
      %c0_3 = arith.constant 0 : index
      %12 = vector.load %arg9[%c0, %c0_3] : memref<256x128xf32, #tpu.memory_space<vmem>>, vector<256x128xf32>
      tpu.vector_store %arg9[%c0, %c0_3], %11 {strides = array<i32>} : memref<256x128xf32, #tpu.memory_space<vmem>>, vector<256x128xf32>,
    } else {
    }
    %3 = arith.index_cast %arg0 : i32 to index
    %4 = memref.load %arg3[%3] : memref<2xi32, #tpu.memory_space<smem>>
    %5 = arith.cmpi slt, %arg1, %4 : i32
    %6 = arith.extui %5 : i1 to i32
    %c0_i32_1 = arith.constant 0 : i32
    %7 = arith.cmpi ne, %6, %c0_i32_1 : i32
    scf.if %7 {
      %c0 = arith.constant 0 : index
      %c0_3 = arith.constant 0 : index
      %11 = vector.load %arg9[%c0, %c0_3] : memref<256x128xf32, #tpu.memory_space<vmem>>, vector<256x128xf32>
      %c0_4 = arith.constant 0 : index
      %c0_5 = arith.constant 0 : index
      %12 = vector.load %arg4[%c0_4, %c0_5] : memref<256x256xbf16, #tpu.memory_space<vmem>>, vector<256x256xbf16>
      %c0_6 = arith.constant 0 : index
      %c0_7 = arith.constant 0 : index
      %13 = vector.load %arg5[%c0_6, %c0_7] : memref<256x128xbf16, #tpu.memory_space<vmem>>, vector<256x128xbf16>
      %cst = arith.constant dense<0.000000e+00> : vector<256x128xf32>
      %14 = tpu.matmul %12, %13, %cst {dimension_numbers = #tpu.dot_dimension_numbers<[1], [0], [0], [1], [0, 0, 1, 1], [], []>} : vector<256x256xbf16>, vector<256x128xbf16>, vector<256x128xf32> -> vector<256x128xf32>
      %15 = arith.addf %11, %14 : vector<256x128xf32>
      %c0_8 = arith.constant 0 : index
      %c0_9 = arith.constant 0 : index
      %16 = vector.load %arg9[%c0_8, %c0_9] : memref<256x128xf32, #tpu.memory_space<vmem>>, vector<256x128xf32>
      tpu.vector_store %arg9[%c0_8, %c0_9], %15 {strides = array<i32>} : memref<256x128xf32, #tpu.memory_space<vmem>>, vector<256x128xf32>,
    } else {
    }
    %c1_i32 = arith.constant 1 : i32
    %8 = arith.cmpi eq, %arg1, %c1_i32 : i32
    %9 = arith.extui %8 : i1 to i32
    %c0_i32_2 = arith.constant 0 : i32
    %10 = arith.cmpi ne, %9, %c0_i32_2 : i32
    scf.if %10 {
      %c0 = arith.constant 0 : index
      %c0_3 = arith.constant 0 : index
      %11 = vector.load %arg9[%c0, %c0_3] : memref<256x128xf32, #tpu.memory_space<vmem>>, vector<256x128xf32>
      %c0_4 = arith.constant 0 : index
      %c0_5 = arith.constant 0 : index
      %12 = vector.load %arg6[%c0_4, %c0_5] : memref<1x128xf32, #tpu.memory_space<vmem>>, vector<1x128xf32>
      %13 = vector.broadcast %12 : vector<1x128xf32> to vector<256x128xf32>
      %14 = arith.addf %11, %13 : vector<256x128xf32>
      %cst = arith.constant 0.000000e+00 : f32
      %15 = vector.broadcast %cst : f32 to vector<256x128xf32>
      %16 = arith.maximumf %14, %15 : vector<256x128xf32>
      %17 = arith.truncf %16 : vector<256x128xf32> to vector<256x128xbf16>
      %c0_6 = arith.constant 0 : index
      %c0_7 = arith.constant 0 : index
      %18 = vector.load %arg7[%c0_6, %c0_7] : memref<128x128xbf16, #tpu.memory_space<vmem>>, vector<128x128xbf16>
      %cst_8 = arith.constant dense<0.000000e+00> : vector<256x128xf32>
      %19 = tpu.matmul %17, %18, %cst_8 {dimension_numbers = #tpu.dot_dimension_numbers<[1], [0], [0], [1], [0, 0, 1, 1], [], []>} : vector<256x128xbf16>, vector<128x128xbf16>, vector<256x128xf32> -> vector<256x128xf32>
      %20 = arith.truncf %19 : vector<256x128xf32> to vector<256x128xbf16>
      %c0_9 = arith.constant 0 : index
      %c0_10 = arith.constant 0 : index
      %21 = vector.load %arg8[%c0_9, %c0_10] : memref<256x128xbf16, #tpu.memory_space<vmem>>, vector<256x128xbf16>
      tpu.vector_store %arg8[%c0_9, %c0_10], %20 {strides = array<i32>} : memref<256x128xbf16, #tpu.memory_space<vmem>>, vector<256x128xbf16>,
    } else {
    }
    return
  }
  func.func @transform_0(%arg0: i32, %arg1: i32, %arg2: memref<2x2xi32, #tpu.memory_space<smem>>, %arg3: memref<2xi32, #tpu.memory_space<smem>>) -> (i32, i32) {
    %0 = arith.index_cast %arg0 : i32 to index
    %1 = arith.index_cast %arg1 : i32 to index
    %2 = memref.load %arg2[%0, %1] : memref<2x2xi32, #tpu.memory_space<smem>>
    %c0_i32 = arith.constant 0 : i32
    return %arg0, %2 : i32, i32
  }
  func.func @transform_1(%arg0: i32, %arg1: i32, %arg2: memref<2x2xi32, #tpu.memory_space<smem>>, %arg3: memref<2xi32, #tpu.memory_space<smem>>) -> (i32, i32) {
    %0 = arith.index_cast %arg0 : i32 to index
    %1 = arith.index_cast %arg1 : i32 to index
    %2 = memref.load %arg2[%0, %1] : memref<2x2xi32, #tpu.memory_space<smem>>
    %c0_i32 = arith.constant 0 : i32
    %c0_i32_0 = arith.constant 0 : i32
    return %2, %c0_i32 : i32, i32
  }
  func.func @transform_2(%arg0: i32, %arg1: i32, %arg2: memref<2x2xi32, #tpu.memory_space<smem>>, %arg3: memref<2xi32, #tpu.memory_space<smem>>) -> (i32, i32) {
    %c0_i32 = arith.constant 0 : i32
    %c0_i32_0 = arith.constant 0 : i32
    %c0_i32_1 = arith.constant 0 : i32
    return %c0_i32, %c0_i32_0 : i32, i32
  }
  func.func @transform_3(%arg0: i32, %arg1: i32, %arg2: memref<2x2xi32, #tpu.memory_space<smem>>, %arg3: memref<2xi32, #tpu.memory_space<smem>>) -> (i32, i32) {
    %c0_i32 = arith.constant 0 : i32
    %c0_i32_0 = arith.constant 0 : i32
    %c0_i32_1 = arith.constant 0 : i32
    return %c0_i32, %c0_i32_0 : i32, i32
  }
  func.func @transform_4(%arg0: i32, %arg1: i32, %arg2: memref<2x2xi32, #tpu.memory_space<smem>>, %arg3: memref<2xi32, #tpu.memory_space<smem>>) -> (i32, i32) {
    %c0_i32 = arith.constant 0 : i32
    %c0_i32_0 = arith.constant 0 : i32
    return %arg0, %c0_i32 : i32, i32
  }
}

module attributes {stable_mosaic.version = 11 : i64} {
  func.func @xw_kernel(%arg0: i32, %arg1: memref<256x128xbf16, #tpu.memory_space<vmem>>, %arg2: memref<128x128xbf16, #tpu.memory_space<vmem>>, %arg3: memref<256x128xbf16, #tpu.memory_space<vmem>>) attributes {dimension_semantics = [#tpu.dimension_semantics<parallel>], iteration_bounds = array<i64: 2>, scalar_prefetch = 0 : i64, scratch_operands = 0 : i64, tpu.core_type = #tpu.core_type<tc>, window_params = [{transform_indices = @transform_0, window_bounds = array<i64: 256, 128>}, {pipeline_mode = #tpu.pipeline_mode<synchronous>, transform_indices = @transform_1, window_bounds = array<i64: 128, 128>}, {transform_indices = @transform_2, window_bounds = array<i64: 256, 128>}]} {
    %c0 = arith.constant 0 : index
    %c0_0 = arith.constant 0 : index
    %0 = vector.load %arg1[%c0, %c0_0] : memref<256x128xbf16, #tpu.memory_space<vmem>>, vector<256x128xbf16>
    %c0_1 = arith.constant 0 : index
    %c0_2 = arith.constant 0 : index
    %1 = vector.load %arg2[%c0_1, %c0_2] : memref<128x128xbf16, #tpu.memory_space<vmem>>, vector<128x128xbf16>
    %cst = arith.constant dense<0.000000e+00> : vector<256x128xf32>
    %2 = tpu.matmul %0, %1, %cst {dimension_numbers = #tpu.dot_dimension_numbers<[1], [0], [0], [1], [0, 0, 1, 1], [], []>} : vector<256x128xbf16>, vector<128x128xbf16>, vector<256x128xf32> -> vector<256x128xf32>
    %3 = arith.truncf %2 : vector<256x128xf32> to vector<256x128xbf16>
    %c0_3 = arith.constant 0 : index
    %c0_4 = arith.constant 0 : index
    %4 = vector.load %arg3[%c0_3, %c0_4] : memref<256x128xbf16, #tpu.memory_space<vmem>>, vector<256x128xbf16>
    tpu.vector_store %arg3[%c0_3, %c0_4], %3 {strides = array<i32>} : memref<256x128xbf16, #tpu.memory_space<vmem>>, vector<256x128xbf16>,
    return
  }
  func.func @transform_0(%arg0: i32) -> (i32, i32) {
    %c0_i32 = arith.constant 0 : i32
    %c0_i32_0 = arith.constant 0 : i32
    return %arg0, %c0_i32 : i32, i32
  }
  func.func @transform_1(%arg0: i32) -> (i32, i32) {
    %c0_i32 = arith.constant 0 : i32
    %c0_i32_0 = arith.constant 0 : i32
    %c0_i32_1 = arith.constant 0 : i32
    return %c0_i32, %c0_i32_0 : i32, i32
  }
  func.func @transform_2(%arg0: i32) -> (i32, i32) {
    %c0_i32 = arith.constant 0 : i32
    %c0_i32_0 = arith.constant 0 : i32
    return %arg0, %c0_i32 : i32, i32
  }
}

module attributes {stable_mosaic.version = 11 : i64} {
  func.func @pass2_kernel(%arg0: i32, %arg1: i32, %arg2: memref<2x2xi32, #tpu.memory_space<smem>>, %arg3: memref<2xi32, #tpu.memory_space<smem>>, %arg4: memref<256x256xbf16, #tpu.memory_space<vmem>>, %arg5: memref<256x128xbf16, #tpu.memory_space<vmem>>, %arg6: memref<1x128xf32, #tpu.memory_space<vmem>>, %arg7: memref<256x128xf32, #tpu.memory_space<vmem>>, %arg8: memref<256x128xf32, #tpu.memory_space<vmem>>) attributes {dimension_semantics = [#tpu.dimension_semantics<parallel>, #tpu.dimension_semantics<arbitrary>], iteration_bounds = array<i64: 2, 2>, scalar_prefetch = 2 : i64, scratch_operands = 1 : i64, tpu.core_type = #tpu.core_type<tc>, window_params = [{transform_indices = @transform_0, window_bounds = array<i64: 256, 256>}, {transform_indices = @transform_1, window_bounds = array<i64: 256, 128>}, {pipeline_mode = #tpu.pipeline_mode<synchronous>, transform_indices = @transform_2, window_bounds = array<i64: 1, 128>}, {transform_indices = @transform_3, window_bounds = array<i64: 256, 128>}]} {
    %c0_i32 = arith.constant 0 : i32
    %0 = arith.cmpi eq, %arg1, %c0_i32 : i32
    %1 = arith.extui %0 : i1 to i32
    %c0_i32_0 = arith.constant 0 : i32
    %2 = arith.cmpi ne, %1, %c0_i32_0 : i32
    scf.if %2 {
      %cst = arith.constant 0.000000e+00 : f32
      %11 = vector.broadcast %cst : f32 to vector<256x128xf32>
      %c0 = arith.constant 0 : index
      %c0_3 = arith.constant 0 : index
      %12 = vector.load %arg8[%c0, %c0_3] : memref<256x128xf32, #tpu.memory_space<vmem>>, vector<256x128xf32>
      tpu.vector_store %arg8[%c0, %c0_3], %11 {strides = array<i32>} : memref<256x128xf32, #tpu.memory_space<vmem>>, vector<256x128xf32>,
    } else {
    }
    %3 = arith.index_cast %arg0 : i32 to index
    %4 = memref.load %arg3[%3] : memref<2xi32, #tpu.memory_space<smem>>
    %5 = arith.cmpi slt, %arg1, %4 : i32
    %6 = arith.extui %5 : i1 to i32
    %c0_i32_1 = arith.constant 0 : i32
    %7 = arith.cmpi ne, %6, %c0_i32_1 : i32
    scf.if %7 {
      %c0 = arith.constant 0 : index
      %c0_3 = arith.constant 0 : index
      %11 = vector.load %arg8[%c0, %c0_3] : memref<256x128xf32, #tpu.memory_space<vmem>>, vector<256x128xf32>
      %c0_4 = arith.constant 0 : index
      %c0_5 = arith.constant 0 : index
      %12 = vector.load %arg4[%c0_4, %c0_5] : memref<256x256xbf16, #tpu.memory_space<vmem>>, vector<256x256xbf16>
      %c0_6 = arith.constant 0 : index
      %c0_7 = arith.constant 0 : index
      %13 = vector.load %arg5[%c0_6, %c0_7] : memref<256x128xbf16, #tpu.memory_space<vmem>>, vector<256x128xbf16>
      %cst = arith.constant dense<0.000000e+00> : vector<256x128xf32>
      %14 = tpu.matmul %12, %13, %cst {dimension_numbers = #tpu.dot_dimension_numbers<[1], [0], [0], [1], [0, 0, 1, 1], [], []>} : vector<256x256xbf16>, vector<256x128xbf16>, vector<256x128xf32> -> vector<256x128xf32>
      %15 = arith.addf %11, %14 : vector<256x128xf32>
      %c0_8 = arith.constant 0 : index
      %c0_9 = arith.constant 0 : index
      %16 = vector.load %arg8[%c0_8, %c0_9] : memref<256x128xf32, #tpu.memory_space<vmem>>, vector<256x128xf32>
      tpu.vector_store %arg8[%c0_8, %c0_9], %15 {strides = array<i32>} : memref<256x128xf32, #tpu.memory_space<vmem>>, vector<256x128xf32>,
    } else {
    }
    %c1_i32 = arith.constant 1 : i32
    %8 = arith.cmpi eq, %arg1, %c1_i32 : i32
    %9 = arith.extui %8 : i1 to i32
    %c0_i32_2 = arith.constant 0 : i32
    %10 = arith.cmpi ne, %9, %c0_i32_2 : i32
    scf.if %10 {
      %c0 = arith.constant 0 : index
      %c0_3 = arith.constant 0 : index
      %11 = vector.load %arg8[%c0, %c0_3] : memref<256x128xf32, #tpu.memory_space<vmem>>, vector<256x128xf32>
      %c0_4 = arith.constant 0 : index
      %c0_5 = arith.constant 0 : index
      %12 = vector.load %arg6[%c0_4, %c0_5] : memref<1x128xf32, #tpu.memory_space<vmem>>, vector<1x128xf32>
      %13 = vector.broadcast %12 : vector<1x128xf32> to vector<256x128xf32>
      %14 = arith.addf %11, %13 : vector<256x128xf32>
      %15 = tpu.iota {dimensions = array<i32: 1>} : vector<256x128xi32>
      %c8_i32 = arith.constant 8 : i32
      %16 = vector.broadcast %c8_i32 : i32 to vector<256x128xi32>
      %17 = arith.cmpi slt, %15, %16 : vector<256x128xi32>
      %cst = arith.constant -1.000000e+30 : f32
      %18 = vector.broadcast %cst : f32 to vector<256x128xf32>
      %19 = arith.select %17, %14, %18 : vector<256x128xi1>, vector<256x128xf32>
      %cst_6 = arith.constant dense<0xFF800000> : vector<256xf32>
      %20 = vector.multi_reduction <maximumf>, %19, %cst_6 [1] : vector<256x128xf32> to vector<256xf32>
      %21 = vector.shape_cast %20 : vector<256xf32> to vector<256x1xf32>
      %22 = vector.broadcast %21 : vector<256x1xf32> to vector<256x128xf32>
      %23 = arith.subf %19, %22 : vector<256x128xf32>
      %24 = math.exp %23 : vector<256x128xf32>
      %cst_7 = arith.constant dense<0.000000e+00> : vector<256xf32>
      %25 = vector.multi_reduction <add>, %24, %cst_7 [1] : vector<256x128xf32> to vector<256xf32>
      %26 = vector.shape_cast %25 : vector<256xf32> to vector<256x1xf32>
      %27 = math.log %26 : vector<256x1xf32>
      %28 = vector.broadcast %27 : vector<256x1xf32> to vector<256x128xf32>
      %29 = arith.subf %23, %28 : vector<256x128xf32>
      %c0_8 = arith.constant 0 : index
      %c0_9 = arith.constant 0 : index
      %30 = vector.load %arg7[%c0_8, %c0_9] : memref<256x128xf32, #tpu.memory_space<vmem>>, vector<256x128xf32>
      tpu.vector_store %arg7[%c0_8, %c0_9], %29 {strides = array<i32>} : memref<256x128xf32, #tpu.memory_space<vmem>>, vector<256x128xf32>,
    } else {
    }
    return
  }
  func.func @transform_0(%arg0: i32, %arg1: i32, %arg2: memref<2x2xi32, #tpu.memory_space<smem>>, %arg3: memref<2xi32, #tpu.memory_space<smem>>) -> (i32, i32) {
    %0 = arith.index_cast %arg0 : i32 to index
    %1 = arith.index_cast %arg1 : i32 to index
    %2 = memref.load %arg2[%0, %1] : memref<2x2xi32, #tpu.memory_space<smem>>
    %c0_i32 = arith.constant 0 : i32
    return %arg0, %2 : i32, i32
  }
  func.func @transform_1(%arg0: i32, %arg1: i32, %arg2: memref<2x2xi32, #tpu.memory_space<smem>>, %arg3: memref<2xi32, #tpu.memory_space<smem>>) -> (i32, i32) {
    %0 = arith.index_cast %arg0 : i32 to index
    %1 = arith.index_cast %arg1 : i32 to index
    %2 = memref.load %arg2[%0, %1] : memref<2x2xi32, #tpu.memory_space<smem>>
    %c0_i32 = arith.constant 0 : i32
    %c0_i32_0 = arith.constant 0 : i32
    return %2, %c0_i32 : i32, i32
  }
  func.func @transform_2(%arg0: i32, %arg1: i32, %arg2: memref<2x2xi32, #tpu.memory_space<smem>>, %arg3: memref<2xi32, #tpu.memory_space<smem>>) -> (i32, i32) {
    %c0_i32 = arith.constant 0 : i32
    %c0_i32_0 = arith.constant 0 : i32
    %c0_i32_1 = arith.constant 0 : i32
    return %c0_i32, %c0_i32_0 : i32, i32
  }
  func.func @transform_3(%arg0: i32, %arg1: i32, %arg2: memref<2x2xi32, #tpu.memory_space<smem>>, %arg3: memref<2xi32, #tpu.memory_space<smem>>) -> (i32, i32) {
    %c0_i32 = arith.constant 0 : i32
    %c0_i32_0 = arith.constant 0 : i32
    return %arg0, %c0_i32 : i32, i32
  }
}

</mosaic_0001>

<bundles_post_ra>
// kernel: gcn_forward.3
= control target key start
LH: loop header
LB: loop body
LE: loop exit
PB: predicated region body
PF: predicated region fallthrough
CT: control target
= control target key end

     0   :  { %s829_s9 = smov 0   ;;  %s913_s0 = inlined_call_operand.vmem [shape: bf16[512,128], index: 0, kind: input, shape index: {}]   ;;  %s914_s1 = inlined_call_operand.vmem [shape: bf16[128,128], index: 1, kind: input, shape index: {}]   ;;  %s915_s2 = inlined_call_operand.vmem [shape: bf16[512,128], index: 2, kind: output, shape index: {}]  }
   0x1 LB: > { %s548_s10 = sadd.s32 4294967295, %s812_s9   ;;  %p552_p0 = scmp.ge.s32.totalorder %s812_s9, 1  ;;  %s812_s9 = sphi %s829_s9, %s12_s9  }
   0x2   : > { %p113_p1 = scmp.lt.s32.totalorder %s812_s9, 3 }
   0x4   : > { %p114_p2 = pnand %p552_p0, %p113_p1 }
   0x5   : > { %s553_s19 = sshll.u32 (!%p114_p2), %s548_s10, 5 }
   0x6   : > { %117 = sbr.rel (%p114_p2) target bundleno = 236 (0xec), region = 28  ;;  %p136_p3 = scmp.lt.s32.totalorder (!%p114_p2), %s553_s19, 63 }
   0xb   : > { %v678_v0 = vld [vmem:[%s914_s1 + $0x38] sm:$0xff]  ;;  %v677_v1 = vld [vmem:[%s914_s1 + $0x30] sm:$0xff]  ;;  %v676_v2 = vld [vmem:[%s914_s1 + $0x28] sm:$0xff]  ;;  %s917_s19 = smov (!%p136_p3, %s553_s19), 63 }
   0xc   : > { %339 = vmatpush.bf16.msra.mxu0 %v678_v0  ;;  %774 = vmatpush.bf16.msra.mxu1 %v678_v0  ;;  %v675_v3 = vld [vmem:[%s914_s1 + $0x20] sm:$0xff]  ;;  %v674_v4 = vld [vmem:[%s914_s1 + $0x18] sm:$0xff]  ;;  %v673_v5 = vld [vmem:[%s914_s1 + $0x10] sm:$0xff]  ;;  %s554_s26 = sshll.u32 %s917_s19, 2 }
   0xd   : > { %775 = vmatpush.bf16.msra.mxu2 %v678_v0  ;;  %776 = vmatpush.bf16.msra.mxu3 %v678_v0  ;;  %v672_v6 = vld [vmem:[%s914_s1 + $0x8] sm:$0xff]  ;;  %v671_v7 = vld [vmem:[%s914_s1] sm:$0xff]  ;;  %s869_s3 = scalar_lea.vmem %s913_s0, %s554_s26  ;;  %s892_s6 = scalar_lea.vmem %s915_s2, %s554_s26 }
   0xe   : > { %v655_v8 = vld [vmem:[%s869_s3] sm:$0xff]  ;;  %v656_v12 = vld [vmem:[%s869_s3 + $0x8] sm:$0xff]  ;;  %v657_v16 = vld [vmem:[%s869_s3 + $0x10] sm:$0xff] }
   0xf   : > { %v659_v9 = vld [vmem:[%s869_s3 + $0x20] sm:$0xff]  ;;  %v660_v13 = vld [vmem:[%s869_s3 + $0x28] sm:$0xff]  ;;  %v661_v17 = vld [vmem:[%s869_s3 + $0x30] sm:$0xff] }
  0x10   : > { %340 = vmatpush.bf16.msra.mxu0 %v677_v1  ;;  %777 = vmatpush.bf16.msra.mxu1 %v677_v1  ;;  %v663_v10 = vld [vmem:[%s869_s3 + $0x40] sm:$0xff]  ;;  %v664_v14 = vld [vmem:[%s869_s3 + $0x48] sm:$0xff]  ;;  %v665_v18 = vld [vmem:[%s869_s3 + $0x50] sm:$0xff] }
  0x11   : > { %778 = vmatpush.bf16.msra.mxu2 %v677_v1  ;;  %779 = vmatpush.bf16.msra.mxu3 %v677_v1  ;;  %v667_v11 = vld [vmem:[%s869_s3 + $0x60] sm:$0xff]  ;;  %v668_v15 = vld [vmem:[%s869_s3 + $0x68] sm:$0xff]  ;;  %v669_v19 = vld [vmem:[%s869_s3 + $0x70] sm:$0xff] }
  0x12   : > { %v658_v20 = vld [vmem:[%s869_s3 + $0x18] sm:$0xff] }
  0x13   : > { %v662_v21 = vld [vmem:[%s869_s3 + $0x38] sm:$0xff] }
  0x14   : > { %341 = vmatpush.bf16.msra.mxu0 %v676_v2  ;;  %780 = vmatpush.bf16.msra.mxu1 %v676_v2  ;;  %v666_v22 = vld [vmem:[%s869_s3 + $0x58] sm:$0xff] }
  0x15   : > { %781 = vmatpush.bf16.msra.mxu2 %v676_v2  ;;  %782 = vmatpush.bf16.msra.mxu3 %v676_v2  ;;  %v670_v23 = vld [vmem:[%s869_s3 + $0x78] sm:$0xff] }
  0x18   : > { %342 = vmatpush.bf16.msra.mxu0 %v675_v3  ;;  %783 = vmatpush.bf16.msra.mxu1 %v675_v3 }
  0x19   : > { %784 = vmatpush.bf16.msra.mxu2 %v675_v3  ;;  %785 = vmatpush.bf16.msra.mxu3 %v675_v3 }
  0x1c   : > { %343 = vmatpush.bf16.msra.mxu0 %v674_v4  ;;  %786 = vmatpush.bf16.msra.mxu1 %v674_v4 }
  0x1d   : > { %787 = vmatpush.bf16.msra.mxu2 %v674_v4  ;;  %788 = vmatpush.bf16.msra.mxu3 %v674_v4 }
  0x20   : > { %344 = vmatpush.bf16.msra.mxu0 %v673_v5  ;;  %789 = vmatpush.bf16.msra.mxu1 %v673_v5 }
  0x21   : > { %790 = vmatpush.bf16.msra.mxu2 %v673_v5  ;;  %791 = vmatpush.bf16.msra.mxu3 %v673_v5 }
  0x24   : > { %345 = vmatpush.bf16.msra.mxu0 %v672_v6  ;;  %792 = vmatpush.bf16.msra.mxu1 %v672_v6 }
  0x25   : > { %793 = vmatpush.bf16.msra.mxu2 %v672_v6  ;;  %794 = vmatpush.bf16.msra.mxu3 %v672_v6 }
  0x28   : > { %346 = vmatpush.bf16.msra.mxu0 %v671_v7  ;;  %795 = vmatpush.bf16.msra.mxu1 %v671_v7 }
  0x29   : > { %796 = vmatpush.bf16.msra.mxu2 %v671_v7  ;;  %797 = vmatpush.bf16.msra.mxu3 %v671_v7 }
  0x2b   : > { %347 = vmatmul.bf16.vlgmr.msra.gmra.mxu0 %v655_v8  ;;  %367 = vmatmul.bf16.vlgmr.msra.gmra.mxu1 %v659_v9 }
  0x2c   : > { %387 = vmatmul.bf16.vlgmr.msra.gmra.mxu2 %v663_v10  ;;  %407 = vmatmul.bf16.vlgmr.msra.gmra.mxu3 %v667_v11 }
  0x3b   : > { %352 = vmatmul.bf16.gmra.mxu0 %v656_v12  ;;  %372 = vmatmul.bf16.gmra.mxu1 %v660_v13 }
  0x3c   : > { %392 = vmatmul.bf16.gmra.mxu2 %v664_v14  ;;  %412 = vmatmul.bf16.gmra.mxu3 %v668_v15 }
  0x4b   : > { %357 = vmatmul.bf16.gmra.mxu0 %v657_v16  ;;  %377 = vmatmul.bf16.gmra.mxu1 %v661_v17 }
  0x4c   : > { %397 = vmatmul.bf16.gmra.mxu2 %v665_v18  ;;  %417 = vmatmul.bf16.gmra.mxu3 %v669_v19 }
  0x5b   : > { %362 = vmatmul.bf16.gmra.mxu0 %v658_v20  ;;  %382 = vmatmul.bf16.gmra.mxu1 %v662_v21 }
  0x5c   : > { %402 = vmatmul.bf16.gmra.mxu2 %v666_v22  ;;  %422 = vmatmul.bf16.gmra.mxu3 %v670_v23 }
  0xa8   : > { %v348_v24 = vpop.f32.mrf.mxu0  ;;  %v368_v25 = vpop.f32.mrf.mxu1 }
  0xaf   : > { %v388_v26 = vpop.f32.mrf.mxu2  ;;  %v408_v27 = vpop.f32.mrf.mxu3 }
  0xb0   : > { %v350_v28 = vpop.f32.mrf.mxu0  ;;  %v370_v29 = vpop.f32.mrf.mxu1 }
  0xb1   : > { %v682_v30 = vpack.c.bf16 %v350_v28, %v348_v24  ;;  %v702_v31 = vpack.c.bf16 %v370_v29, %v368_v25 }
  0xb3   : > { %683 = vst [vmem:[%s892_s6] sm:$0xff] %v682_v30  }
  0xb4   : > { %762 = vst [vmem:[%s892_s6 + $0x20] sm:$0xff] %v702_v31  }
  0xb7   : > { %v390_v32 = vpop.f32.mrf.mxu2  ;;  %v410_v33 = vpop.f32.mrf.mxu3 }
  0xb8   : > { %v722_v34 = vpack.c.bf16 %v390_v32, %v388_v26  ;;  %v742_v35 = vpack.c.bf16 %v410_v33, %v408_v27  ;;  %v353_v36 = vpop.f32.mrf.mxu0  ;;  %v373_v37 = vpop.f32.mrf.mxu1 }
  0xba   : > { %766 = vst [vmem:[%s892_s6 + $0x40] sm:$0xff] %v722_v34  }
  0xbb   : > { %770 = vst [vmem:[%s892_s6 + $0x60] sm:$0xff] %v742_v35  }
  0xbf   : > { %v393_v38 = vpop.f32.mrf.mxu2  ;;  %v413_v39 = vpop.f32.mrf.mxu3 }
  0xc0   : > { %v355_v40 = vpop.f32.mrf.mxu0  ;;  %v375_v41 = vpop.f32.mrf.mxu1 }
  0xc1   : > { %v687_v42 = vpack.c.bf16 %v355_v40, %v353_v36  ;;  %v707_v43 = vpack.c.bf16 %v375_v41, %v373_v37 }
  0xc3   : > { %759 = vst [vmem:[%s892_s6 + $0x8] sm:$0xff] %v687_v42  }
  0xc4   : > { %763 = vst [vmem:[%s892_s6 + $0x28] sm:$0xff] %v707_v43  }
  0xc7   : > { %v395_v44 = vpop.f32.mrf.mxu2  ;;  %v415_v45 = vpop.f32.mrf.mxu3 }
  0xc8   : > { %v727_v46 = vpack.c.bf16 %v395_v44, %v393_v38  ;;  %v747_v47 = vpack.c.bf16 %v415_v45, %v413_v39  ;;  %v358_v48 = vpop.f32.mrf.mxu0  ;;  %v378_v49 = vpop.f32.mrf.mxu1 }
  0xca   : > { %767 = vst [vmem:[%s892_s6 + $0x48] sm:$0xff] %v727_v46  }
  0xcb   : > { %771 = vst [vmem:[%s892_s6 + $0x68] sm:$0xff] %v747_v47  }
  0xcf   : > { %v398_v50 = vpop.f32.mrf.mxu2  ;;  %v418_v51 = vpop.f32.mrf.mxu3 }
  0xd0   : > { %v360_v52 = vpop.f32.mrf.mxu0  ;;  %v380_v53 = vpop.f32.mrf.mxu1 }
  0xd1   : > { %v692_v54 = vpack.c.bf16 %v360_v52, %v358_v48  ;;  %v712_v55 = vpack.c.bf16 %v380_v53, %v378_v49 }
  0xd3   : > { %760 = vst [vmem:[%s892_s6 + $0x10] sm:$0xff] %v692_v54  }
  0xd4   : > { %764 = vst [vmem:[%s892_s6 + $0x30] sm:$0xff] %v712_v55  }
  0xd7   : > { %v400_v56 = vpop.f32.mrf.mxu2  ;;  %v420_v57 = vpop.f32.mrf.mxu3 }
  0xd8   : > { %v732_v58 = vpack.c.bf16 %v400_v56, %v398_v50  ;;  %v752_v59 = vpack.c.bf16 %v420_v57, %v418_v51  ;;  %v363_v60 = vpop.f32.mrf.mxu0  ;;  %v383_v61 = vpop.f32.mrf.mxu1 }
  0xda   : > { %768 = vst [vmem:[%s892_s6 + $0x50] sm:$0xff] %v732_v58  }
  0xdb   : > { %772 = vst [vmem:[%s892_s6 + $0x70] sm:$0xff] %v752_v59  }
  0xdf   : > { %v403_v62 = vpop.f32.mrf.mxu2  ;;  %v423_v63 = vpop.f32.mrf.mxu3 }
  0xe0   : > { %v365_v0 = vpop.f32.mrf.mxu0  ;;  %v385_v1 = vpop.f32.mrf.mxu1 }
  0xe1   : > { %v697_v2 = vpack.c.bf16 %v365_v0, %v363_v60  ;;  %v717_v3 = vpack.c.bf16 %v385_v1, %v383_v61 }
  0xe3   : > { %761 = vst [vmem:[%s892_s6 + $0x18] sm:$0xff] %v697_v2  }
  0xe4   : > { %765 = vst [vmem:[%s892_s6 + $0x38] sm:$0xff] %v717_v3  }
  0xe7   : > { %v405_v4 = vpop.f32.mrf.mxu2  ;;  %v425_v5 = vpop.f32.mrf.mxu3 }
  0xe8   : > { %v737_v6 = vpack.c.bf16 %v405_v4, %v403_v62  ;;  %v757_v7 = vpack.c.bf16 %v425_v5, %v423_v63 }
  0xea   : > { %769 = vst [vmem:[%s892_s6 + $0x58] sm:$0xff] %v737_v6  }
  0xeb   : > { %773 = vst [vmem:[%s892_s6 + $0x78] sm:$0xff] %v757_v7  }
  0xec PF: > { %s12_s9 = sadd.s32 1, %s812_s9  }
  0xed   : > { %p9_p4 = scmp.ge.s32.totalorder %s12_s9, 4  }
  0xef   :  { %11 = sbr.rel (!%p9_p4) target bundleno = 1 (0x1), region = 58 }

// kernel: gcn_forward.4
= control target key start
LH: loop header
LB: loop body
LE: loop exit
PB: predicated region body
PF: predicated region fallthrough
CT: control target
= control target key end

     0   :  { %s2148_s27 = smov [#allocation4]   ;;  %s2149_s28 = smov [#allocation5]   ;;  %s2524_s0 = inlined_call_operand.vmem [shape: s32[2,2], index: 0, kind: input, shape index: {}]   ;;  %s2525_s2 = inlined_call_operand.vmem [shape: bf16[512,512], index: 2, kind: input, shape index: {}]   ;;  %s2526_s3 = inlined_call_operand.vmem [shape: bf16[512,128], index: 3, kind: input, shape index: {}]   ;;  %s2527_s4 = inlined_call_operand.vmem [shape: f32[1,128], index: 4, kind: input, shape index: {}]   ;;  %s2528_s5 = inlined_call_operand.vmem [shape: bf16[128,128], index: 5, kind: input, shape index: {}]   ;;  %s2529_s6 = inlined_call_operand.vmem [shape: bf16[512,128], index: 6, kind: output, shape index: {}]   ;;  %s2530_s1 = inlined_call_operand.vmem [shape: s32[2], index: 1, kind: input, shape index: {}]  }
   0x1   :  { %s12_s23 = sshll.u32 %s2524_s0, 4  ;;  %s17_s26 = sshll.u32 %s2530_s1, 4  ;;  %s13_s23 = int_to_ptr.vmem [resolvable:$true] %s12_s23  ;;  %s18_s26 = int_to_ptr.vmem [resolvable:$true] %s17_s26 }
   0x2   :  { %15 = dma.vmem_to_smem %s13_s23, 32, %s2148_s27, [#allocation3] }
   0x3   :  { %20 = dma.vmem_to_smem %s18_s26, 16, %s2149_s28, [#allocation3] }
   0x4   :  { %2118 = dma.done.wait [#allocation3], 48 }
   0x5   :  { %2119 = vsyncadd [#allocation3], 4294967248 }
   0x6   :  { %23 = sfence }
   0x7   :  { %s2192_s29 = smov 0   ;;  %s2194_s30 = smov 0  }
   0x8   :  { %s2196_s7 = smov 0   ;;  %s2198_s0 = smov 0  }
   0x9   :  { %s2200_s8 = smov 0   ;;  %s2202_s1 = smov 0  }
   0xa   :  { %s2204_s9 = smov 0  }
   0xb LB: > { %s38_s10 = sadd.s32 1, %s2138_s8  ;;  %s41_s11 = sadd.s32 1, %s2142_s1  ;;  %s2146_s9 = sphi %s2204_s9, %s29_s9   ;;  %s2142_s1 = sphi %s2202_s1, %s2536_s1   ;;  %s2138_s8 = sphi %s2200_s8, %s2535_s8   ;;  %s2134_s0 = sphi %s2198_s0, %s2534_s0   ;;  %s2130_s7 = sphi %s2196_s7, %s2533_s7   ;;  %s2126_s30 = sphi %s2194_s30, %s2532_s30   ;;  %s2122_s29 = sphi %s2192_s29, %s2531_s29  }
   0xc   : > { %p39_p0 = scmp.ge.s32.totalorder %s38_s10, 2  ;;  %s45_s12 = sshra.s32 %s2138_s8, 7 }
   0xd   : > { %s47_s13 = sadd.s32 %s2142_s1, %s45_s12  ;;  %s50_s14 = sand.u32 127, %s2138_s8 }
   0xe   : > { %s2538_s10 = smov (%p39_p0, %s38_s10), 0  ;;  %s2540_s11 = smov (!%p39_p0, %s41_s11), %s2142_s1 }
   0xf   : > { %s1566_s15 = sshll.u32 %s47_s13, 7  ;;  %p43_p1 = scmp.ge.s32.totalorder %s2540_s11, 2 }
  0x10   : > { %s51_s16 = sadd.s32 %s1566_s15, %s50_s14  ;;  %s53_s17 = sshra.s32 %s2538_s10, 7 }
  0x11   : > { %s2542_s11 = smov (%p43_p1, %s2540_s11), 0  ;;  %s58_s18 = sand.u32 127, %s2538_s10 }
  0x12   : > { %p73_p2 = scmp.ne.s32.totalorder %s2126_s30, %s2122_s29  ;;  %s52_s19 = sld [smem:[#allocation4 + %s51_s16]] }
  0x13   : > { %s55_s20 = sadd.s32 %s53_s17, %s2542_s11  ;;  %p74_p3 = scmp.eq.s32.totalorder %s2146_s9, 0 }
  0x14   : > { %s1567_s21 = sshll.u32 %s55_s20, 7  ;;  %s61_s24 = ssub.s32 %s2142_s1, %s2542_s11 }
  0x15   : > { %s59_s22 = sadd.s32 %s1567_s21, %s58_s18  ;;  %p75_p4 = por %p74_p3, %p73_p2 }
  0x16   : > { %s60_s23 = sld [smem:[#allocation4 + %s59_s22]]  ;;  %s66_s27 = sadd.s32 1, %s2126_s30 }
  0x17   : > { %p1571_p6 = scmp.ge.s32.totalorder %s2146_s9, 4 }
  0x1c   : > { %s62_s25 = ssub.s32 %s52_s19, %s60_s23  ;;  %215 = sbr.rel (%p1571_p6) target bundleno = 76 (0x4c), region = 24 }
  0x1d   : > { %s63_s26 = sor.u32 %s62_s25, %s61_s24 }
  0x1e   : > { %p64_p5 = scmp.eq.s32.totalorder %s63_s26, 0 }
  0x20   : > { %s2247_s28 = scalar_select %p64_p5, %s2126_s30, %s66_s27  }
  0x21   : > { %218 = sbr.rel (!%p75_p4) target bundleno = 76 (0x4c), region = 28  ;;  %s230_s12 = sld [smem:[#allocation4 + %s51_s16]] (%p75_p4) }
  0x22   : > { %s220_s13 = sand.u32 (%p75_p4), 1, %s2126_s30   ;;  %s1814_s14 = sshll.u32 (%p75_p4), %s2142_s1, 7 }
  0x23   : > { %s1572_s15 = sshll.u32 (%p75_p4), %s220_s13, 8 }
  0x24   : > { %s2260_s16 = scalar_lea.vmem (%p75_p4), [#allocation6], %s1572_s15 }
  0x27   : > { %s1575_s17 = sshll.u32 %s230_s12, 1 }
  0x28   : > { %s234_s18 = sadd.s32 %s1814_s14, %s1575_s17 }
  0x29   : > { %s1577_s20 = sshll.u32 %s234_s18, 2 }
  0x2a   : > { %s2255_s22 = scalar_lea.vmem %s2525_s2, %s1577_s20 }
  0x2b   : > { %v327_v0 = vld [vmem:[%s2255_s22] sm:$0xff]  ;;  %v329_v1 = vld [vmem:[%s2255_s22 + $0x10] sm:$0xff] }
  0x2c   : > { %v331_v2 = vld [vmem:[%s2255_s22 + $0x20] sm:$0xff]  ;;  %328 = vst [vmem:[%s2260_s16] sm:$0xff] %v327_v0  ;;  %v333_v3 = vld [vmem:[%s2255_s22 + $0x30] sm:$0xff] }
  0x2d   : > { %330 = vst [vmem:[%s2260_s16 + $0x8] sm:$0xff] %v329_v1  ;;  %v335_v4 = vld [vmem:[%s2255_s22 + $0x40] sm:$0xff]  ;;  %v337_v5 = vld [vmem:[%s2255_s22 + $0x50] sm:$0xff] }
  0x2e   : > { %332 = vst [vmem:[%s2260_s16 + $0x10] sm:$0xff] %v331_v2  ;;  %v339_v6 = vld [vmem:[%s2255_s22 + $0x60] sm:$0xff]  ;;  %v341_v7 = vld [vmem:[%s2255_s22 + $0x70] sm:$0xff] }
  0x2f   : > { %334 = vst [vmem:[%s2260_s16 + $0x18] sm:$0xff] %v333_v3  ;;  %v343_v8 = vld [vmem:[%s2255_s22 + $0x80] sm:$0xff]  ;;  %v345_v9 = vld [vmem:[%s2255_s22 + $0x90] sm:$0xff] }
  0x30   : > { %336 = vst [vmem:[%s2260_s16 + $0x20] sm:$0xff] %v335_v4  ;;  %v347_v10 = vld [vmem:[%s2255_s22 + $0xa0] sm:$0xff]  ;;  %v349_v11 = vld [vmem:[%s2255_s22 + $0xb0] sm:$0xff] }
  0x31   : > { %338 = vst [vmem:[%s2260_s16 + $0x28] sm:$0xff] %v337_v5  ;;  %v351_v12 = vld [vmem:[%s2255_s22 + $0xc0] sm:$0xff]  ;;  %v353_v13 = vld [vmem:[%s2255_s22 + $0xd0] sm:$0xff] }
  0x32   : > { %340 = vst [vmem:[%s2260_s16 + $0x30] sm:$0xff] %v339_v6  ;;  %v355_v14 = vld [vmem:[%s2255_s22 + $0xe0] sm:$0xff]  ;;  %v357_v15 = vld [vmem:[%s2255_s22 + $0xf0] sm:$0xff] }
  0x33   : > { %342 = vst [vmem:[%s2260_s16 + $0x38] sm:$0xff] %v341_v7  ;;  %v359_v16 = vld [vmem:[%s2255_s22 + $0x100] sm:$0xff]  ;;  %v361_v17 = vld [vmem:[%s2255_s22 + $0x110] sm:$0xff] }
  0x34   : > { %344 = vst [vmem:[%s2260_s16 + $0x40] sm:$0xff] %v343_v8  ;;  %v363_v18 = vld [vmem:[%s2255_s22 + $0x120] sm:$0xff]  ;;  %v365_v19 = vld [vmem:[%s2255_s22 + $0x130] sm:$0xff] }
  0x35   : > { %346 = vst [vmem:[%s2260_s16 + $0x48] sm:$0xff] %v345_v9  ;;  %v367_v20 = vld [vmem:[%s2255_s22 + $0x140] sm:$0xff]  ;;  %v369_v21 = vld [vmem:[%s2255_s22 + $0x150] sm:$0xff] }
  0x36   : > { %348 = vst [vmem:[%s2260_s16 + $0x50] sm:$0xff] %v347_v10  ;;  %v371_v22 = vld [vmem:[%s2255_s22 + $0x160] sm:$0xff]  ;;  %v373_v23 = vld [vmem:[%s2255_s22 + $0x170] sm:$0xff] }
  0x37   : > { %350 = vst [vmem:[%s2260_s16 + $0x58] sm:$0xff] %v349_v11  ;;  %v375_v24 = vld [vmem:[%s2255_s22 + $0x180] sm:$0xff]  ;;  %v377_v25 = vld [vmem:[%s2255_s22 + $0x190] sm:$0xff] }
  0x38   : > { %352 = vst [vmem:[%s2260_s16 + $0x60] sm:$0xff] %v351_v12  ;;  %v379_v26 = vld [vmem:[%s2255_s22 + $0x1a0] sm:$0xff]  ;;  %v381_v27 = vld [vmem:[%s2255_s22 + $0x1b0] sm:$0xff] }
  0x39   : > { %354 = vst [vmem:[%s2260_s16 + $0x68] sm:$0xff] %v353_v13  ;;  %v383_v28 = vld [vmem:[%s2255_s22 + $0x1c0] sm:$0xff]  ;;  %v385_v29 = vld [vmem:[%s2255_s22 + $0x1d0] sm:$0xff] }
  0x3a   : > { %356 = vst [vmem:[%s2260_s16 + $0x70] sm:$0xff] %v355_v14  ;;  %v387_v30 = vld [vmem:[%s2255_s22 + $0x1e0] sm:$0xff]  ;;  %v389_v31 = vld [vmem:[%s2255_s22 + $0x1f0] sm:$0xff] }
  0x3b   : > { %358 = vst [vmem:[%s2260_s16 + $0x78] sm:$0xff] %v357_v15 }
  0x3c   : > { %360 = vst [vmem:[%s2260_s16 + $0x80] sm:$0xff] %v359_v16 }
  0x3d   : > { %362 = vst [vmem:[%s2260_s16 + $0x88] sm:$0xff] %v361_v17 }
  0x3e   : > { %364 = vst [vmem:[%s2260_s16 + $0x90] sm:$0xff] %v363_v18 }
  0x3f   : > { %366 = vst [vmem:[%s2260_s16 + $0x98] sm:$0xff] %v365_v19 }
  0x40   : > { %368 = vst [vmem:[%s2260_s16 + $0xa0] sm:$0xff] %v367_v20 }
  0x41   : > { %370 = vst [vmem:[%s2260_s16 + $0xa8] sm:$0xff] %v369_v21 }
  0x42   : > { %372 = vst [vmem:[%s2260_s16 + $0xb0] sm:$0xff] %v371_v22 }
  0x43   : > { %374 = vst [vmem:[%s2260_s16 + $0xb8] sm:$0xff] %v373_v23 }
  0x44   : > { %376 = vst [vmem:[%s2260_s16 + $0xc0] sm:$0xff] %v375_v24 }
  0x45   : > { %378 = vst [vmem:[%s2260_s16 + $0xc8] sm:$0xff] %v377_v25 }
  0x46   : > { %380 = vst [vmem:[%s2260_s16 + $0xd0] sm:$0xff] %v379_v26 }
  0x47   : > { %382 = vst [vmem:[%s2260_s16 + $0xd8] sm:$0xff] %v381_v27 }
  0x48   : > { %384 = vst [vmem:[%s2260_s16 + $0xe0] sm:$0xff] %v383_v28 }
  0x49   : > { %386 = vst [vmem:[%s2260_s16 + $0xe8] sm:$0xff] %v385_v29 }
  0x4a   : > { %388 = vst [vmem:[%s2260_s16 + $0xf0] sm:$0xff] %v387_v30 }
  0x4b   : > { %390 = vst [vmem:[%s2260_s16 + $0xf8] sm:$0xff] %v389_v31 }
  0x4c PF: > { %p1578_p7 = scmp.ge.s32.totalorder %s2146_s9, 1  ;;  %p420_p8 = scmp.lt.s32.totalorder %s2146_s9, 5 }
  0x4e   : > { %p421_p9 = pnand %p1578_p7, %p420_p8 }
  0x4f   : > { %s427_s23 = sand.u32 (!%p421_p9), 1, %s2122_s29   ;;  %s475_s24 = sshra.s32 (!%p421_p9), %s2130_s7, 7 }
  0x50   : > { %424 = sbr.rel (%p421_p9) target bundleno = 664 (0x298), region = 70  ;;  %s1579_s25 = sshll.u32 (!%p421_p9), %s427_s23, 8 }
  0x51   : > { %s477_s26 = sadd.s32 (!%p421_p9), %s2134_s0, %s475_s24  ;;  %s480_s12 = sand.u32 (!%p421_p9), 127, %s2130_s7 }
  0x52   : > { %s1580_s27 = sshll.u32 (!%p421_p9), %s477_s26, 7  ;;  %s1583_s13 = sshll.u32 (!%p421_p9), %s2134_s0, 5 }
  0x53   : > { %s481_s14 = sadd.s32 (!%p421_p9), %s1580_s27, %s480_s12  ;;  %p498_p10 = scmp.lt.s32.totalorder (!%p421_p9), %s1583_s13, 63 }
  0x54   : > { %s482_s15 = sld [smem:[#allocation4 + %s481_s14]] (!%p421_p9)  ;;  %s2340_s24 = scalar_lea.vmem (!%p421_p9), [#allocation6], %s1579_s25 }
  0x55   : > { %s2544_s13 = smov (!%p498_p10, %s1583_s13), 63  ;;  %p1585_p12 = scmp.ne.s32.totalorder %s2130_s7, 0 }
  0x56   : > { %s1584_s17 = sshll.u32 %s2544_s13, 2 }
  0x57   : > { %s2333_s21 = scalar_lea.vmem %s2529_s6, %s1584_s17 }
  0x5a   : > { %s1581_s19 = sshll.u32 %s482_s15, 5 }
  0x5b   : > { %p484_p11 = scmp.lt.s32.totalorder %s1581_s19, 63  ;;  %506 = sbr.rel (%p1585_p12) target bundleno = 129 (0x81), region = 78 }
  0x5d   : > { %s2546_s19 = smov (!%p484_p11, %s1581_s19), 63 }
  0x5e   : > { %s1582_s29 = sshll.u32 %s2546_s19, 2 }
  0x5f   : > { %s2338_s23 = scalar_lea.vmem %s2526_s3, %s1582_s29 }
  0x60   : > { %v2150_v32 = vmov 0.0  }
  0x61   : > { %507 = vst [vmem:[#allocation2 + $0xb0] sm:$0xff] %v2150_v32 }
  0x62   : > { %508 = vst [vmem:[#allocation2] sm:$0xff] %v2150_v32 }
  0x63   : > { %509 = vst [vmem:[#allocation2 + $0xd8] sm:$0xff] %v2150_v32 }
  0x64   : > { %510 = vst [vmem:[#allocation2 + $0x18] sm:$0xff] %v2150_v32 }
  0x65   : > { %511 = vst [vmem:[#allocation2 + $0x50] sm:$0xff] %v2150_v32 }
  0x66   : > { %512 = vst [vmem:[#allocation2 + $0x68] sm:$0xff] %v2150_v32 }
  0x67   : > { %513 = vst [vmem:[#allocation2 + $0x30] sm:$0xff] %v2150_v32 }
  0x68   : > { %514 = vst [vmem:[#allocation2 + $0x48] sm:$0xff] %v2150_v32 }
  0x69   : > { %515 = vst [vmem:[#allocation2 + $0x80] sm:$0xff] %v2150_v32 }
  0x6a   : > { %516 = vst [vmem:[#allocation2 + $0x88] sm:$0xff] %v2150_v32 }
  0x6b   : > { %517 = vst [vmem:[#allocation2 + $0xe8] sm:$0xff] %v2150_v32 }
  0x6c   : > { %518 = vst [vmem:[#allocation2 + $0xb8] sm:$0xff] %v2150_v32 }
  0x6d   : > { %519 = vst [vmem:[#allocation2 + $0x60] sm:$0xff] %v2150_v32 }
  0x6e   : > { %520 = vst [vmem:[#allocation2 + $0xf0] sm:$0xff] %v2150_v32 }
  0x6f   : > { %521 = vst [vmem:[#allocation2 + $0x8] sm:$0xff] %v2150_v32 }
  0x70   : > { %522 = vst [vmem:[#allocation2 + $0x78] sm:$0xff] %v2150_v32 }
  0x71   : > { %523 = vst [vmem:[#allocation2 + $0x38] sm:$0xff] %v2150_v32 }
  0x72   : > { %524 = vst [vmem:[#allocation2 + $0x58] sm:$0xff] %v2150_v32 }
  0x73   : > { %525 = vst [vmem:[#allocation2 + $0x40] sm:$0xff] %v2150_v32 }
  0x74   : > { %526 = vst [vmem:[#allocation2 + $0xc8] sm:$0xff] %v2150_v32 }
  0x75   : > { %527 = vst [vmem:[#allocation2 + $0xe0] sm:$0xff] %v2150_v32 }
  0x76   : > { %528 = vst [vmem:[#allocation2 + $0x90] sm:$0xff] %v2150_v32 }
  0x77   : > { %529 = vst [vmem:[#allocation2 + $0x70] sm:$0xff] %v2150_v32 }
  0x78   : > { %530 = vst [vmem:[#allocation2 + $0xc0] sm:$0xff] %v2150_v32 }
  0x79   : > { %531 = vst [vmem:[#allocation2 + $0xa8] sm:$0xff] %v2150_v32 }
  0x7a   : > { %532 = vst [vmem:[#allocation2 + $0xd0] sm:$0xff] %v2150_v32 }
  0x7b   : > { %533 = vst [vmem:[#allocation2 + $0x10] sm:$0xff] %v2150_v32 }
  0x7c   : > { %534 = vst [vmem:[#allocation2 + $0x28] sm:$0xff] %v2150_v32 }
  0x7d   : > { %535 = vst [vmem:[#allocation2 + $0xa0] sm:$0xff] %v2150_v32 }
  0x7e   : > { %536 = vst [vmem:[#allocation2 + $0xf8] sm:$0xff] %v2150_v32 }
  0x7f   : > { %537 = vst [vmem:[#allocation2 + $0x20] sm:$0xff] %v2150_v32 }
  0x80   : > { %538 = vst [vmem:[#allocation2 + $0x98] sm:$0xff] %v2150_v32 }
  0x81 PF: > { %s539_s25 = sld [smem:[#allocation5 + %s2134_s0]] }
  0x87   : > { %p1586_p13 = scmp.ge.s32.totalorder %s2130_s7, %s539_s25 }
  0x89   : > { %543 = sbr.rel (%p1586_p13) target bundleno = 432 (0x1b0), region = 82 }
  0x8e   : > { %v1854_v33 = vld [vmem:[%s2338_s23 + $0x38] sm:$0xff]  ;;  %v1853_v35 = vld [vmem:[%s2338_s23 + $0x30] sm:$0xff]  ;;  %v1852_v37 = vld [vmem:[%s2338_s23 + $0x28] sm:$0xff] }
  0x8f   : > { %v1862_v34 = vld [vmem:[%s2338_s23 + $0x78] sm:$0xff]  ;;  %896 = vmatpush.bf16.msra.mxu0 %v1854_v33  ;;  %1966 = vmatpush.bf16.msra.mxu2 %v1854_v33  ;;  %v1861_v36 = vld [vmem:[%s2338_s23 + $0x70] sm:$0xff]  ;;  %v1860_v38 = vld [vmem:[%s2338_s23 + $0x68] sm:$0xff] }
  0x90   : > { %985 = vmatpush.bf16.msra.mxu1 %v1862_v34  ;;  %1974 = vmatpush.bf16.msra.mxu3 %v1862_v34  ;;  %v1851_v39 = vld [vmem:[%s2338_s23 + $0x20] sm:$0xff]  ;;  %v1850_v41 = vld [vmem:[%s2338_s23 + $0x18] sm:$0xff]  ;;  %v1849_v43 = vld [vmem:[%s2338_s23 + $0x10] sm:$0xff] }
  0x91   : > { %v1859_v40 = vld [vmem:[%s2338_s23 + $0x60] sm:$0xff]  ;;  %v1858_v42 = vld [vmem:[%s2338_s23 + $0x58] sm:$0xff]  ;;  %v1857_v44 = vld [vmem:[%s2338_s23 + $0x50] sm:$0xff] }
  0x92   : > { %v1848_v45 = vld [vmem:[%s2338_s23 + $0x8] sm:$0xff]  ;;  %v1847_v47 = vld [vmem:[%s2338_s23] sm:$0xff]  ;;  %v1597_v61 = vld [vmem:[%s2340_s24 + $0x10] sm:$0xf] }
  0x93   : > { %897 = vmatpush.bf16.msra.mxu0 %v1853_v35  ;;  %1967 = vmatpush.bf16.msra.mxu2 %v1853_v35  ;;  %v1856_v46 = vld [vmem:[%s2338_s23 + $0x48] sm:$0xff]  ;;  %v1855_v48 = vld [vmem:[%s2338_s23 + $0x40] sm:$0xff]  ;;  %v1818_v62 = vld [vmem:[%s2340_s24 + $0x14] sm:$0xf0] }
  0x94   : > { %986 = vmatpush.bf16.msra.mxu1 %v1861_v36  ;;  %1975 = vmatpush.bf16.msra.mxu3 %v1861_v36  ;;  %v1589_v49 = vld [vmem:[%s2340_s24] sm:$0xf]  ;;  %v1816_v50 = vld [vmem:[%s2340_s24 + $0x4] sm:$0xf0]  ;;  %v1815_v53 = vld [vmem:[%s2340_s24 + $0x4] sm:$0xf]  ;;  %v1598_v5 = vor.u32 %v1818_v62, %v1597_v61 }
  0x95   : > { %v1653_v51 = vld [vmem:[%s2340_s24 + $0x80] sm:$0xf]  ;;  %v1832_v52 = vld [vmem:[%s2340_s24 + $0x84] sm:$0xf0]  ;;  %v1591_v54 = vld [vmem:[%s2340_s24 + $0x8] sm:$0xf0]  ;;  %v1590_v57 = vor.u32 %v1816_v50, %v1589_v49 }
  0x96   : > { %v1831_v55 = vld [vmem:[%s2340_s24 + $0x84] sm:$0xf]  ;;  %v1655_v56 = vld [vmem:[%s2340_s24 + $0x88] sm:$0xf0]  ;;  %v1654_v58 = vor.u32 %v1832_v52, %v1653_v51  ;;  %v1594_v59 = vor.u32 %v1815_v53, %v1591_v54  ;;  %v1661_v63 = vld [vmem:[%s2340_s24 + $0x90] sm:$0xf] }
  0x97   : > { %898 = vmatpush.bf16.msra.mxu0 %v1852_v37  ;;  %1968 = vmatpush.bf16.msra.mxu2 %v1852_v37  ;;  %v1658_v60 = vor.u32 %v1831_v55, %v1655_v56  ;;  %v1834_v0 = vld [vmem:[%s2340_s24 + $0x94] sm:$0xf0]  ;;  %v1817_v1 = vld [vmem:[%s2340_s24 + $0x14] sm:$0xf]  ;;  %v1599_v2 = vld [vmem:[%s2340_s24 + $0x18] sm:$0xf0] }
  0x98   : > { %987 = vmatpush.bf16.msra.mxu1 %v1860_v38  ;;  %1976 = vmatpush.bf16.msra.mxu3 %v1860_v38  ;;  %v1833_v3 = vld [vmem:[%s2340_s24 + $0x94] sm:$0xf]  ;;  %v1663_v4 = vld [vmem:[%s2340_s24 + $0x98] sm:$0xf0]  ;;  %v1662_v6 = vor.u32 %v1834_v0, %v1661_v63  ;;  %v1602_v7 = vor.u32 %v1817_v1, %v1599_v2  ;;  %v1605_v9 = vld [vmem:[%s2340_s24 + $0x20] sm:$0xf] }
  0x99   : > { %v1666_v8 = vor.u32 %v1833_v3, %v1663_v4  ;;  %v1820_v10 = vld [vmem:[%s2340_s24 + $0x24] sm:$0xf0]  ;;  %v1669_v11 = vld [vmem:[%s2340_s24 + $0xa0] sm:$0xf]  ;;  %v1819_v13 = vld [vmem:[%s2340_s24 + $0x24] sm:$0xf] }
  0x9a   : > { %v1836_v12 = vld [vmem:[%s2340_s24 + $0xa4] sm:$0xf0]  ;;  %v1607_v14 = vld [vmem:[%s2340_s24 + $0x28] sm:$0xf0]  ;;  %v1835_v15 = vld [vmem:[%s2340_s24 + $0xa4] sm:$0xf]  ;;  %v1606_v17 = vor.u32 %v1820_v10, %v1605_v9 }
  0x9b   : > { %899 = vmatpush.bf16.msra.mxu0 %v1851_v39  ;;  %1969 = vmatpush.bf16.msra.mxu2 %v1851_v39  ;;  %v1671_v16 = vld [vmem:[%s2340_s24 + $0xa8] sm:$0xf0]  ;;  %v1670_v18 = vor.u32 %v1836_v12, %v1669_v11  ;;  %v1610_v19 = vor.u32 %v1819_v13, %v1607_v14  ;;  %v1613_v21 = vld [vmem:[%s2340_s24 + $0x30] sm:$0xf]  ;;  %v1822_v22 = vld [vmem:[%s2340_s24 + $0x34] sm:$0xf0] }
  0x9c   : > { %988 = vmatpush.bf16.msra.mxu1 %v1859_v40  ;;  %1977 = vmatpush.bf16.msra.mxu3 %v1859_v40  ;;  %v1674_v20 = vor.u32 %v1835_v15, %v1671_v16  ;;  %v1677_v23 = vld [vmem:[%s2340_s24 + $0xb0] sm:$0xf]  ;;  %v1838_v24 = vld [vmem:[%s2340_s24 + $0xb4] sm:$0xf0]  ;;  %v1821_v25 = vld [vmem:[%s2340_s24 + $0x34] sm:$0xf]  ;;  %v1614_v29 = vor.u32 %v1822_v22, %v1613_v21 }
  0x9d   : > { %v1615_v26 = vld [vmem:[%s2340_s24 + $0x38] sm:$0xf0]  ;;  %v1837_v27 = vld [vmem:[%s2340_s24 + $0xb4] sm:$0xf]  ;;  %v1678_v30 = vor.u32 %v1838_v24, %v1677_v23  ;;  %v1621_v33 = vld [vmem:[%s2340_s24 + $0x40] sm:$0xf] }
  0x9e   : > { %v1679_v28 = vld [vmem:[%s2340_s24 + $0xb8] sm:$0xf0]  ;;  %v1618_v31 = vor.u32 %v1821_v25, %v1615_v26  ;;  %v1824_v34 = vld [vmem:[%s2340_s24 + $0x44] sm:$0xf0]  ;;  %v1685_v35 = vld [vmem:[%s2340_s24 + $0xc0] sm:$0xf] }
  0x9f   : > { %900 = vmatpush.bf16.msra.mxu0 %v1850_v41  ;;  %1970 = vmatpush.bf16.msra.mxu2 %v1850_v41  ;;  %v1682_v32 = vor.u32 %v1837_v27, %v1679_v28  ;;  %v1840_v36 = vld [vmem:[%s2340_s24 + $0xc4] sm:$0xf0]  ;;  %v1823_v37 = vld [vmem:[%s2340_s24 + $0x44] sm:$0xf]  ;;  %v1623_v38 = vld [vmem:[%s2340_s24 + $0x48] sm:$0xf0]  ;;  %v1622_v41 = vor.u32 %v1824_v34, %v1621_v33 }
  0xa0   : > { %989 = vmatpush.bf16.msra.mxu1 %v1858_v42  ;;  %1978 = vmatpush.bf16.msra.mxu3 %v1858_v42  ;;  %v1839_v39 = vld [vmem:[%s2340_s24 + $0xc4] sm:$0xf]  ;;  %v1687_v40 = vld [vmem:[%s2340_s24 + $0xc8] sm:$0xf0]  ;;  %v1686_v42 = vor.u32 %v1840_v36, %v1685_v35  ;;  %v1825_v49 = vld [vmem:[%s2340_s24 + $0x54] sm:$0xf] }
  0xa1   : > { %v1631_v50 = vld [vmem:[%s2340_s24 + $0x58] sm:$0xf0]  ;;  %v1841_v51 = vld [vmem:[%s2340_s24 + $0xd4] sm:$0xf]  ;;  %v1827_v61 = vld [vmem:[%s2340_s24 + $0x64] sm:$0xf] }
  0xa2   : > { %v1695_v52 = vld [vmem:[%s2340_s24 + $0xd8] sm:$0xf0]  ;;  %v1634_v55 = vor.u32 %v1825_v49, %v1631_v50  ;;  %v1639_v62 = vld [vmem:[%s2340_s24 + $0x68] sm:$0xf0]  ;;  %v1843_v63 = vld [vmem:[%s2340_s24 + $0xe4] sm:$0xf] }
  0xa3   : > { %901 = vmatpush.bf16.msra.mxu0 %v1849_v43  ;;  %1971 = vmatpush.bf16.msra.mxu2 %v1849_v43  ;;  %v1626_v43 = vor.u32 %v1823_v37, %v1623_v38  ;;  %v1698_v56 = vor.u32 %v1841_v51, %v1695_v52  ;;  %v1703_v0 = vld [vmem:[%s2340_s24 + $0xe8] sm:$0xf0]  ;;  %v1642_v3 = vor.u32 %v1827_v61, %v1639_v62  ;;  %v1829_v9 = vld [vmem:[%s2340_s24 + $0x74] sm:$0xf]  ;;  %v1647_v10 = vld [vmem:[%s2340_s24 + $0x78] sm:$0xf0] }
  0xa4   : > { %990 = vmatpush.bf16.msra.mxu1 %v1857_v44  ;;  %1979 = vmatpush.bf16.msra.mxu3 %v1857_v44  ;;  %v1690_v44 = vor.u32 %v1839_v39, %v1687_v40  ;;  %v1706_v4 = vor.u32 %v1843_v63, %v1703_v0  ;;  %v1845_v11 = vld [vmem:[%s2340_s24 + $0xf4] sm:$0xf]  ;;  %v1711_v12 = vld [vmem:[%s2340_s24 + $0xf8] sm:$0xf0]  ;;  %v1650_v15 = vor.u32 %v1829_v9, %v1647_v10  ;;  %v545_v27 = vld [vmem:[#allocation2] sm:$0xff] }
  0xa5   : > { %v1714_v16 = vor.u32 %v1845_v11, %v1711_v12  ;;  %v560_v23 = vld [vmem:[#allocation2 + $0x38] sm:$0xff]  ;;  %v564_v63 = vld [vmem:[#allocation2 + $0xe0] sm:$0xff]  ;;  %v565_v9 = vld [vmem:[#allocation2 + $0x90] sm:$0xff] }
  0xa6   : > { %v561_v33 = vld [vmem:[#allocation2 + $0x58] sm:$0xff] }
  0xa7   : > { %902 = vmatpush.bf16.msra.mxu0 %v1848_v45  ;;  %1972 = vmatpush.bf16.msra.mxu2 %v1848_v45  ;;  %v1629_v45 = vld [vmem:[%s2340_s24 + $0x50] sm:$0xf]  ;;  %v546_v37 = vld [vmem:[#allocation2 + $0xd8] sm:$0xff] }
  0xa8   : > { %991 = vmatpush.bf16.msra.mxu1 %v1856_v46  ;;  %1980 = vmatpush.bf16.msra.mxu3 %v1856_v46  ;;  %v1826_v46 = vld [vmem:[%s2340_s24 + $0x54] sm:$0xf0] }
  0xa9   : > { %v1630_v53 = vor.u32 %v1826_v46, %v1629_v45 }
  0xab   : > { %903 = vmatpush.bf16.msra.mxu0 %v1847_v47  ;;  %1973 = vmatpush.bf16.msra.mxu2 %v1847_v47  ;;  %v1693_v47 = vld [vmem:[%s2340_s24 + $0xd0] sm:$0xf] }
  0xac   : > { %992 = vmatpush.bf16.msra.mxu1 %v1855_v48  ;;  %1981 = vmatpush.bf16.msra.mxu3 %v1855_v48  ;;  %v1842_v48 = vld [vmem:[%s2340_s24 + $0xd4] sm:$0xf0] }
  0xad   : > { %v1694_v54 = vor.u32 %v1842_v48, %v1693_v47  ;;  %v547_v47 = vld [vmem:[#allocation2 + $0x18] sm:$0xff] }
  0xae   : > { %904 = vmatmul.bf16.vlgmr.msra.gmra.mxu0 %v1590_v57  ;;  %944 = vmatmul.bf16.vlgmr.msra.gmra.mxu2 %v1654_v58  ;;  %v1637_v57 = vld [vmem:[%s2340_s24 + $0x60] sm:$0xf]  ;;  %v1828_v58 = vld [vmem:[%s2340_s24 + $0x64] sm:$0xf0] }
  0xaf   : > { %993 = vmatmul.bf16.vlgmr.msra.gmra.mxu1 %v1594_v59  ;;  %1033 = vmatmul.bf16.vlgmr.msra.gmra.mxu3 %v1658_v60  ;;  %v1701_v59 = vld [vmem:[%s2340_s24 + $0xe0] sm:$0xf]  ;;  %v1844_v60 = vld [vmem:[%s2340_s24 + $0xe4] sm:$0xf0]  ;;  %v1638_v1 = vor.u32 %v1828_v58, %v1637_v57  ;;  %v548_v57 = vld [vmem:[#allocation2 + $0x50] sm:$0xff] }
  0xb0   : > { %v1702_v2 = vor.u32 %v1844_v60, %v1701_v59 }
  0xbe   : > { %909 = vmatmul.bf16.gmra.mxu0 %v1598_v5  ;;  %949 = vmatmul.bf16.gmra.mxu2 %v1662_v6  ;;  %v1645_v5 = vld [vmem:[%s2340_s24 + $0x70] sm:$0xf]  ;;  %v1830_v6 = vld [vmem:[%s2340_s24 + $0x74] sm:$0xf0] }
  0xbf   : > { %998 = vmatmul.bf16.gmra.mxu1 %v1602_v7  ;;  %1038 = vmatmul.bf16.gmra.mxu3 %v1666_v8  ;;  %v1709_v7 = vld [vmem:[%s2340_s24 + $0xf0] sm:$0xf]  ;;  %v1846_v8 = vld [vmem:[%s2340_s24 + $0xf4] sm:$0xf0]  ;;  %v1646_v13 = vor.u32 %v1830_v6, %v1645_v5 }
  0xc0   : > { %v1710_v14 = vor.u32 %v1846_v8, %v1709_v7 }
  0xce   : > { %914 = vmatmul.bf16.gmra.mxu0 %v1606_v17  ;;  %954 = vmatmul.bf16.gmra.mxu2 %v1670_v18  ;;  %v544_v18 = vld [vmem:[#allocation2 + $0xb0] sm:$0xff] }
  0xcf   : > { %1003 = vmatmul.bf16.gmra.mxu1 %v1610_v19  ;;  %1043 = vmatmul.bf16.gmra.mxu3 %v1674_v20 }
  0xde   : > { %919 = vmatmul.bf16.gmra.mxu0 %v1614_v29  ;;  %959 = vmatmul.bf16.gmra.mxu2 %v1678_v30 }
  0xdf   : > { %1008 = vmatmul.bf16.gmra.mxu1 %v1618_v31  ;;  %1048 = vmatmul.bf16.gmra.mxu3 %v1682_v32 }
  0xee   : > { %924 = vmatmul.bf16.gmra.mxu0 %v1622_v41  ;;  %964 = vmatmul.bf16.gmra.mxu2 %v1686_v42 }
  0xef   : > { %1013 = vmatmul.bf16.gmra.mxu1 %v1626_v43  ;;  %1053 = vmatmul.bf16.gmra.mxu3 %v1690_v44  ;;  %v562_v43 = vld [vmem:[#allocation2 + $0x40] sm:$0xff] }
  0xfe   : > { %929 = vmatmul.bf16.gmra.mxu0 %v1630_v53  ;;  %969 = vmatmul.bf16.gmra.mxu2 %v1694_v54  ;;  %v563_v53 = vld [vmem:[#allocation2 + $0xc8] sm:$0xff] }
  0xff   : > { %1018 = vmatmul.bf16.gmra.mxu1 %v1634_v55  ;;  %1058 = vmatmul.bf16.gmra.mxu3 %v1698_v56 }
 0x10e   : > { %934 = vmatmul.bf16.gmra.mxu0 %v1638_v1  ;;  %974 = vmatmul.bf16.gmra.mxu2 %v1702_v2 }
 0x10f   : > { %1023 = vmatmul.bf16.gmra.mxu1 %v1642_v3  ;;  %1063 = vmatmul.bf16.gmra.mxu3 %v1706_v4  ;;  %v549_v3 = vld [vmem:[#allocation2 + $0x68] sm:$0xff] }
 0x11e   : > { %939 = vmatmul.bf16.gmra.mxu0 %v1646_v13  ;;  %979 = vmatmul.bf16.gmra.mxu2 %v1710_v14  ;;  %v550_v13 = vld [vmem:[#allocation2 + $0x30] sm:$0xff] }
 0x11f   : > { %1028 = vmatmul.bf16.gmra.mxu1 %v1650_v15  ;;  %1068 = vmatmul.bf16.gmra.mxu3 %v1714_v16 }
 0x12b   : > { %v905_v17 = vpop.f32.mrf.mxu0 }
 0x12c   : > { %v994_v19 = vpop.f32.mrf.mxu1 }
 0x12d   : > { %v995_v20 = vadd.f32 %v994_v19, %v905_v17  ;;  %v566_v19 = vld [vmem:[#allocation2 + $0x70] sm:$0xff] }
 0x12f   : > { %v1074_v21 = vadd.f32 %v995_v20, %v544_v18 }
 0x131   : > { %1106 = vst [vmem:[#allocation2 + $0xb0] sm:$0xff] %v1074_v21  ;;  %v945_v22 = vpop.f32.mrf.mxu2 }
 0x132   : > { %v1034_v24 = vpop.f32.mrf.mxu3 }
 0x133   : > { %v1035_v25 = vadd.f32 %v1034_v24, %v945_v22  ;;  %v907_v26 = vpop.f32.mrf.mxu0 }
 0x134   : > { %v996_v28 = vpop.f32.mrf.mxu1 }
 0x135   : > { %v1090_v29 = vadd.f32 %v1035_v25, %v560_v23  ;;  %v997_v30 = vadd.f32 %v996_v28, %v907_v26  ;;  %v551_v23 = vld [vmem:[#allocation2 + $0x48] sm:$0xff] }
 0x137   : > { %1122 = vst [vmem:[#allocation2 + $0x38] sm:$0xff] %v1090_v29  ;;  %v1075_v31 = vadd.f32 %v997_v30, %v545_v27  ;;  %v567_v29 = vld [vmem:[#allocation2 + $0xc0] sm:$0xff] }
 0x139   : > { %1107 = vst [vmem:[#allocation2] sm:$0xff] %v1075_v31  ;;  %v947_v32 = vpop.f32.mrf.mxu2 }
 0x13a   : > { %v1036_v34 = vpop.f32.mrf.mxu3 }
 0x13b   : > { %v1037_v35 = vadd.f32 %v1036_v34, %v947_v32  ;;  %v910_v36 = vpop.f32.mrf.mxu0 }
 0x13c   : > { %v999_v38 = vpop.f32.mrf.mxu1 }
 0x13d   : > { %v1091_v39 = vadd.f32 %v1037_v35, %v561_v33  ;;  %v1000_v40 = vadd.f32 %v999_v38, %v910_v36  ;;  %v552_v33 = vld [vmem:[#allocation2 + $0x80] sm:$0xff] }
 0x13f   : > { %1123 = vst [vmem:[#allocation2 + $0x58] sm:$0xff] %v1091_v39  ;;  %v1076_v41 = vadd.f32 %v1000_v40, %v546_v37  ;;  %v568_v39 = vld [vmem:[#allocation2 + $0xa8] sm:$0xff] }
 0x141   : > { %1108 = vst [vmem:[#allocation2 + $0xd8] sm:$0xff] %v1076_v41  ;;  %v950_v42 = vpop.f32.mrf.mxu2 }
 0x142   : > { %v1039_v44 = vpop.f32.mrf.mxu3 }
 0x143   : > { %v1040_v45 = vadd.f32 %v1039_v44, %v950_v42  ;;  %v912_v46 = vpop.f32.mrf.mxu0 }
 0x144   : > { %v1001_v48 = vpop.f32.mrf.mxu1 }
 0x145   : > { %v1092_v49 = vadd.f32 %v1040_v45, %v562_v43  ;;  %v1002_v50 = vadd.f32 %v1001_v48, %v912_v46  ;;  %v553_v43 = vld [vmem:[#allocation2 + $0x88] sm:$0xff] }
 0x147   : > { %1124 = vst [vmem:[#allocation2 + $0x40] sm:$0xff] %v1092_v49  ;;  %v1077_v51 = vadd.f32 %v1002_v50, %v547_v47  ;;  %v569_v49 = vld [vmem:[#allocation2 + $0xd0] sm:$0xff] }
 0x149   : > { %1109 = vst [vmem:[#allocation2 + $0x18] sm:$0xff] %v1077_v51  ;;  %v952_v52 = vpop.f32.mrf.mxu2 }
 0x14a   : > { %v1041_v54 = vpop.f32.mrf.mxu3 }
 0x14b   : > { %v1042_v55 = vadd.f32 %v1041_v54, %v952_v52  ;;  %v915_v56 = vpop.f32.mrf.mxu0 }
 0x14c   : > { %v1004_v58 = vpop.f32.mrf.mxu1 }
 0x14d   : > { %v1093_v59 = vadd.f32 %v1042_v55, %v563_v53  ;;  %v1005_v60 = vadd.f32 %v1004_v58, %v915_v56  ;;  %v554_v53 = vld [vmem:[#allocation2 + $0xe8] sm:$0xff] }
 0x14f   : > { %1125 = vst [vmem:[#allocation2 + $0xc8] sm:$0xff] %v1093_v59  ;;  %v1078_v61 = vadd.f32 %v1005_v60, %v548_v57  ;;  %v570_v59 = vld [vmem:[#allocation2 + $0x10] sm:$0xff] }
 0x151   : > { %1110 = vst [vmem:[#allocation2 + $0x50] sm:$0xff] %v1078_v61  ;;  %v955_v62 = vpop.f32.mrf.mxu2 }
 0x152   : > { %v1044_v0 = vpop.f32.mrf.mxu3 }
 0x153   : > { %v1045_v1 = vadd.f32 %v1044_v0, %v955_v62  ;;  %v917_v2 = vpop.f32.mrf.mxu0 }
 0x154   : > { %v1006_v4 = vpop.f32.mrf.mxu1 }
 0x155   : > { %v1094_v5 = vadd.f32 %v1045_v1, %v564_v63  ;;  %v1007_v6 = vadd.f32 %v1006_v4, %v917_v2  ;;  %v555_v63 = vld [vmem:[#allocation2 + $0xb8] sm:$0xff] }
 0x157   : > { %1126 = vst [vmem:[#allocation2 + $0xe0] sm:$0xff] %v1094_v5  ;;  %v1079_v7 = vadd.f32 %v1007_v6, %v549_v3  ;;  %v571_v5 = vld [vmem:[#allocation2 + $0x28] sm:$0xff] }
 0x159   : > { %1111 = vst [vmem:[#allocation2 + $0x68] sm:$0xff] %v1079_v7  ;;  %v957_v8 = vpop.f32.mrf.mxu2 }
 0x15a   : > { %v1046_v10 = vpop.f32.mrf.mxu3 }
 0x15b   : > { %v1047_v11 = vadd.f32 %v1046_v10, %v957_v8  ;;  %v920_v12 = vpop.f32.mrf.mxu0 }
 0x15c   : > { %v1009_v14 = vpop.f32.mrf.mxu1 }
 0x15d   : > { %v1095_v15 = vadd.f32 %v1047_v11, %v565_v9  ;;  %v1010_v16 = vadd.f32 %v1009_v14, %v920_v12  ;;  %v556_v9 = vld [vmem:[#allocation2 + $0x60] sm:$0xff] }
 0x15f   : > { %1127 = vst [vmem:[#allocation2 + $0x90] sm:$0xff] %v1095_v15  ;;  %v1080_v17 = vadd.f32 %v1010_v16, %v550_v13  ;;  %v572_v15 = vld [vmem:[#allocation2 + $0xa0] sm:$0xff] }
 0x161   : > { %1112 = vst [vmem:[#allocation2 + $0x30] sm:$0xff] %v1080_v17  ;;  %v960_v18 = vpop.f32.mrf.mxu2 }
 0x162   : > { %v1049_v20 = vpop.f32.mrf.mxu3 }
 0x163   : > { %v1050_v21 = vadd.f32 %v1049_v20, %v960_v18  ;;  %v922_v22 = vpop.f32.mrf.mxu0 }
 0x164   : > { %v1011_v24 = vpop.f32.mrf.mxu1 }
 0x165   : > { %v1096_v25 = vadd.f32 %v1050_v21, %v566_v19  ;;  %v1012_v26 = vadd.f32 %v1011_v24, %v922_v22  ;;  %v557_v19 = vld [vmem:[#allocation2 + $0xf0] sm:$0xff] }
 0x167   : > { %1128 = vst [vmem:[#allocation2 + $0x70] sm:$0xff] %v1096_v25  ;;  %v1081_v27 = vadd.f32 %v1012_v26, %v551_v23  ;;  %v573_v25 = vld [vmem:[#allocation2 + $0xf8] sm:$0xff] }
 0x169   : > { %1113 = vst [vmem:[#allocation2 + $0x48] sm:$0xff] %v1081_v27  ;;  %v962_v28 = vpop.f32.mrf.mxu2 }
 0x16a   : > { %v1051_v30 = vpop.f32.mrf.mxu3 }
 0x16b   : > { %v1052_v31 = vadd.f32 %v1051_v30, %v962_v28  ;;  %v925_v32 = vpop.f32.mrf.mxu0 }
 0x16c   : > { %v1014_v34 = vpop.f32.mrf.mxu1 }
 0x16d   : > { %v1097_v35 = vadd.f32 %v1052_v31, %v567_v29  ;;  %v1015_v36 = vadd.f32 %v1014_v34, %v925_v32  ;;  %v558_v29 = vld [vmem:[#allocation2 + $0x8] sm:$0xff] }
 0x16f   : > { %1129 = vst [vmem:[#allocation2 + $0xc0] sm:$0xff] %v1097_v35  ;;  %v1082_v37 = vadd.f32 %v1015_v36, %v552_v33  ;;  %v574_v35 = vld [vmem:[#allocation2 + $0x20] sm:$0xff] }
 0x171   : > { %1114 = vst [vmem:[#allocation2 + $0x80] sm:$0xff] %v1082_v37  ;;  %v965_v38 = vpop.f32.mrf.mxu2 }
 0x172   : > { %v1054_v40 = vpop.f32.mrf.mxu3 }
 0x173   : > { %v1055_v41 = vadd.f32 %v1054_v40, %v965_v38  ;;  %v927_v42 = vpop.f32.mrf.mxu0 }
 0x174   : > { %v1016_v44 = vpop.f32.mrf.mxu1 }
 0x175   : > { %v1098_v45 = vadd.f32 %v1055_v41, %v568_v39  ;;  %v1017_v46 = vadd.f32 %v1016_v44, %v927_v42  ;;  %v559_v39 = vld [vmem:[#allocation2 + $0x78] sm:$0xff] }
 0x177   : > { %1130 = vst [vmem:[#allocation2 + $0xa8] sm:$0xff] %v1098_v45  ;;  %v1083_v47 = vadd.f32 %v1017_v46, %v553_v43  ;;  %v575_v45 = vld [vmem:[#allocation2 + $0x98] sm:$0xff] }
 0x179   : > { %1115 = vst [vmem:[#allocation2 + $0x88] sm:$0xff] %v1083_v47  ;;  %v967_v48 = vpop.f32.mrf.mxu2 }
 0x17a   : > { %v1056_v50 = vpop.f32.mrf.mxu3 }
 0x17b   : > { %v1057_v51 = vadd.f32 %v1056_v50, %v967_v48  ;;  %v930_v52 = vpop.f32.mrf.mxu0 }
 0x17c   : > { %v1019_v54 = vpop.f32.mrf.mxu1 }
 0x17d   : > { %v1099_v55 = vadd.f32 %v1057_v51, %v569_v49  ;;  %v1020_v56 = vadd.f32 %v1019_v54, %v930_v52 }
 0x17f   : > { %1131 = vst [vmem:[#allocation2 + $0xd0] sm:$0xff] %v1099_v55  ;;  %v1084_v57 = vadd.f32 %v1020_v56, %v554_v53 }
 0x181   : > { %1116 = vst [vmem:[#allocation2 + $0xe8] sm:$0xff] %v1084_v57  ;;  %v970_v58 = vpop.f32.mrf.mxu2 }
 0x182   : > { %v1059_v60 = vpop.f32.mrf.mxu3 }
 0x183   : > { %v1060_v61 = vadd.f32 %v1059_v60, %v970_v58  ;;  %v932_v62 = vpop.f32.mrf.mxu0 }
 0x184   : > { %v1021_v0 = vpop.f32.mrf.mxu1 }
 0x185   : > { %v1100_v1 = vadd.f32 %v1060_v61, %v570_v59  ;;  %v1022_v2 = vadd.f32 %v1021_v0, %v932_v62 }
 0x187   : > { %1132 = vst [vmem:[#allocation2 + $0x10] sm:$0xff] %v1100_v1  ;;  %v1085_v3 = vadd.f32 %v1022_v2, %v555_v63 }
 0x189   : > { %1117 = vst [vmem:[#allocation2 + $0xb8] sm:$0xff] %v1085_v3  ;;  %v972_v4 = vpop.f32.mrf.mxu2 }
 0x18a   : > { %v1061_v6 = vpop.f32.mrf.mxu3 }
 0x18b   : > { %v1062_v7 = vadd.f32 %v1061_v6, %v972_v4  ;;  %v935_v8 = vpop.f32.mrf.mxu0 }
 0x18c   : > { %v1024_v10 = vpop.f32.mrf.mxu1 }
 0x18d   : > { %v1101_v11 = vadd.f32 %v1062_v7, %v571_v5  ;;  %v1025_v12 = vadd.f32 %v1024_v10, %v935_v8 }
 0x18f   : > { %1133 = vst [vmem:[#allocation2 + $0x28] sm:$0xff] %v1101_v11  ;;  %v1086_v13 = vadd.f32 %v1025_v12, %v556_v9 }
 0x191   : > { %1118 = vst [vmem:[#allocation2 + $0x60] sm:$0xff] %v1086_v13  ;;  %v975_v14 = vpop.f32.mrf.mxu2 }
 0x192   : > { %v1064_v16 = vpop.f32.mrf.mxu3 }
 0x193   : > { %v1065_v17 = vadd.f32 %v1064_v16, %v975_v14  ;;  %v937_v18 = vpop.f32.mrf.mxu0 }
 0x194   : > { %v1026_v20 = vpop.f32.mrf.mxu1 }
 0x195   : > { %v1102_v21 = vadd.f32 %v1065_v17, %v572_v15  ;;  %v1027_v22 = vadd.f32 %v1026_v20, %v937_v18 }
 0x197   : > { %1134 = vst [vmem:[#allocation2 + $0xa0] sm:$0xff] %v1102_v21  ;;  %v1087_v23 = vadd.f32 %v1027_v22, %v557_v19 }
 0x199   : > { %1119 = vst [vmem:[#allocation2 + $0xf0] sm:$0xff] %v1087_v23  ;;  %v977_v24 = vpop.f32.mrf.mxu2 }
 0x19a   : > { %v1066_v26 = vpop.f32.mrf.mxu3 }
 0x19b   : > { %v1067_v27 = vadd.f32 %v1066_v26, %v977_v24  ;;  %v940_v28 = vpop.f32.mrf.mxu0 }
 0x19c   : > { %v1029_v30 = vpop.f32.mrf.mxu1 }
 0x19d   : > { %v1103_v31 = vadd.f32 %v1067_v27, %v573_v25  ;;  %v1030_v32 = vadd.f32 %v1029_v30, %v940_v28 }
 0x19f   : > { %1135 = vst [vmem:[#allocation2 + $0xf8] sm:$0xff] %v1103_v31  ;;  %v1088_v33 = vadd.f32 %v1030_v32, %v558_v29 }
 0x1a1   : > { %1120 = vst [vmem:[#allocation2 + $0x8] sm:$0xff] %v1088_v33  ;;  %v980_v34 = vpop.f32.mrf.mxu2 }
 0x1a2   : > { %v1069_v36 = vpop.f32.mrf.mxu3 }
 0x1a3   : > { %v1070_v37 = vadd.f32 %v1069_v36, %v980_v34  ;;  %v942_v38 = vpop.f32.mrf.mxu0 }
 0x1a4   : > { %v1031_v40 = vpop.f32.mrf.mxu1 }
 0x1a5   : > { %v1104_v41 = vadd.f32 %v1070_v37, %v574_v35  ;;  %v1032_v42 = vadd.f32 %v1031_v40, %v942_v38 }
 0x1a7   : > { %1136 = vst [vmem:[#allocation2 + $0x20] sm:$0xff] %v1104_v41  ;;  %v1089_v43 = vadd.f32 %v1032_v42, %v559_v39 }
 0x1a9   : > { %1121 = vst [vmem:[#allocation2 + $0x78] sm:$0xff] %v1089_v43  ;;  %v982_v44 = vpop.f32.mrf.mxu2 }
 0x1aa   : > { %v1071_v46 = vpop.f32.mrf.mxu3 }
 0x1ab   : > { %v1072_v47 = vadd.f32 %v1071_v46, %v982_v44 }
 0x1ad   : > { %v1105_v48 = vadd.f32 %v1072_v47, %v575_v45 }
 0x1af   : > { %1137 = vst [vmem:[#allocation2 + $0x98] sm:$0xff] %v1105_v48 }
 0x1b0 PF: > { %p1779_p0 = scmp.ne.s32.totalorder %s2130_s7, 1 }
 0x1b2   : > { %1141 = sbr.rel (%p1779_p0) target bundleno = 664 (0x298), region = 86 }
 0x1b7   : > { %v1870_v49 = vld [vmem:[%s2528_s5 + $0x38] sm:$0xff]  ;;  %v1869_v50 = vld [vmem:[%s2528_s5 + $0x30] sm:$0xff]  ;;  %v1868_v51 = vld [vmem:[%s2528_s5 + $0x28] sm:$0xff] }
 0x1b8   : > { %1322 = vmatpush.bf16.msra.mxu0 %v1870_v49  ;;  %1982 = vmatpush.bf16.msra.mxu1 %v1870_v49  ;;  %v1867_v52 = vld [vmem:[%s2528_s5 + $0x20] sm:$0xff]  ;;  %v1866_v53 = vld [vmem:[%s2528_s5 + $0x18] sm:$0xff]  ;;  %v1865_v55 = vld [vmem:[%s2528_s5 + $0x10] sm:$0xff] }
 0x1b9   : > { %1983 = vmatpush.bf16.msra.mxu2 %v1870_v49  ;;  %1984 = vmatpush.bf16.msra.mxu3 %v1870_v49  ;;  %v2444_v54 = vld [vmem:[%s2527_s4] ss:$0 sm:$0xff]  ;;  %v1142_v56 = vld [vmem:[#allocation2 + $0xb0] sm:$0xff]  ;;  %v1151_v59 = vld [vmem:[#allocation2 + $0x88] sm:$0xff] }
 0x1ba   : > { %v1143_v57 = vld [vmem:[#allocation2] sm:$0xff]  ;;  %v1158_v60 = vld [vmem:[#allocation2 + $0x38] sm:$0xff]  ;;  %v1166_v62 = vld [vmem:[#allocation2 + $0xa8] sm:$0xff]  ;;  %v1178_v0 = vadd.f32 %v2444_v54, %v1142_v56  ;;  %v1187_v3 = vadd.f32 %v2444_v54, %v1151_v59 }
 0x1bb   : > { %v1150_v58 = vld [vmem:[#allocation2 + $0x80] sm:$0xff]  ;;  %v1159_v61 = vld [vmem:[#allocation2 + $0x58] sm:$0xff]  ;;  %v1167_v63 = vld [vmem:[#allocation2 + $0xd0] sm:$0xff]  ;;  %v1179_v1 = vadd.f32 %v2444_v54, %v1143_v57  ;;  %v1194_v4 = vadd.f32 %v2444_v54, %v1158_v60  ;;  %v1202_v7 = vadd.f32 %v2444_v54, %v1166_v62 }
 0x1bc   : > { %1323 = vmatpush.bf16.msra.mxu0 %v1869_v50  ;;  %1985 = vmatpush.bf16.msra.mxu1 %v1869_v50  ;;  %v1186_v2 = vadd.f32 %v2444_v54, %v1150_v58  ;;  %v1864_v5 = vld [vmem:[%s2528_s5 + $0x8] sm:$0xff]  ;;  %v1195_v6 = vadd.f32 %v2444_v54, %v1159_v61  ;;  %v1203_v8 = vadd.f32 %v2444_v54, %v1167_v63  ;;  %v1210_v9 = vmax.f32 %v1178_v0, 0.0  ;;  %v1863_v13 = vld [vmem:[%s2528_s5] sm:$0xff]  ;;  %v1144_v22 = vld [vmem:[#allocation2 + $0xd8] sm:$0xff] }
 0x1bd   : > { %1986 = vmatpush.bf16.msra.mxu2 %v1869_v50  ;;  %1987 = vmatpush.bf16.msra.mxu3 %v1869_v50  ;;  %v1211_v10 = vmax.f32 %v1179_v1, 0.0  ;;  %v1219_v12 = vmax.f32 %v1187_v3, 0.0  ;;  %v1226_v14 = vmax.f32 %v1194_v4, 0.0  ;;  %v1234_v16 = vmax.f32 %v1202_v7, 0.0  ;;  %v1145_v23 = vld [vmem:[#allocation2 + $0x18] sm:$0xff]  ;;  %v1152_v24 = vld [vmem:[#allocation2 + $0xe8] sm:$0xff] }
 0x1be   : > { %v1218_v11 = vmax.f32 %v1186_v2, 0.0  ;;  %v1227_v15 = vmax.f32 %v1195_v6, 0.0  ;;  %v1235_v17 = vmax.f32 %v1203_v8, 0.0  ;;  %v1153_v25 = vld [vmem:[#allocation2 + $0xb8] sm:$0xff]  ;;  %v1160_v26 = vld [vmem:[#allocation2 + $0x40] sm:$0xff]  ;;  %v1161_v27 = vld [vmem:[#allocation2 + $0xc8] sm:$0xff]  ;;  %v1180_v30 = vadd.f32 %v2444_v54, %v1144_v22 }
 0x1bf   : > { %v1242_v18 = vpack.c.bf16 %v1211_v10, %v1210_v9  ;;  %v1168_v28 = vld [vmem:[#allocation2 + $0x10] sm:$0xff]  ;;  %v1169_v29 = vld [vmem:[#allocation2 + $0x28] sm:$0xff]  ;;  %v1181_v31 = vadd.f32 %v2444_v54, %v1145_v23  ;;  %v1188_v32 = vadd.f32 %v2444_v54, %v1152_v24  ;;  %v1189_v33 = vadd.f32 %v2444_v54, %v1153_v25  ;;  %v1170_v57 = vld [vmem:[#allocation2 + $0xa0] sm:$0xff] }
 0x1c0   : > { %1324 = vmatpush.bf16.msra.mxu0 %v1868_v51  ;;  %1988 = vmatpush.bf16.msra.mxu1 %v1868_v51  ;;  %v1246_v19 = vpack.c.bf16 %v1219_v12, %v1218_v11  ;;  %v1250_v20 = vpack.c.bf16 %v1227_v15, %v1226_v14  ;;  %v1254_v21 = vpack.c.bf16 %v1235_v17, %v1234_v16  ;;  %v1212_v38 = vmax.f32 %v1180_v30, 0.0  ;;  %v1146_v50 = vld [vmem:[#allocation2 + $0x50] sm:$0xff]  ;;  %v1171_v58 = vld [vmem:[#allocation2 + $0xf8] sm:$0xff]  ;;  %v1149_v16 = vld [vmem:[#allocation2 + $0x48] sm:$0xff] }
 0x1c1   : > { %1989 = vmatpush.bf16.msra.mxu2 %v1868_v51  ;;  %1990 = vmatpush.bf16.msra.mxu3 %v1868_v51  ;;  %v1196_v34 = vadd.f32 %v2444_v54, %v1160_v26  ;;  %v1197_v35 = vadd.f32 %v2444_v54, %v1161_v27  ;;  %v1204_v36 = vadd.f32 %v2444_v54, %v1168_v28  ;;  %v1213_v39 = vmax.f32 %v1181_v31, 0.0  ;;  %v1147_v51 = vld [vmem:[#allocation2 + $0x68] sm:$0xff]  ;;  %v1163_v56 = vld [vmem:[#allocation2 + $0x90] sm:$0xff]  ;;  %v1173_v22 = vld [vmem:[#allocation2 + $0x98] sm:$0xff] }
 0x1c2   : > { %v1205_v37 = vadd.f32 %v2444_v54, %v1169_v29  ;;  %v1220_v40 = vmax.f32 %v1188_v32, 0.0  ;;  %v1221_v41 = vmax.f32 %v1189_v33, 0.0  ;;  %v1182_v59 = vadd.f32 %v2444_v54, %v1146_v50  ;;  %v1148_v15 = vld [vmem:[#allocation2 + $0x30] sm:$0xff]  ;;  %v1156_v17 = vld [vmem:[#allocation2 + $0x8] sm:$0xff] }
 0x1c3   : > { %v1228_v42 = vmax.f32 %v1196_v34, 0.0  ;;  %v1229_v43 = vmax.f32 %v1197_v35, 0.0  ;;  %v1236_v44 = vmax.f32 %v1204_v36, 0.0  ;;  %v1243_v46 = vpack.c.bf16 %v1213_v39, %v1212_v38 }
 0x1c4   : > { %1325 = vmatpush.bf16.msra.mxu0 %v1867_v52  ;;  %1991 = vmatpush.bf16.msra.mxu1 %v1867_v52  ;;  %v1237_v45 = vmax.f32 %v1205_v37, 0.0  ;;  %v1247_v47 = vpack.c.bf16 %v1221_v41, %v1220_v40  ;;  %v1183_v60 = vadd.f32 %v2444_v54, %v1147_v51  ;;  %v1199_v0 = vadd.f32 %v2444_v54, %v1163_v56 }
 0x1c5   : > { %1992 = vmatpush.bf16.msra.mxu2 %v1867_v52  ;;  %1993 = vmatpush.bf16.msra.mxu3 %v1867_v52  ;;  %v1251_v48 = vpack.c.bf16 %v1229_v43, %v1228_v42  ;;  %v1154_v52 = vld [vmem:[#allocation2 + $0x60] sm:$0xff]  ;;  %v1206_v1 = vadd.f32 %v2444_v54, %v1170_v57  ;;  %v1207_v2 = vadd.f32 %v2444_v54, %v1171_v58  ;;  %v1214_v3 = vmax.f32 %v1182_v59, 0.0 }
 0x1c6   : > { %v1255_v49 = vpack.c.bf16 %v1237_v45, %v1236_v44  ;;  %v1190_v61 = vadd.f32 %v2444_v54, %v1154_v52  ;;  %v1215_v4 = vmax.f32 %v1183_v60, 0.0  ;;  %v1231_v8 = vmax.f32 %v1199_v0, 0.0 }
 0x1c7   : > { %v1238_v9 = vmax.f32 %v1206_v1, 0.0  ;;  %v1239_v10 = vmax.f32 %v1207_v2, 0.0  ;;  %v1184_v23 = vadd.f32 %v2444_v54, %v1148_v15  ;;  %v1185_v24 = vadd.f32 %v2444_v54, %v1149_v16 }
 0x1c8   : > { %1326 = vmatpush.bf16.msra.mxu0 %v1866_v53  ;;  %1994 = vmatpush.bf16.msra.mxu1 %v1866_v53  ;;  %v1244_v11 = vpack.c.bf16 %v1215_v4, %v1214_v3  ;;  %v1192_v25 = vadd.f32 %v2444_v54, %v1156_v17  ;;  %v1209_v30 = vadd.f32 %v2444_v54, %v1173_v22 }
 0x1c9   : > { %1995 = vmatpush.bf16.msra.mxu2 %v1866_v53  ;;  %1996 = vmatpush.bf16.msra.mxu3 %v1866_v53  ;;  %v1155_v53 = vld [vmem:[#allocation2 + $0xf0] sm:$0xff]  ;;  %v1256_v14 = vpack.c.bf16 %v1239_v10, %v1238_v9  ;;  %v1216_v31 = vmax.f32 %v1184_v23, 0.0  ;;  %v1217_v32 = vmax.f32 %v1185_v24, 0.0 }
 0x1ca   : > { %v1191_v62 = vadd.f32 %v2444_v54, %v1155_v53  ;;  %v1224_v33 = vmax.f32 %v1192_v25, 0.0  ;;  %v1241_v38 = vmax.f32 %v1209_v30, 0.0 }
 0x1cb   : > { %v1245_v39 = vpack.c.bf16 %v1217_v32, %v1216_v31 }
 0x1cc   : > { %1327 = vmatpush.bf16.msra.mxu0 %v1865_v55  ;;  %1997 = vmatpush.bf16.msra.mxu1 %v1865_v55  ;;  %v1223_v6 = vmax.f32 %v1191_v62, 0.0 }
 0x1cd   : > { %1998 = vmatpush.bf16.msra.mxu2 %v1865_v55  ;;  %1999 = vmatpush.bf16.msra.mxu3 %v1865_v55  ;;  %v1162_v55 = vld [vmem:[#allocation2 + $0xe0] sm:$0xff] }
 0x1ce   : > { %v1198_v63 = vadd.f32 %v2444_v54, %v1162_v55 }
 0x1d0   : > { %1328 = vmatpush.bf16.msra.mxu0 %v1864_v5  ;;  %2000 = vmatpush.bf16.msra.mxu1 %v1864_v5  ;;  %v1230_v7 = vmax.f32 %v1198_v63, 0.0 }
 0x1d1   : > { %2001 = vmatpush.bf16.msra.mxu2 %v1864_v5  ;;  %2002 = vmatpush.bf16.msra.mxu3 %v1864_v5  ;;  %v1222_v5 = vmax.f32 %v1190_v61, 0.0 }
 0x1d3   : > { %v1248_v12 = vpack.c.bf16 %v1223_v6, %v1222_v5 }
 0x1d4   : > { %1329 = vmatpush.bf16.msra.mxu0 %v1863_v13  ;;  %2003 = vmatpush.bf16.msra.mxu1 %v1863_v13 }
 0x1d5   : > { %2004 = vmatpush.bf16.msra.mxu2 %v1863_v13  ;;  %2005 = vmatpush.bf16.msra.mxu3 %v1863_v13  ;;  %v1252_v13 = vpack.c.bf16 %v1231_v8, %v1230_v7 }
 0x1d7   : > { %1330 = vmatmul.bf16.vlgmr.msra.gmra.mxu0 %v1242_v18  ;;  %1350 = vmatmul.bf16.vlgmr.msra.gmra.mxu1 %v1246_v19  ;;  %v1157_v18 = vld [vmem:[#allocation2 + $0x78] sm:$0xff]  ;;  %v1164_v19 = vld [vmem:[#allocation2 + $0x70] sm:$0xff] }
 0x1d8   : > { %1370 = vmatmul.bf16.vlgmr.msra.gmra.mxu2 %v1250_v20  ;;  %1390 = vmatmul.bf16.vlgmr.msra.gmra.mxu3 %v1254_v21  ;;  %v1165_v20 = vld [vmem:[#allocation2 + $0xc0] sm:$0xff]  ;;  %v1193_v26 = vadd.f32 %v2444_v54, %v1157_v18  ;;  %v1200_v27 = vadd.f32 %v2444_v54, %v1164_v19 }
 0x1d9   : > { %v1172_v21 = vld [vmem:[#allocation2 + $0x20] sm:$0xff]  ;;  %v1201_v28 = vadd.f32 %v2444_v54, %v1165_v20 }
 0x1da   : > { %v1208_v29 = vadd.f32 %v2444_v54, %v1172_v21  ;;  %v1225_v34 = vmax.f32 %v1193_v26, 0.0  ;;  %v1232_v35 = vmax.f32 %v1200_v27, 0.0 }
 0x1db   : > { %v1233_v36 = vmax.f32 %v1201_v28, 0.0 }
 0x1dc   : > { %v1240_v37 = vmax.f32 %v1208_v29, 0.0  ;;  %v1249_v40 = vpack.c.bf16 %v1225_v34, %v1224_v33 }
 0x1dd   : > { %v1253_v41 = vpack.c.bf16 %v1233_v36, %v1232_v35 }
 0x1de   : > { %v1257_v42 = vpack.c.bf16 %v1241_v38, %v1240_v37 }
 0x1e7   : > { %1335 = vmatmul.bf16.gmra.mxu0 %v1243_v46  ;;  %1355 = vmatmul.bf16.gmra.mxu1 %v1247_v47 }
 0x1e8   : > { %1375 = vmatmul.bf16.gmra.mxu2 %v1251_v48  ;;  %1395 = vmatmul.bf16.gmra.mxu3 %v1255_v49 }
 0x1f7   : > { %1340 = vmatmul.bf16.gmra.mxu0 %v1244_v11  ;;  %1360 = vmatmul.bf16.gmra.mxu1 %v1248_v12 }
 0x1f8   : > { %1380 = vmatmul.bf16.gmra.mxu2 %v1252_v13  ;;  %1400 = vmatmul.bf16.gmra.mxu3 %v1256_v14 }
 0x207   : > { %1345 = vmatmul.bf16.gmra.mxu0 %v1245_v39  ;;  %1365 = vmatmul.bf16.gmra.mxu1 %v1249_v40 }
 0x208   : > { %1385 = vmatmul.bf16.gmra.mxu2 %v1253_v41  ;;  %1405 = vmatmul.bf16.gmra.mxu3 %v1257_v42 }
 0x254   : > { %v1331_v43 = vpop.f32.mrf.mxu0  ;;  %v1351_v54 = vpop.f32.mrf.mxu1 }
 0x25b   : > { %v1371_v44 = vpop.f32.mrf.mxu2  ;;  %v1391_v45 = vpop.f32.mrf.mxu3 }
 0x25c   : > { %v1333_v46 = vpop.f32.mrf.mxu0  ;;  %v1353_v47 = vpop.f32.mrf.mxu1 }
 0x25d   : > { %v1874_v48 = vpack.c.bf16 %v1333_v46, %v1331_v43  ;;  %v1894_v49 = vpack.c.bf16 %v1353_v47, %v1351_v54 }
 0x25f   : > { %1875 = vst [vmem:[%s2333_s21] sm:$0xff] %v1874_v48  }
 0x260   : > { %1954 = vst [vmem:[%s2333_s21 + $0x20] sm:$0xff] %v1894_v49  }
 0x263   : > { %v1373_v50 = vpop.f32.mrf.mxu2  ;;  %v1393_v51 = vpop.f32.mrf.mxu3 }
 0x264   : > { %v1914_v52 = vpack.c.bf16 %v1373_v50, %v1371_v44  ;;  %v1934_v53 = vpack.c.bf16 %v1393_v51, %v1391_v45  ;;  %v1336_v55 = vpop.f32.mrf.mxu0  ;;  %v1356_v56 = vpop.f32.mrf.mxu1 }
 0x266   : > { %1958 = vst [vmem:[%s2333_s21 + $0x40] sm:$0xff] %v1914_v52  }
 0x267   : > { %1962 = vst [vmem:[%s2333_s21 + $0x60] sm:$0xff] %v1934_v53  }
 0x26b   : > { %v1376_v57 = vpop.f32.mrf.mxu2  ;;  %v1396_v58 = vpop.f32.mrf.mxu3 }
 0x26c   : > { %v1338_v59 = vpop.f32.mrf.mxu0  ;;  %v1358_v60 = vpop.f32.mrf.mxu1 }
 0x26d   : > { %v1879_v61 = vpack.c.bf16 %v1338_v59, %v1336_v55  ;;  %v1899_v62 = vpack.c.bf16 %v1358_v60, %v1356_v56 }
 0x26f   : > { %1951 = vst [vmem:[%s2333_s21 + $0x8] sm:$0xff] %v1879_v61  }
 0x270   : > { %1955 = vst [vmem:[%s2333_s21 + $0x28] sm:$0xff] %v1899_v62  }
 0x273   : > { %v1378_v63 = vpop.f32.mrf.mxu2  ;;  %v1398_v0 = vpop.f32.mrf.mxu3 }
 0x274   : > { %v1919_v1 = vpack.c.bf16 %v1378_v63, %v1376_v57  ;;  %v1939_v2 = vpack.c.bf16 %v1398_v0, %v1396_v58  ;;  %v1341_v3 = vpop.f32.mrf.mxu0  ;;  %v1361_v4 = vpop.f32.mrf.mxu1 }
 0x276   : > { %1959 = vst [vmem:[%s2333_s21 + $0x48] sm:$0xff] %v1919_v1  }
 0x277   : > { %1963 = vst [vmem:[%s2333_s21 + $0x68] sm:$0xff] %v1939_v2  }
 0x27b   : > { %v1381_v5 = vpop.f32.mrf.mxu2  ;;  %v1401_v6 = vpop.f32.mrf.mxu3 }
 0x27c   : > { %v1343_v7 = vpop.f32.mrf.mxu0  ;;  %v1363_v8 = vpop.f32.mrf.mxu1 }
 0x27d   : > { %v1884_v9 = vpack.c.bf16 %v1343_v7, %v1341_v3  ;;  %v1904_v10 = vpack.c.bf16 %v1363_v8, %v1361_v4 }
 0x27f   : > { %1952 = vst [vmem:[%s2333_s21 + $0x10] sm:$0xff] %v1884_v9  }
 0x280   : > { %1956 = vst [vmem:[%s2333_s21 + $0x30] sm:$0xff] %v1904_v10  }
 0x283   : > { %v1383_v11 = vpop.f32.mrf.mxu2  ;;  %v1403_v12 = vpop.f32.mrf.mxu3 }
 0x284   : > { %v1924_v13 = vpack.c.bf16 %v1383_v11, %v1381_v5  ;;  %v1944_v14 = vpack.c.bf16 %v1403_v12, %v1401_v6  ;;  %v1346_v15 = vpop.f32.mrf.mxu0  ;;  %v1366_v16 = vpop.f32.mrf.mxu1 }
 0x286   : > { %1960 = vst [vmem:[%s2333_s21 + $0x50] sm:$0xff] %v1924_v13  }
 0x287   : > { %1964 = vst [vmem:[%s2333_s21 + $0x70] sm:$0xff] %v1944_v14  }
 0x28b   : > { %v1386_v17 = vpop.f32.mrf.mxu2  ;;  %v1406_v18 = vpop.f32.mrf.mxu3 }
 0x28c   : > { %v1348_v19 = vpop.f32.mrf.mxu0  ;;  %v1368_v20 = vpop.f32.mrf.mxu1 }
 0x28d   : > { %v1889_v21 = vpack.c.bf16 %v1348_v19, %v1346_v15  ;;  %v1909_v22 = vpack.c.bf16 %v1368_v20, %v1366_v16 }
 0x28f   : > { %1953 = vst [vmem:[%s2333_s21 + $0x18] sm:$0xff] %v1889_v21  }
 0x290   : > { %1957 = vst [vmem:[%s2333_s21 + $0x38] sm:$0xff] %v1909_v22  }
 0x293   : > { %v1388_v23 = vpop.f32.mrf.mxu2  ;;  %v1408_v24 = vpop.f32.mrf.mxu3 }
 0x294   : > { %v1929_v25 = vpack.c.bf16 %v1388_v23, %v1386_v17  ;;  %v1949_v26 = vpack.c.bf16 %v1408_v24, %v1406_v18 }
 0x296   : > { %1961 = vst [vmem:[%s2333_s21 + $0x58] sm:$0xff] %v1929_v25  }
 0x297   : > { %1965 = vst [vmem:[%s2333_s21 + $0x78] sm:$0xff] %v1949_v26  }
 0x298 PF: > { %s29_s9 = sadd.s32 1, %s2146_s9   ;;  %s2531_s29 = smov %s2126_s30 }
 0x299   : > { %p26_p1 = scmp.ge.s32.totalorder %s29_s9, 6   ;;  %s2532_s30 = smov %s2247_s28 }
 0x29a   : > { %s2533_s7 = smov %s2138_s8  ;;  %s2534_s0 = smov %s2142_s1 }
 0x29b   : > { %s2535_s8 = smov %s2538_s10  ;;  %s2536_s1 = smov %s2542_s11 }
 0x29c   :  { %28 = sbr.rel (!%p26_p1) target bundleno = 11 (0xb), region = 124 }

// kernel: gcn_forward.5
= control target key start
LH: loop header
LB: loop body
LE: loop exit
PB: predicated region body
PF: predicated region fallthrough
CT: control target
= control target key end

     0   :  { %s2212_s24 = smov [#allocation4]   ;;  %s2213_s25 = smov [#allocation5]   ;;  %s2898_s0 = inlined_call_operand.vmem [shape: s32[2,2], index: 0, kind: input, shape index: {}]   ;;  %s2899_s2 = inlined_call_operand.vmem [shape: bf16[512,512], index: 2, kind: input, shape index: {}]   ;;  %s2900_s3 = inlined_call_operand.vmem [shape: bf16[512,128], index: 3, kind: input, shape index: {}]   ;;  %s2901_s4 = inlined_call_operand.vmem [shape: f32[1,128], index: 4, kind: input, shape index: {}]   ;;  %s2902_s5 = inlined_call_operand.vmem [shape: f32[512,128], index: 5, kind: output, shape index: {}]   ;;  %s2903_s1 = inlined_call_operand.vmem [shape: s32[2], index: 1, kind: input, shape index: {}]  }
   0x1   :  { %s11_s20 = sshll.u32 %s2898_s0, 4  ;;  %s16_s23 = sshll.u32 %s2903_s1, 4  ;;  %s12_s20 = int_to_ptr.vmem [resolvable:$true] %s11_s20  ;;  %s17_s23 = int_to_ptr.vmem [resolvable:$true] %s16_s23 }
   0x2   :  { %14 = dma.vmem_to_smem %s12_s20, 32, %s2212_s24, [#allocation3] }
   0x3   :  { %19 = dma.vmem_to_smem %s17_s23, 16, %s2213_s25, [#allocation3] }
   0x4   :  { %2182 = dma.done.wait [#allocation3], 48 }
   0x5   :  { %2183 = vsyncadd [#allocation3], 4294967248 }
   0x6   :  { %22 = sfence }
   0x7   :  { %s2251_s26 = smov 0   ;;  %s2253_s27 = smov 0  }
   0x8   :  { %s2255_s28 = smov 0   ;;  %s2257_s0 = smov 0  }
   0x9   :  { %s2259_s29 = smov 0   ;;  %s2261_s1 = smov 0  }
   0xa   :  { %s2263_s30 = smov 0  }
   0xb LB: > { %s37_s6 = sadd.s32 1, %s2202_s29  ;;  %s40_s7 = sadd.s32 1, %s2206_s1  ;;  %s2210_s30 = sphi %s2263_s30, %s28_s30   ;;  %s2206_s1 = sphi %s2261_s1, %s2909_s1   ;;  %s2202_s29 = sphi %s2259_s29, %s2908_s29   ;;  %s2198_s0 = sphi %s2257_s0, %s2907_s0   ;;  %s2194_s28 = sphi %s2255_s28, %s2906_s28   ;;  %s2190_s27 = sphi %s2253_s27, %s2905_s27   ;;  %s2186_s26 = sphi %s2251_s26, %s2904_s26  }
   0xc   : > { %p38_p0 = scmp.ge.s32.totalorder %s37_s6, 2  ;;  %s44_s8 = sshra.s32 %s2202_s29, 7 }
   0xd   : > { %s46_s9 = sadd.s32 %s2206_s1, %s44_s8  ;;  %s49_s10 = sand.u32 127, %s2202_s29 }
   0xe   : > { %s2911_s6 = smov (%p38_p0, %s37_s6), 0  ;;  %s2913_s7 = smov (!%p38_p0, %s40_s7), %s2206_s1 }
   0xf   : > { %s1661_s11 = sshll.u32 %s46_s9, 7  ;;  %p42_p1 = scmp.ge.s32.totalorder %s2913_s7, 2 }
  0x10   : > { %s50_s12 = sadd.s32 %s1661_s11, %s49_s10  ;;  %s52_s13 = sshra.s32 %s2911_s6, 7 }
  0x11   : > { %s2915_s7 = smov (%p42_p1, %s2913_s7), 0  ;;  %s57_s14 = sand.u32 127, %s2911_s6 }
  0x12   : > { %p72_p2 = scmp.ne.s32.totalorder %s2190_s27, %s2186_s26  ;;  %s51_s15 = sld [smem:[#allocation4 + %s50_s12]] }
  0x13   : > { %s54_s16 = sadd.s32 %s52_s13, %s2915_s7  ;;  %p73_p3 = scmp.eq.s32.totalorder %s2210_s30, 0 }
  0x14   : > { %s1662_s17 = sshll.u32 %s54_s16, 7  ;;  %s60_s20 = ssub.s32 %s2206_s1, %s2915_s7 }
  0x15   : > { %s58_s18 = sadd.s32 %s1662_s17, %s57_s14  ;;  %p74_p4 = por %p73_p3, %p72_p2 }
  0x16   : > { %s59_s19 = sld [smem:[#allocation4 + %s58_s18]]  ;;  %s65_s23 = sadd.s32 1, %s2190_s27 }
  0x17   : > { %p1666_p6 = scmp.ge.s32.totalorder %s2210_s30, 4 }
  0x1c   : > { %s61_s21 = ssub.s32 %s51_s15, %s59_s19  ;;  %190 = sbr.rel (%p1666_p6) target bundleno = 76 (0x4c), region = 20 }
  0x1d   : > { %s62_s22 = sor.u32 %s61_s21, %s60_s20 }
  0x1e   : > { %p63_p5 = scmp.eq.s32.totalorder %s62_s22, 0 }
  0x20   : > { %s2306_s24 = scalar_select %p63_p5, %s2190_s27, %s65_s23  }
  0x21   : > { %193 = sbr.rel (!%p74_p4) target bundleno = 76 (0x4c), region = 24  ;;  %s205_s25 = sld [smem:[#allocation4 + %s50_s12]] (%p74_p4) }
  0x22   : > { %s195_s8 = sand.u32 (%p74_p4), 1, %s2190_s27   ;;  %s1877_s9 = sshll.u32 (%p74_p4), %s2206_s1, 7 }
  0x23   : > { %s1667_s10 = sshll.u32 (%p74_p4), %s195_s8, 8 }
  0x24   : > { %s2319_s12 = scalar_lea.vmem (%p74_p4), [#allocation6], %s1667_s10 }
  0x27   : > { %s1670_s11 = sshll.u32 %s205_s25, 1 }
  0x28   : > { %s209_s13 = sadd.s32 %s1877_s9, %s1670_s11 }
  0x29   : > { %s1672_s14 = sshll.u32 %s209_s13, 2 }
  0x2a   : > { %s2314_s17 = scalar_lea.vmem %s2899_s2, %s1672_s14 }
  0x2b   : > { %v302_v0 = vld [vmem:[%s2314_s17] sm:$0xff]  ;;  %v304_v1 = vld [vmem:[%s2314_s17 + $0x10] sm:$0xff] }
  0x2c   : > { %v306_v2 = vld [vmem:[%s2314_s17 + $0x20] sm:$0xff]  ;;  %303 = vst [vmem:[%s2319_s12] sm:$0xff] %v302_v0  ;;  %v308_v3 = vld [vmem:[%s2314_s17 + $0x30] sm:$0xff] }
  0x2d   : > { %305 = vst [vmem:[%s2319_s12 + $0x8] sm:$0xff] %v304_v1  ;;  %v310_v4 = vld [vmem:[%s2314_s17 + $0x40] sm:$0xff]  ;;  %v312_v5 = vld [vmem:[%s2314_s17 + $0x50] sm:$0xff] }
  0x2e   : > { %307 = vst [vmem:[%s2319_s12 + $0x10] sm:$0xff] %v306_v2  ;;  %v314_v6 = vld [vmem:[%s2314_s17 + $0x60] sm:$0xff]  ;;  %v316_v7 = vld [vmem:[%s2314_s17 + $0x70] sm:$0xff] }
  0x2f   : > { %309 = vst [vmem:[%s2319_s12 + $0x18] sm:$0xff] %v308_v3  ;;  %v318_v8 = vld [vmem:[%s2314_s17 + $0x80] sm:$0xff]  ;;  %v320_v9 = vld [vmem:[%s2314_s17 + $0x90] sm:$0xff] }
  0x30   : > { %311 = vst [vmem:[%s2319_s12 + $0x20] sm:$0xff] %v310_v4  ;;  %v322_v10 = vld [vmem:[%s2314_s17 + $0xa0] sm:$0xff]  ;;  %v324_v11 = vld [vmem:[%s2314_s17 + $0xb0] sm:$0xff] }
  0x31   : > { %313 = vst [vmem:[%s2319_s12 + $0x28] sm:$0xff] %v312_v5  ;;  %v326_v12 = vld [vmem:[%s2314_s17 + $0xc0] sm:$0xff]  ;;  %v328_v13 = vld [vmem:[%s2314_s17 + $0xd0] sm:$0xff] }
  0x32   : > { %315 = vst [vmem:[%s2319_s12 + $0x30] sm:$0xff] %v314_v6  ;;  %v330_v14 = vld [vmem:[%s2314_s17 + $0xe0] sm:$0xff]  ;;  %v332_v15 = vld [vmem:[%s2314_s17 + $0xf0] sm:$0xff] }
  0x33   : > { %317 = vst [vmem:[%s2319_s12 + $0x38] sm:$0xff] %v316_v7  ;;  %v334_v16 = vld [vmem:[%s2314_s17 + $0x100] sm:$0xff]  ;;  %v336_v17 = vld [vmem:[%s2314_s17 + $0x110] sm:$0xff] }
  0x34   : > { %319 = vst [vmem:[%s2319_s12 + $0x40] sm:$0xff] %v318_v8  ;;  %v338_v18 = vld [vmem:[%s2314_s17 + $0x120] sm:$0xff]  ;;  %v340_v19 = vld [vmem:[%s2314_s17 + $0x130] sm:$0xff] }
  0x35   : > { %321 = vst [vmem:[%s2319_s12 + $0x48] sm:$0xff] %v320_v9  ;;  %v342_v20 = vld [vmem:[%s2314_s17 + $0x140] sm:$0xff]  ;;  %v344_v21 = vld [vmem:[%s2314_s17 + $0x150] sm:$0xff] }
  0x36   : > { %323 = vst [vmem:[%s2319_s12 + $0x50] sm:$0xff] %v322_v10  ;;  %v346_v22 = vld [vmem:[%s2314_s17 + $0x160] sm:$0xff]  ;;  %v348_v23 = vld [vmem:[%s2314_s17 + $0x170] sm:$0xff] }
  0x37   : > { %325 = vst [vmem:[%s2319_s12 + $0x58] sm:$0xff] %v324_v11  ;;  %v350_v24 = vld [vmem:[%s2314_s17 + $0x180] sm:$0xff]  ;;  %v352_v25 = vld [vmem:[%s2314_s17 + $0x190] sm:$0xff] }
  0x38   : > { %327 = vst [vmem:[%s2319_s12 + $0x60] sm:$0xff] %v326_v12  ;;  %v354_v26 = vld [vmem:[%s2314_s17 + $0x1a0] sm:$0xff]  ;;  %v356_v27 = vld [vmem:[%s2314_s17 + $0x1b0] sm:$0xff] }
  0x39   : > { %329 = vst [vmem:[%s2319_s12 + $0x68] sm:$0xff] %v328_v13  ;;  %v358_v28 = vld [vmem:[%s2314_s17 + $0x1c0] sm:$0xff]  ;;  %v360_v29 = vld [vmem:[%s2314_s17 + $0x1d0] sm:$0xff] }
  0x3a   : > { %331 = vst [vmem:[%s2319_s12 + $0x70] sm:$0xff] %v330_v14  ;;  %v362_v30 = vld [vmem:[%s2314_s17 + $0x1e0] sm:$0xff]  ;;  %v364_v31 = vld [vmem:[%s2314_s17 + $0x1f0] sm:$0xff] }
  0x3b   : > { %333 = vst [vmem:[%s2319_s12 + $0x78] sm:$0xff] %v332_v15 }
  0x3c   : > { %335 = vst [vmem:[%s2319_s12 + $0x80] sm:$0xff] %v334_v16 }
  0x3d   : > { %337 = vst [vmem:[%s2319_s12 + $0x88] sm:$0xff] %v336_v17 }
  0x3e   : > { %339 = vst [vmem:[%s2319_s12 + $0x90] sm:$0xff] %v338_v18 }
  0x3f   : > { %341 = vst [vmem:[%s2319_s12 + $0x98] sm:$0xff] %v340_v19 }
  0x40   : > { %343 = vst [vmem:[%s2319_s12 + $0xa0] sm:$0xff] %v342_v20 }
  0x41   : > { %345 = vst [vmem:[%s2319_s12 + $0xa8] sm:$0xff] %v344_v21 }
  0x42   : > { %347 = vst [vmem:[%s2319_s12 + $0xb0] sm:$0xff] %v346_v22 }
  0x43   : > { %349 = vst [vmem:[%s2319_s12 + $0xb8] sm:$0xff] %v348_v23 }
  0x44   : > { %351 = vst [vmem:[%s2319_s12 + $0xc0] sm:$0xff] %v350_v24 }
  0x45   : > { %353 = vst [vmem:[%s2319_s12 + $0xc8] sm:$0xff] %v352_v25 }
  0x46   : > { %355 = vst [vmem:[%s2319_s12 + $0xd0] sm:$0xff] %v354_v26 }
  0x47   : > { %357 = vst [vmem:[%s2319_s12 + $0xd8] sm:$0xff] %v356_v27 }
  0x48   : > { %359 = vst [vmem:[%s2319_s12 + $0xe0] sm:$0xff] %v358_v28 }
  0x49   : > { %361 = vst [vmem:[%s2319_s12 + $0xe8] sm:$0xff] %v360_v29 }
  0x4a   : > { %363 = vst [vmem:[%s2319_s12 + $0xf0] sm:$0xff] %v362_v30 }
  0x4b   : > { %365 = vst [vmem:[%s2319_s12 + $0xf8] sm:$0xff] %v364_v31 }
  0x4c PF: > { %p1673_p7 = scmp.ge.s32.totalorder %s2210_s30, 1  ;;  %p395_p8 = scmp.lt.s32.totalorder %s2210_s30, 5 }
  0x4e   : > { %p396_p9 = pnand %p1673_p7, %p395_p8 }
  0x4f   : > { %s402_s18 = sand.u32 (!%p396_p9), 1, %s2186_s26   ;;  %s448_s19 = sshra.s32 (!%p396_p9), %s2194_s28, 7 }
  0x50   : > { %399 = sbr.rel (%p396_p9) target bundleno = 790 (0x316), region = 66  ;;  %s1674_s20 = sshll.u32 (!%p396_p9), %s402_s18, 8 }
  0x51   : > { %s450_s21 = sadd.s32 (!%p396_p9), %s2198_s0, %s448_s19  ;;  %s453_s23 = sand.u32 (!%p396_p9), 127, %s2194_s28 }
  0x52   : > { %s1675_s22 = sshll.u32 (!%p396_p9), %s450_s21, 7  ;;  %s1678_s25 = sshll.u32 (!%p396_p9), %s2198_s0, 5 }
  0x53   : > { %s454_s8 = sadd.s32 (!%p396_p9), %s1675_s22, %s453_s23  ;;  %p471_p10 = scmp.lt.s32.totalorder (!%p396_p9), %s1678_s25, 63 }
  0x54   : > { %s455_s9 = sld [smem:[#allocation4 + %s454_s8]] (!%p396_p9)  ;;  %s2399_s18 = scalar_lea.vmem (!%p396_p9), [#allocation6], %s1674_s20 }
  0x55   : > { %s2917_s25 = smov (!%p471_p10, %s1678_s25), 63  ;;  %p1680_p12 = scmp.ne.s32.totalorder %s2194_s28, 0 }
  0x56   : > { %s1679_s10 = sshll.u32 %s2917_s25, 3 }
  0x57   : > { %s2392_s14 = scalar_lea.vmem %s2902_s5, %s1679_s10 }
  0x5a   : > { %s1676_s16 = sshll.u32 %s455_s9, 5 }
  0x5b   : > { %p457_p11 = scmp.lt.s32.totalorder %s1676_s16, 63  ;;  %479 = sbr.rel (%p1680_p12) target bundleno = 129 (0x81), region = 74 }
  0x5d   : > { %s2919_s16 = smov (!%p457_p11, %s1676_s16), 63 }
  0x5e   : > { %s1677_s26 = sshll.u32 %s2919_s16, 2 }
  0x5f   : > { %s2397_s12 = scalar_lea.vmem %s2900_s3, %s1677_s26 }
  0x60   : > { %v2214_v32 = vmov 0.0  }
  0x61   : > { %480 = vst [vmem:[#allocation2 + $0xb0] sm:$0xff] %v2214_v32 }
  0x62   : > { %481 = vst [vmem:[#allocation2] sm:$0xff] %v2214_v32 }
  0x63   : > { %482 = vst [vmem:[#allocation2 + $0xd8] sm:$0xff] %v2214_v32 }
  0x64   : > { %483 = vst [vmem:[#allocation2 + $0x18] sm:$0xff] %v2214_v32 }
  0x65   : > { %484 = vst [vmem:[#allocation2 + $0x50] sm:$0xff] %v2214_v32 }
  0x66   : > { %485 = vst [vmem:[#allocation2 + $0x68] sm:$0xff] %v2214_v32 }
  0x67   : > { %486 = vst [vmem:[#allocation2 + $0x30] sm:$0xff] %v2214_v32 }
  0x68   : > { %487 = vst [vmem:[#allocation2 + $0x48] sm:$0xff] %v2214_v32 }
  0x69   : > { %488 = vst [vmem:[#allocation2 + $0x80] sm:$0xff] %v2214_v32 }
  0x6a   : > { %489 = vst [vmem:[#allocation2 + $0x88] sm:$0xff] %v2214_v32 }
  0x6b   : > { %490 = vst [vmem:[#allocation2 + $0xe8] sm:$0xff] %v2214_v32 }
  0x6c   : > { %491 = vst [vmem:[#allocation2 + $0xb8] sm:$0xff] %v2214_v32 }
  0x6d   : > { %492 = vst [vmem:[#allocation2 + $0x60] sm:$0xff] %v2214_v32 }
  0x6e   : > { %493 = vst [vmem:[#allocation2 + $0xf0] sm:$0xff] %v2214_v32 }
  0x6f   : > { %494 = vst [vmem:[#allocation2 + $0x8] sm:$0xff] %v2214_v32 }
  0x70   : > { %495 = vst [vmem:[#allocation2 + $0x78] sm:$0xff] %v2214_v32 }
  0x71   : > { %496 = vst [vmem:[#allocation2 + $0x38] sm:$0xff] %v2214_v32 }
  0x72   : > { %497 = vst [vmem:[#allocation2 + $0x58] sm:$0xff] %v2214_v32 }
  0x73   : > { %498 = vst [vmem:[#allocation2 + $0x40] sm:$0xff] %v2214_v32 }
  0x74   : > { %499 = vst [vmem:[#allocation2 + $0xc8] sm:$0xff] %v2214_v32 }
  0x75   : > { %500 = vst [vmem:[#allocation2 + $0xe0] sm:$0xff] %v2214_v32 }
  0x76   : > { %501 = vst [vmem:[#allocation2 + $0x90] sm:$0xff] %v2214_v32 }
  0x77   : > { %502 = vst [vmem:[#allocation2 + $0x70] sm:$0xff] %v2214_v32 }
  0x78   : > { %503 = vst [vmem:[#allocation2 + $0xc0] sm:$0xff] %v2214_v32 }
  0x79   : > { %504 = vst [vmem:[#allocation2 + $0xa8] sm:$0xff] %v2214_v32 }
  0x7a   : > { %505 = vst [vmem:[#allocation2 + $0xd0] sm:$0xff] %v2214_v32 }
  0x7b   : > { %506 = vst [vmem:[#allocation2 + $0x10] sm:$0xff] %v2214_v32 }
  0x7c   : > { %507 = vst [vmem:[#allocation2 + $0x28] sm:$0xff] %v2214_v32 }
  0x7d   : > { %508 = vst [vmem:[#allocation2 + $0xa0] sm:$0xff] %v2214_v32 }
  0x7e   : > { %509 = vst [vmem:[#allocation2 + $0xf8] sm:$0xff] %v2214_v32 }
  0x7f   : > { %510 = vst [vmem:[#allocation2 + $0x20] sm:$0xff] %v2214_v32 }
  0x80   : > { %511 = vst [vmem:[#allocation2 + $0x98] sm:$0xff] %v2214_v32 }
  0x81 PF: > { %s512_s19 = sld [smem:[#allocation5 + %s2198_s0]] }
  0x87   : > { %p1681_p13 = scmp.ge.s32.totalorder %s2194_s28, %s512_s19 }
  0x89   : > { %516 = sbr.rel (%p1681_p13) target bundleno = 432 (0x1b0), region = 78 }
  0x8e   : > { %v1917_v33 = vld [vmem:[%s2397_s12 + $0x38] sm:$0xff]  ;;  %v1916_v35 = vld [vmem:[%s2397_s12 + $0x30] sm:$0xff]  ;;  %v1915_v37 = vld [vmem:[%s2397_s12 + $0x28] sm:$0xff] }
  0x8f   : > { %v1925_v34 = vld [vmem:[%s2397_s12 + $0x78] sm:$0xff]  ;;  %869 = vmatpush.bf16.msra.mxu0 %v1917_v33  ;;  %1926 = vmatpush.bf16.msra.mxu2 %v1917_v33  ;;  %v1924_v36 = vld [vmem:[%s2397_s12 + $0x70] sm:$0xff]  ;;  %v1923_v38 = vld [vmem:[%s2397_s12 + $0x68] sm:$0xff] }
  0x90   : > { %958 = vmatpush.bf16.msra.mxu1 %v1925_v34  ;;  %1934 = vmatpush.bf16.msra.mxu3 %v1925_v34  ;;  %v1914_v39 = vld [vmem:[%s2397_s12 + $0x20] sm:$0xff]  ;;  %v1913_v41 = vld [vmem:[%s2397_s12 + $0x18] sm:$0xff]  ;;  %v1912_v43 = vld [vmem:[%s2397_s12 + $0x10] sm:$0xff] }
  0x91   : > { %v1922_v40 = vld [vmem:[%s2397_s12 + $0x60] sm:$0xff]  ;;  %v1921_v42 = vld [vmem:[%s2397_s12 + $0x58] sm:$0xff]  ;;  %v1920_v44 = vld [vmem:[%s2397_s12 + $0x50] sm:$0xff] }
  0x92   : > { %v1911_v45 = vld [vmem:[%s2397_s12 + $0x8] sm:$0xff]  ;;  %v1910_v47 = vld [vmem:[%s2397_s12] sm:$0xff]  ;;  %v1692_v61 = vld [vmem:[%s2399_s18 + $0x10] sm:$0xf] }
  0x93   : > { %870 = vmatpush.bf16.msra.mxu0 %v1916_v35  ;;  %1927 = vmatpush.bf16.msra.mxu2 %v1916_v35  ;;  %v1919_v46 = vld [vmem:[%s2397_s12 + $0x48] sm:$0xff]  ;;  %v1918_v48 = vld [vmem:[%s2397_s12 + $0x40] sm:$0xff]  ;;  %v1881_v62 = vld [vmem:[%s2399_s18 + $0x14] sm:$0xf0] }
  0x94   : > { %959 = vmatpush.bf16.msra.mxu1 %v1924_v36  ;;  %1935 = vmatpush.bf16.msra.mxu3 %v1924_v36  ;;  %v1684_v49 = vld [vmem:[%s2399_s18] sm:$0xf]  ;;  %v1879_v50 = vld [vmem:[%s2399_s18 + $0x4] sm:$0xf0]  ;;  %v1878_v53 = vld [vmem:[%s2399_s18 + $0x4] sm:$0xf]  ;;  %v1693_v5 = vor.u32 %v1881_v62, %v1692_v61 }
  0x95   : > { %v1748_v51 = vld [vmem:[%s2399_s18 + $0x80] sm:$0xf]  ;;  %v1895_v52 = vld [vmem:[%s2399_s18 + $0x84] sm:$0xf0]  ;;  %v1686_v54 = vld [vmem:[%s2399_s18 + $0x8] sm:$0xf0]  ;;  %v1685_v57 = vor.u32 %v1879_v50, %v1684_v49 }
  0x96   : > { %v1894_v55 = vld [vmem:[%s2399_s18 + $0x84] sm:$0xf]  ;;  %v1750_v56 = vld [vmem:[%s2399_s18 + $0x88] sm:$0xf0]  ;;  %v1749_v58 = vor.u32 %v1895_v52, %v1748_v51  ;;  %v1689_v59 = vor.u32 %v1878_v53, %v1686_v54  ;;  %v1756_v63 = vld [vmem:[%s2399_s18 + $0x90] sm:$0xf] }
  0x97   : > { %871 = vmatpush.bf16.msra.mxu0 %v1915_v37  ;;  %1928 = vmatpush.bf16.msra.mxu2 %v1915_v37  ;;  %v1753_v60 = vor.u32 %v1894_v55, %v1750_v56  ;;  %v1897_v0 = vld [vmem:[%s2399_s18 + $0x94] sm:$0xf0]  ;;  %v1880_v1 = vld [vmem:[%s2399_s18 + $0x14] sm:$0xf]  ;;  %v1694_v2 = vld [vmem:[%s2399_s18 + $0x18] sm:$0xf0] }
  0x98   : > { %960 = vmatpush.bf16.msra.mxu1 %v1923_v38  ;;  %1936 = vmatpush.bf16.msra.mxu3 %v1923_v38  ;;  %v1896_v3 = vld [vmem:[%s2399_s18 + $0x94] sm:$0xf]  ;;  %v1758_v4 = vld [vmem:[%s2399_s18 + $0x98] sm:$0xf0]  ;;  %v1757_v6 = vor.u32 %v1897_v0, %v1756_v63  ;;  %v1697_v7 = vor.u32 %v1880_v1, %v1694_v2  ;;  %v1700_v9 = vld [vmem:[%s2399_s18 + $0x20] sm:$0xf] }
  0x99   : > { %v1761_v8 = vor.u32 %v1896_v3, %v1758_v4  ;;  %v1883_v10 = vld [vmem:[%s2399_s18 + $0x24] sm:$0xf0]  ;;  %v1764_v11 = vld [vmem:[%s2399_s18 + $0xa0] sm:$0xf]  ;;  %v1882_v13 = vld [vmem:[%s2399_s18 + $0x24] sm:$0xf] }
  0x9a   : > { %v1899_v12 = vld [vmem:[%s2399_s18 + $0xa4] sm:$0xf0]  ;;  %v1702_v14 = vld [vmem:[%s2399_s18 + $0x28] sm:$0xf0]  ;;  %v1898_v15 = vld [vmem:[%s2399_s18 + $0xa4] sm:$0xf]  ;;  %v1701_v17 = vor.u32 %v1883_v10, %v1700_v9 }
  0x9b   : > { %872 = vmatpush.bf16.msra.mxu0 %v1914_v39  ;;  %1929 = vmatpush.bf16.msra.mxu2 %v1914_v39  ;;  %v1766_v16 = vld [vmem:[%s2399_s18 + $0xa8] sm:$0xf0]  ;;  %v1765_v18 = vor.u32 %v1899_v12, %v1764_v11  ;;  %v1705_v19 = vor.u32 %v1882_v13, %v1702_v14  ;;  %v1708_v21 = vld [vmem:[%s2399_s18 + $0x30] sm:$0xf]  ;;  %v1885_v22 = vld [vmem:[%s2399_s18 + $0x34] sm:$0xf0] }
  0x9c   : > { %961 = vmatpush.bf16.msra.mxu1 %v1922_v40  ;;  %1937 = vmatpush.bf16.msra.mxu3 %v1922_v40  ;;  %v1769_v20 = vor.u32 %v1898_v15, %v1766_v16  ;;  %v1772_v23 = vld [vmem:[%s2399_s18 + $0xb0] sm:$0xf]  ;;  %v1901_v24 = vld [vmem:[%s2399_s18 + $0xb4] sm:$0xf0]  ;;  %v1884_v25 = vld [vmem:[%s2399_s18 + $0x34] sm:$0xf]  ;;  %v1709_v29 = vor.u32 %v1885_v22, %v1708_v21 }
  0x9d   : > { %v1710_v26 = vld [vmem:[%s2399_s18 + $0x38] sm:$0xf0]  ;;  %v1900_v27 = vld [vmem:[%s2399_s18 + $0xb4] sm:$0xf]  ;;  %v1773_v30 = vor.u32 %v1901_v24, %v1772_v23  ;;  %v1716_v33 = vld [vmem:[%s2399_s18 + $0x40] sm:$0xf] }
  0x9e   : > { %v1774_v28 = vld [vmem:[%s2399_s18 + $0xb8] sm:$0xf0]  ;;  %v1713_v31 = vor.u32 %v1884_v25, %v1710_v26  ;;  %v1887_v34 = vld [vmem:[%s2399_s18 + $0x44] sm:$0xf0]  ;;  %v1780_v35 = vld [vmem:[%s2399_s18 + $0xc0] sm:$0xf] }
  0x9f   : > { %873 = vmatpush.bf16.msra.mxu0 %v1913_v41  ;;  %1930 = vmatpush.bf16.msra.mxu2 %v1913_v41  ;;  %v1777_v32 = vor.u32 %v1900_v27, %v1774_v28  ;;  %v1903_v36 = vld [vmem:[%s2399_s18 + $0xc4] sm:$0xf0]  ;;  %v1886_v37 = vld [vmem:[%s2399_s18 + $0x44] sm:$0xf]  ;;  %v1718_v38 = vld [vmem:[%s2399_s18 + $0x48] sm:$0xf0]  ;;  %v1717_v41 = vor.u32 %v1887_v34, %v1716_v33 }
  0xa0   : > { %962 = vmatpush.bf16.msra.mxu1 %v1921_v42  ;;  %1938 = vmatpush.bf16.msra.mxu3 %v1921_v42  ;;  %v1902_v39 = vld [vmem:[%s2399_s18 + $0xc4] sm:$0xf]  ;;  %v1782_v40 = vld [vmem:[%s2399_s18 + $0xc8] sm:$0xf0]  ;;  %v1781_v42 = vor.u32 %v1903_v36, %v1780_v35  ;;  %v1888_v49 = vld [vmem:[%s2399_s18 + $0x54] sm:$0xf] }
  0xa1   : > { %v1726_v50 = vld [vmem:[%s2399_s18 + $0x58] sm:$0xf0]  ;;  %v1904_v51 = vld [vmem:[%s2399_s18 + $0xd4] sm:$0xf]  ;;  %v1890_v61 = vld [vmem:[%s2399_s18 + $0x64] sm:$0xf] }
  0xa2   : > { %v1790_v52 = vld [vmem:[%s2399_s18 + $0xd8] sm:$0xf0]  ;;  %v1729_v55 = vor.u32 %v1888_v49, %v1726_v50  ;;  %v1734_v62 = vld [vmem:[%s2399_s18 + $0x68] sm:$0xf0]  ;;  %v1906_v63 = vld [vmem:[%s2399_s18 + $0xe4] sm:$0xf] }
  0xa3   : > { %874 = vmatpush.bf16.msra.mxu0 %v1912_v43  ;;  %1931 = vmatpush.bf16.msra.mxu2 %v1912_v43  ;;  %v1721_v43 = vor.u32 %v1886_v37, %v1718_v38  ;;  %v1793_v56 = vor.u32 %v1904_v51, %v1790_v52  ;;  %v1798_v0 = vld [vmem:[%s2399_s18 + $0xe8] sm:$0xf0]  ;;  %v1737_v3 = vor.u32 %v1890_v61, %v1734_v62  ;;  %v1892_v9 = vld [vmem:[%s2399_s18 + $0x74] sm:$0xf]  ;;  %v1742_v10 = vld [vmem:[%s2399_s18 + $0x78] sm:$0xf0] }
  0xa4   : > { %963 = vmatpush.bf16.msra.mxu1 %v1920_v44  ;;  %1939 = vmatpush.bf16.msra.mxu3 %v1920_v44  ;;  %v1785_v44 = vor.u32 %v1902_v39, %v1782_v40  ;;  %v1801_v4 = vor.u32 %v1906_v63, %v1798_v0  ;;  %v1908_v11 = vld [vmem:[%s2399_s18 + $0xf4] sm:$0xf]  ;;  %v1806_v12 = vld [vmem:[%s2399_s18 + $0xf8] sm:$0xf0]  ;;  %v1745_v15 = vor.u32 %v1892_v9, %v1742_v10  ;;  %v518_v27 = vld [vmem:[#allocation2] sm:$0xff] }
  0xa5   : > { %v1809_v16 = vor.u32 %v1908_v11, %v1806_v12  ;;  %v533_v23 = vld [vmem:[#allocation2 + $0x38] sm:$0xff]  ;;  %v537_v63 = vld [vmem:[#allocation2 + $0xe0] sm:$0xff]  ;;  %v538_v9 = vld [vmem:[#allocation2 + $0x90] sm:$0xff] }
  0xa6   : > { %v534_v33 = vld [vmem:[#allocation2 + $0x58] sm:$0xff] }
  0xa7   : > { %875 = vmatpush.bf16.msra.mxu0 %v1911_v45  ;;  %1932 = vmatpush.bf16.msra.mxu2 %v1911_v45  ;;  %v1724_v45 = vld [vmem:[%s2399_s18 + $0x50] sm:$0xf]  ;;  %v519_v37 = vld [vmem:[#allocation2 + $0xd8] sm:$0xff] }
  0xa8   : > { %964 = vmatpush.bf16.msra.mxu1 %v1919_v46  ;;  %1940 = vmatpush.bf16.msra.mxu3 %v1919_v46  ;;  %v1889_v46 = vld [vmem:[%s2399_s18 + $0x54] sm:$0xf0] }
  0xa9   : > { %v1725_v53 = vor.u32 %v1889_v46, %v1724_v45 }
  0xab   : > { %876 = vmatpush.bf16.msra.mxu0 %v1910_v47  ;;  %1933 = vmatpush.bf16.msra.mxu2 %v1910_v47  ;;  %v1788_v47 = vld [vmem:[%s2399_s18 + $0xd0] sm:$0xf] }
  0xac   : > { %965 = vmatpush.bf16.msra.mxu1 %v1918_v48  ;;  %1941 = vmatpush.bf16.msra.mxu3 %v1918_v48  ;;  %v1905_v48 = vld [vmem:[%s2399_s18 + $0xd4] sm:$0xf0] }
  0xad   : > { %v1789_v54 = vor.u32 %v1905_v48, %v1788_v47  ;;  %v520_v47 = vld [vmem:[#allocation2 + $0x18] sm:$0xff] }
  0xae   : > { %877 = vmatmul.bf16.vlgmr.msra.gmra.mxu0 %v1685_v57  ;;  %917 = vmatmul.bf16.vlgmr.msra.gmra.mxu2 %v1749_v58  ;;  %v1732_v57 = vld [vmem:[%s2399_s18 + $0x60] sm:$0xf]  ;;  %v1891_v58 = vld [vmem:[%s2399_s18 + $0x64] sm:$0xf0] }
  0xaf   : > { %966 = vmatmul.bf16.vlgmr.msra.gmra.mxu1 %v1689_v59  ;;  %1006 = vmatmul.bf16.vlgmr.msra.gmra.mxu3 %v1753_v60  ;;  %v1796_v59 = vld [vmem:[%s2399_s18 + $0xe0] sm:$0xf]  ;;  %v1907_v60 = vld [vmem:[%s2399_s18 + $0xe4] sm:$0xf0]  ;;  %v1733_v1 = vor.u32 %v1891_v58, %v1732_v57  ;;  %v521_v57 = vld [vmem:[#allocation2 + $0x50] sm:$0xff] }
  0xb0   : > { %v1797_v2 = vor.u32 %v1907_v60, %v1796_v59 }
  0xbe   : > { %882 = vmatmul.bf16.gmra.mxu0 %v1693_v5  ;;  %922 = vmatmul.bf16.gmra.mxu2 %v1757_v6  ;;  %v1740_v5 = vld [vmem:[%s2399_s18 + $0x70] sm:$0xf]  ;;  %v1893_v6 = vld [vmem:[%s2399_s18 + $0x74] sm:$0xf0] }
  0xbf   : > { %971 = vmatmul.bf16.gmra.mxu1 %v1697_v7  ;;  %1011 = vmatmul.bf16.gmra.mxu3 %v1761_v8  ;;  %v1804_v7 = vld [vmem:[%s2399_s18 + $0xf0] sm:$0xf]  ;;  %v1909_v8 = vld [vmem:[%s2399_s18 + $0xf4] sm:$0xf0]  ;;  %v1741_v13 = vor.u32 %v1893_v6, %v1740_v5 }
  0xc0   : > { %v1805_v14 = vor.u32 %v1909_v8, %v1804_v7 }
  0xce   : > { %887 = vmatmul.bf16.gmra.mxu0 %v1701_v17  ;;  %927 = vmatmul.bf16.gmra.mxu2 %v1765_v18  ;;  %v517_v18 = vld [vmem:[#allocation2 + $0xb0] sm:$0xff] }
  0xcf   : > { %976 = vmatmul.bf16.gmra.mxu1 %v1705_v19  ;;  %1016 = vmatmul.bf16.gmra.mxu3 %v1769_v20 }
  0xde   : > { %892 = vmatmul.bf16.gmra.mxu0 %v1709_v29  ;;  %932 = vmatmul.bf16.gmra.mxu2 %v1773_v30 }
  0xdf   : > { %981 = vmatmul.bf16.gmra.mxu1 %v1713_v31  ;;  %1021 = vmatmul.bf16.gmra.mxu3 %v1777_v32 }
  0xee   : > { %897 = vmatmul.bf16.gmra.mxu0 %v1717_v41  ;;  %937 = vmatmul.bf16.gmra.mxu2 %v1781_v42 }
  0xef   : > { %986 = vmatmul.bf16.gmra.mxu1 %v1721_v43  ;;  %1026 = vmatmul.bf16.gmra.mxu3 %v1785_v44  ;;  %v535_v43 = vld [vmem:[#allocation2 + $0x40] sm:$0xff] }
  0xfe   : > { %902 = vmatmul.bf16.gmra.mxu0 %v1725_v53  ;;  %942 = vmatmul.bf16.gmra.mxu2 %v1789_v54  ;;  %v536_v53 = vld [vmem:[#allocation2 + $0xc8] sm:$0xff] }
  0xff   : > { %991 = vmatmul.bf16.gmra.mxu1 %v1729_v55  ;;  %1031 = vmatmul.bf16.gmra.mxu3 %v1793_v56 }
 0x10e   : > { %907 = vmatmul.bf16.gmra.mxu0 %v1733_v1  ;;  %947 = vmatmul.bf16.gmra.mxu2 %v1797_v2 }
 0x10f   : > { %996 = vmatmul.bf16.gmra.mxu1 %v1737_v3  ;;  %1036 = vmatmul.bf16.gmra.mxu3 %v1801_v4  ;;  %v522_v3 = vld [vmem:[#allocation2 + $0x68] sm:$0xff] }
 0x11e   : > { %912 = vmatmul.bf16.gmra.mxu0 %v1741_v13  ;;  %952 = vmatmul.bf16.gmra.mxu2 %v1805_v14  ;;  %v523_v13 = vld [vmem:[#allocation2 + $0x30] sm:$0xff] }
 0x11f   : > { %1001 = vmatmul.bf16.gmra.mxu1 %v1745_v15  ;;  %1041 = vmatmul.bf16.gmra.mxu3 %v1809_v16 }
 0x12b   : > { %v878_v17 = vpop.f32.mrf.mxu0 }
 0x12c   : > { %v967_v19 = vpop.f32.mrf.mxu1 }
 0x12d   : > { %v968_v20 = vadd.f32 %v967_v19, %v878_v17  ;;  %v539_v19 = vld [vmem:[#allocation2 + $0x70] sm:$0xff] }
 0x12f   : > { %v1047_v21 = vadd.f32 %v968_v20, %v517_v18 }
 0x131   : > { %1079 = vst [vmem:[#allocation2 + $0xb0] sm:$0xff] %v1047_v21  ;;  %v918_v22 = vpop.f32.mrf.mxu2 }
 0x132   : > { %v1007_v24 = vpop.f32.mrf.mxu3 }
 0x133   : > { %v1008_v25 = vadd.f32 %v1007_v24, %v918_v22  ;;  %v880_v26 = vpop.f32.mrf.mxu0 }
 0x134   : > { %v969_v28 = vpop.f32.mrf.mxu1 }
 0x135   : > { %v1063_v29 = vadd.f32 %v1008_v25, %v533_v23  ;;  %v970_v30 = vadd.f32 %v969_v28, %v880_v26  ;;  %v524_v23 = vld [vmem:[#allocation2 + $0x48] sm:$0xff] }
 0x137   : > { %1095 = vst [vmem:[#allocation2 + $0x38] sm:$0xff] %v1063_v29  ;;  %v1048_v31 = vadd.f32 %v970_v30, %v518_v27  ;;  %v540_v29 = vld [vmem:[#allocation2 + $0xc0] sm:$0xff] }
 0x139   : > { %1080 = vst [vmem:[#allocation2] sm:$0xff] %v1048_v31  ;;  %v920_v32 = vpop.f32.mrf.mxu2 }
 0x13a   : > { %v1009_v34 = vpop.f32.mrf.mxu3 }
 0x13b   : > { %v1010_v35 = vadd.f32 %v1009_v34, %v920_v32  ;;  %v883_v36 = vpop.f32.mrf.mxu0 }
 0x13c   : > { %v972_v38 = vpop.f32.mrf.mxu1 }
 0x13d   : > { %v1064_v39 = vadd.f32 %v1010_v35, %v534_v33  ;;  %v973_v40 = vadd.f32 %v972_v38, %v883_v36  ;;  %v525_v33 = vld [vmem:[#allocation2 + $0x80] sm:$0xff] }
 0x13f   : > { %1096 = vst [vmem:[#allocation2 + $0x58] sm:$0xff] %v1064_v39  ;;  %v1049_v41 = vadd.f32 %v973_v40, %v519_v37  ;;  %v541_v39 = vld [vmem:[#allocation2 + $0xa8] sm:$0xff] }
 0x141   : > { %1081 = vst [vmem:[#allocation2 + $0xd8] sm:$0xff] %v1049_v41  ;;  %v923_v42 = vpop.f32.mrf.mxu2 }
 0x142   : > { %v1012_v44 = vpop.f32.mrf.mxu3 }
 0x143   : > { %v1013_v45 = vadd.f32 %v1012_v44, %v923_v42  ;;  %v885_v46 = vpop.f32.mrf.mxu0 }
 0x144   : > { %v974_v48 = vpop.f32.mrf.mxu1 }
 0x145   : > { %v1065_v49 = vadd.f32 %v1013_v45, %v535_v43  ;;  %v975_v50 = vadd.f32 %v974_v48, %v885_v46  ;;  %v526_v43 = vld [vmem:[#allocation2 + $0x88] sm:$0xff] }
 0x147   : > { %1097 = vst [vmem:[#allocation2 + $0x40] sm:$0xff] %v1065_v49  ;;  %v1050_v51 = vadd.f32 %v975_v50, %v520_v47  ;;  %v542_v49 = vld [vmem:[#allocation2 + $0xd0] sm:$0xff] }
 0x149   : > { %1082 = vst [vmem:[#allocation2 + $0x18] sm:$0xff] %v1050_v51  ;;  %v925_v52 = vpop.f32.mrf.mxu2 }
 0x14a   : > { %v1014_v54 = vpop.f32.mrf.mxu3 }
 0x14b   : > { %v1015_v55 = vadd.f32 %v1014_v54, %v925_v52  ;;  %v888_v56 = vpop.f32.mrf.mxu0 }
 0x14c   : > { %v977_v58 = vpop.f32.mrf.mxu1 }
 0x14d   : > { %v1066_v59 = vadd.f32 %v1015_v55, %v536_v53  ;;  %v978_v60 = vadd.f32 %v977_v58, %v888_v56  ;;  %v527_v53 = vld [vmem:[#allocation2 + $0xe8] sm:$0xff] }
 0x14f   : > { %1098 = vst [vmem:[#allocation2 + $0xc8] sm:$0xff] %v1066_v59  ;;  %v1051_v61 = vadd.f32 %v978_v60, %v521_v57  ;;  %v543_v59 = vld [vmem:[#allocation2 + $0x10] sm:$0xff] }
 0x151   : > { %1083 = vst [vmem:[#allocation2 + $0x50] sm:$0xff] %v1051_v61  ;;  %v928_v62 = vpop.f32.mrf.mxu2 }
 0x152   : > { %v1017_v0 = vpop.f32.mrf.mxu3 }
 0x153   : > { %v1018_v1 = vadd.f32 %v1017_v0, %v928_v62  ;;  %v890_v2 = vpop.f32.mrf.mxu0 }
 0x154   : > { %v979_v4 = vpop.f32.mrf.mxu1 }
 0x155   : > { %v1067_v5 = vadd.f32 %v1018_v1, %v537_v63  ;;  %v980_v6 = vadd.f32 %v979_v4, %v890_v2  ;;  %v528_v63 = vld [vmem:[#allocation2 + $0xb8] sm:$0xff] }
 0x157   : > { %1099 = vst [vmem:[#allocation2 + $0xe0] sm:$0xff] %v1067_v5  ;;  %v1052_v7 = vadd.f32 %v980_v6, %v522_v3  ;;  %v544_v5 = vld [vmem:[#allocation2 + $0x28] sm:$0xff] }
 0x159   : > { %1084 = vst [vmem:[#allocation2 + $0x68] sm:$0xff] %v1052_v7  ;;  %v930_v8 = vpop.f32.mrf.mxu2 }
 0x15a   : > { %v1019_v10 = vpop.f32.mrf.mxu3 }
 0x15b   : > { %v1020_v11 = vadd.f32 %v1019_v10, %v930_v8  ;;  %v893_v12 = vpop.f32.mrf.mxu0 }
 0x15c   : > { %v982_v14 = vpop.f32.mrf.mxu1 }
 0x15d   : > { %v1068_v15 = vadd.f32 %v1020_v11, %v538_v9  ;;  %v983_v16 = vadd.f32 %v982_v14, %v893_v12  ;;  %v529_v9 = vld [vmem:[#allocation2 + $0x60] sm:$0xff] }
 0x15f   : > { %1100 = vst [vmem:[#allocation2 + $0x90] sm:$0xff] %v1068_v15  ;;  %v1053_v17 = vadd.f32 %v983_v16, %v523_v13  ;;  %v545_v15 = vld [vmem:[#allocation2 + $0xa0] sm:$0xff] }
 0x161   : > { %1085 = vst [vmem:[#allocation2 + $0x30] sm:$0xff] %v1053_v17  ;;  %v933_v18 = vpop.f32.mrf.mxu2 }
 0x162   : > { %v1022_v20 = vpop.f32.mrf.mxu3 }
 0x163   : > { %v1023_v21 = vadd.f32 %v1022_v20, %v933_v18  ;;  %v895_v22 = vpop.f32.mrf.mxu0 }
 0x164   : > { %v984_v24 = vpop.f32.mrf.mxu1 }
 0x165   : > { %v1069_v25 = vadd.f32 %v1023_v21, %v539_v19  ;;  %v985_v26 = vadd.f32 %v984_v24, %v895_v22  ;;  %v530_v19 = vld [vmem:[#allocation2 + $0xf0] sm:$0xff] }
 0x167   : > { %1101 = vst [vmem:[#allocation2 + $0x70] sm:$0xff] %v1069_v25  ;;  %v1054_v27 = vadd.f32 %v985_v26, %v524_v23  ;;  %v546_v25 = vld [vmem:[#allocation2 + $0xf8] sm:$0xff] }
 0x169   : > { %1086 = vst [vmem:[#allocation2 + $0x48] sm:$0xff] %v1054_v27  ;;  %v935_v28 = vpop.f32.mrf.mxu2 }
 0x16a   : > { %v1024_v30 = vpop.f32.mrf.mxu3 }
 0x16b   : > { %v1025_v31 = vadd.f32 %v1024_v30, %v935_v28  ;;  %v898_v32 = vpop.f32.mrf.mxu0 }
 0x16c   : > { %v987_v34 = vpop.f32.mrf.mxu1 }
 0x16d   : > { %v1070_v35 = vadd.f32 %v1025_v31, %v540_v29  ;;  %v988_v36 = vadd.f32 %v987_v34, %v898_v32  ;;  %v531_v29 = vld [vmem:[#allocation2 + $0x8] sm:$0xff] }
 0x16f   : > { %1102 = vst [vmem:[#allocation2 + $0xc0] sm:$0xff] %v1070_v35  ;;  %v1055_v37 = vadd.f32 %v988_v36, %v525_v33  ;;  %v547_v35 = vld [vmem:[#allocation2 + $0x20] sm:$0xff] }
 0x171   : > { %1087 = vst [vmem:[#allocation2 + $0x80] sm:$0xff] %v1055_v37  ;;  %v938_v38 = vpop.f32.mrf.mxu2 }
 0x172   : > { %v1027_v40 = vpop.f32.mrf.mxu3 }
 0x173   : > { %v1028_v41 = vadd.f32 %v1027_v40, %v938_v38  ;;  %v900_v42 = vpop.f32.mrf.mxu0 }
 0x174   : > { %v989_v44 = vpop.f32.mrf.mxu1 }
 0x175   : > { %v1071_v45 = vadd.f32 %v1028_v41, %v541_v39  ;;  %v990_v46 = vadd.f32 %v989_v44, %v900_v42  ;;  %v532_v39 = vld [vmem:[#allocation2 + $0x78] sm:$0xff] }
 0x177   : > { %1103 = vst [vmem:[#allocation2 + $0xa8] sm:$0xff] %v1071_v45  ;;  %v1056_v47 = vadd.f32 %v990_v46, %v526_v43  ;;  %v548_v45 = vld [vmem:[#allocation2 + $0x98] sm:$0xff] }
 0x179   : > { %1088 = vst [vmem:[#allocation2 + $0x88] sm:$0xff] %v1056_v47  ;;  %v940_v48 = vpop.f32.mrf.mxu2 }
 0x17a   : > { %v1029_v50 = vpop.f32.mrf.mxu3 }
 0x17b   : > { %v1030_v51 = vadd.f32 %v1029_v50, %v940_v48  ;;  %v903_v52 = vpop.f32.mrf.mxu0 }
 0x17c   : > { %v992_v54 = vpop.f32.mrf.mxu1 }
 0x17d   : > { %v1072_v55 = vadd.f32 %v1030_v51, %v542_v49  ;;  %v993_v56 = vadd.f32 %v992_v54, %v903_v52 }
 0x17f   : > { %1104 = vst [vmem:[#allocation2 + $0xd0] sm:$0xff] %v1072_v55  ;;  %v1057_v57 = vadd.f32 %v993_v56, %v527_v53 }
 0x181   : > { %1089 = vst [vmem:[#allocation2 + $0xe8] sm:$0xff] %v1057_v57  ;;  %v943_v58 = vpop.f32.mrf.mxu2 }
 0x182   : > { %v1032_v60 = vpop.f32.mrf.mxu3 }
 0x183   : > { %v1033_v61 = vadd.f32 %v1032_v60, %v943_v58  ;;  %v905_v62 = vpop.f32.mrf.mxu0 }
 0x184   : > { %v994_v0 = vpop.f32.mrf.mxu1 }
 0x185   : > { %v1073_v1 = vadd.f32 %v1033_v61, %v543_v59  ;;  %v995_v2 = vadd.f32 %v994_v0, %v905_v62 }
 0x187   : > { %1105 = vst [vmem:[#allocation2 + $0x10] sm:$0xff] %v1073_v1  ;;  %v1058_v3 = vadd.f32 %v995_v2, %v528_v63 }
 0x189   : > { %1090 = vst [vmem:[#allocation2 + $0xb8] sm:$0xff] %v1058_v3  ;;  %v945_v4 = vpop.f32.mrf.mxu2 }
 0x18a   : > { %v1034_v6 = vpop.f32.mrf.mxu3 }
 0x18b   : > { %v1035_v7 = vadd.f32 %v1034_v6, %v945_v4  ;;  %v908_v8 = vpop.f32.mrf.mxu0 }
 0x18c   : > { %v997_v10 = vpop.f32.mrf.mxu1 }
 0x18d   : > { %v1074_v11 = vadd.f32 %v1035_v7, %v544_v5  ;;  %v998_v12 = vadd.f32 %v997_v10, %v908_v8 }
 0x18f   : > { %1106 = vst [vmem:[#allocation2 + $0x28] sm:$0xff] %v1074_v11  ;;  %v1059_v13 = vadd.f32 %v998_v12, %v529_v9 }
 0x191   : > { %1091 = vst [vmem:[#allocation2 + $0x60] sm:$0xff] %v1059_v13  ;;  %v948_v14 = vpop.f32.mrf.mxu2 }
 0x192   : > { %v1037_v16 = vpop.f32.mrf.mxu3 }
 0x193   : > { %v1038_v17 = vadd.f32 %v1037_v16, %v948_v14  ;;  %v910_v18 = vpop.f32.mrf.mxu0 }
 0x194   : > { %v999_v20 = vpop.f32.mrf.mxu1 }
 0x195   : > { %v1075_v21 = vadd.f32 %v1038_v17, %v545_v15  ;;  %v1000_v22 = vadd.f32 %v999_v20, %v910_v18 }
 0x197   : > { %1107 = vst [vmem:[#allocation2 + $0xa0] sm:$0xff] %v1075_v21  ;;  %v1060_v23 = vadd.f32 %v1000_v22, %v530_v19 }
 0x199   : > { %1092 = vst [vmem:[#allocation2 + $0xf0] sm:$0xff] %v1060_v23  ;;  %v950_v24 = vpop.f32.mrf.mxu2 }
 0x19a   : > { %v1039_v26 = vpop.f32.mrf.mxu3 }
 0x19b   : > { %v1040_v27 = vadd.f32 %v1039_v26, %v950_v24  ;;  %v913_v28 = vpop.f32.mrf.mxu0 }
 0x19c   : > { %v1002_v30 = vpop.f32.mrf.mxu1 }
 0x19d   : > { %v1076_v31 = vadd.f32 %v1040_v27, %v546_v25  ;;  %v1003_v32 = vadd.f32 %v1002_v30, %v913_v28 }
 0x19f   : > { %1108 = vst [vmem:[#allocation2 + $0xf8] sm:$0xff] %v1076_v31  ;;  %v1061_v33 = vadd.f32 %v1003_v32, %v531_v29 }
 0x1a1   : > { %1093 = vst [vmem:[#allocation2 + $0x8] sm:$0xff] %v1061_v33  ;;  %v953_v34 = vpop.f32.mrf.mxu2 }
 0x1a2   : > { %v1042_v36 = vpop.f32.mrf.mxu3 }
 0x1a3   : > { %v1043_v37 = vadd.f32 %v1042_v36, %v953_v34  ;;  %v915_v38 = vpop.f32.mrf.mxu0 }
 0x1a4   : > { %v1004_v40 = vpop.f32.mrf.mxu1 }
 0x1a5   : > { %v1077_v41 = vadd.f32 %v1043_v37, %v547_v35  ;;  %v1005_v42 = vadd.f32 %v1004_v40, %v915_v38 }
 0x1a7   : > { %1109 = vst [vmem:[#allocation2 + $0x20] sm:$0xff] %v1077_v41  ;;  %v1062_v43 = vadd.f32 %v1005_v42, %v532_v39 }
 0x1a9   : > { %1094 = vst [vmem:[#allocation2 + $0x78] sm:$0xff] %v1062_v43  ;;  %v955_v44 = vpop.f32.mrf.mxu2 }
 0x1aa   : > { %v1044_v46 = vpop.f32.mrf.mxu3 }
 0x1ab   : > { %v1045_v47 = vadd.f32 %v1044_v46, %v955_v44 }
 0x1ad   : > { %v1078_v48 = vadd.f32 %v1045_v47, %v548_v45 }
 0x1af   : > { %1110 = vst [vmem:[#allocation2 + $0x98] sm:$0xff] %v1078_v48 }
 0x1b0 PF: > { %p1874_p0 = scmp.ne.s32.totalorder %s2194_s28, 1 }
 0x1b2   : > { %1114 = sbr.rel (%p1874_p0) target bundleno = 790 (0x316), region = 82 }
 0x1b7   : > { %v1119_v49 = vld [vmem:[#allocation2 + $0x50] sm:$0xff]  ;;  %v2488_v50 = vld [vmem:[%s2901_s4] ss:$0 sm:$0xff]  ;;  %v1183_v51 = vlaneseq  ;;  %v1117_v52 = vld [vmem:[#allocation2 + $0xd8] sm:$0xff] }
 0x1b8   : > { %v1115_v53 = vld [vmem:[#allocation2 + $0xb0] sm:$0xff]  ;;  %v1155_v54 = vadd.f32 %v2488_v50, %v1119_v49  ;;  %v1153_v56 = vadd.f32 %v2488_v50, %v1117_v52  ;;  %v1120_v58 = vld [vmem:[#allocation2 + $0x68] sm:$0xff]  ;;  %v1118_v59 = vld [vmem:[#allocation2 + $0x18] sm:$0xff] }
 0x1b9   : > { %v2491_v55 = vand.u32 127, %v1183_v51  ;;  %v1151_v57 = vadd.f32 %v2488_v50, %v1115_v53  ;;  %v1116_v60 = vld [vmem:[#allocation2] sm:$0xff]  ;;  %v1156_v0 = vadd.f32 %v2488_v50, %v1120_v58  ;;  %v1154_v1 = vadd.f32 %v2488_v50, %v1118_v59  ;;  %v1122_v7 = vld [vmem:[#allocation2 + $0x48] sm:$0xff]  ;;  %v1121_v8 = vld [vmem:[#allocation2 + $0x30] sm:$0xff] }
 0x1ba   : > { %v1152_v2 = vadd.f32 %v2488_v50, %v1116_v60  ;;  %v1123_v6 = vld [vmem:[#allocation2 + $0x80] sm:$0xff]  ;;  %v1158_v10 = vadd.f32 %v2488_v50, %v1122_v7  ;;  %v1157_v11 = vadd.f32 %v2488_v50, %v1121_v8  ;;  %v1126_v15 = vld [vmem:[#allocation2 + $0xb8] sm:$0xff]  ;;  %v1125_v16 = vld [vmem:[#allocation2 + $0xe8] sm:$0xff] }
 0x1bb   : > { %vm1185_vm0 = vcmp.lt.s32.totalorder %v2491_v55, 8  ;;  %v1159_v9 = vadd.f32 %v2488_v50, %v1123_v6  ;;  %v1124_v17 = vld [vmem:[#allocation2 + $0x88] sm:$0xff]  ;;  %v1162_v18 = vadd.f32 %v2488_v50, %v1126_v15  ;;  %v1161_v19 = vadd.f32 %v2488_v50, %v1125_v16  ;;  %v1128_v25 = vld [vmem:[#allocation2 + $0xf0] sm:$0xff]  ;;  %v1127_v26 = vld [vmem:[#allocation2 + $0x60] sm:$0xff] }
 0x1bc   : > { %v2498_v61 = vsel %vm1185_vm0, %v1155_v54, -1e+30  ;;  %v2502_v62 = vsel %vm1185_vm0, %v1153_v56, -1e+30  ;;  %v2506_v63 = vsel %vm1185_vm0, %v1151_v57, -1e+30  ;;  %v1160_v20 = vadd.f32 %v2488_v50, %v1124_v17 }
 0x1bd   : > { %1226 = vmax.xlane.f32.xlu2 %v2498_v61  ;;  %1222 = vmax.xlane.f32.xlu1 %v2502_v62  ;;  %v2516_v3 = vsel %vm1185_vm0, %v1156_v0, -1e+30  ;;  %v2520_v4 = vsel %vm1185_vm0, %v1154_v1, -1e+30  ;;  %v2524_v5 = vsel %vm1185_vm0, %v1152_v2, -1e+30  ;;  %v1164_v28 = vadd.f32 %v2488_v50, %v1128_v25 }
 0x1be   : > { %1218 = vmax.xlane.f32.xlu0 %v2506_v63  ;;  %v2534_v12 = vsel %vm1185_vm0, %v1159_v9, -1e+30  ;;  %v2538_v13 = vsel %vm1185_vm0, %v1158_v10, -1e+30  ;;  %v2542_v14 = vsel %vm1185_vm0, %v1157_v11, -1e+30  ;;  %v1163_v30 = vadd.f32 %v2488_v50, %v1127_v26 }
 0x1bf   : > { %v2552_v21 = vsel %vm1185_vm0, %v1162_v18, -1e+30  ;;  %v2556_v22 = vsel %vm1185_vm0, %v1161_v19, -1e+30  ;;  %v2560_v23 = vsel %vm1185_vm0, %v1160_v20, -1e+30 }
 0x1c0   : > { %v1129_v24 = vld [vmem:[#allocation2 + $0x8] sm:$0xff]  ;;  %v1141_v29 = vld [vmem:[#allocation2 + $0x10] sm:$0xff]  ;;  %v2579_v34 = vsel %vm1185_vm0, %v1164_v28, -1e+30  ;;  %v2583_v36 = vsel %vm1185_vm0, %v1163_v30, -1e+30 }
 0x1c1   : > { %v1165_v27 = vadd.f32 %v2488_v50, %v1129_v24  ;;  %v1177_v31 = vadd.f32 %v2488_v50, %v1141_v29  ;;  %v1139_v35 = vld [vmem:[#allocation2 + $0xa8] sm:$0xff]  ;;  %v1132_v37 = vld [vmem:[#allocation2 + $0x58] sm:$0xff]  ;;  %v1140_v51 = vld [vmem:[#allocation2 + $0xd0] sm:$0xff] }
 0x1c2   : > { %v1131_v38 = vld [vmem:[#allocation2 + $0x38] sm:$0xff]  ;;  %v1175_v39 = vadd.f32 %v2488_v50, %v1139_v35  ;;  %v1168_v42 = vadd.f32 %v2488_v50, %v1132_v37  ;;  %v1142_v52 = vld [vmem:[#allocation2 + $0x28] sm:$0xff]  ;;  %v1135_v54 = vld [vmem:[#allocation2 + $0xe0] sm:$0xff]  ;;  %v1176_v57 = vadd.f32 %v2488_v50, %v1140_v51 }
 0x1c3   : > { %v2571_v32 = vsel %vm1185_vm0, %v1177_v31, -1e+30  ;;  %v2575_v33 = vsel %vm1185_vm0, %v1165_v27, -1e+30  ;;  %v1130_v40 = vld [vmem:[#allocation2 + $0x78] sm:$0xff]  ;;  %v1167_v43 = vadd.f32 %v2488_v50, %v1131_v38  ;;  %v1134_v56 = vld [vmem:[#allocation2 + $0xc8] sm:$0xff]  ;;  %v1178_v58 = vadd.f32 %v2488_v50, %v1142_v52 }
 0x1c4   : > { %v2590_v41 = vsel %vm1185_vm0, %v1175_v39, -1e+30  ;;  %v1144_v44 = vld [vmem:[#allocation2 + $0xf8] sm:$0xff]  ;;  %v1166_v45 = vadd.f32 %v2488_v50, %v1130_v40  ;;  %v2603_v48 = vsel %vm1185_vm0, %v1168_v42, -1e+30  ;;  %v1133_v59 = vld [vmem:[#allocation2 + $0x40] sm:$0xff]  ;;  %v1171_v1 = vadd.f32 %v2488_v50, %v1135_v54 }
 0x1c5   : > { %1228 = vmax.xlane.f32.xlu2 %v2516_v3  ;;  %1224 = vmax.xlane.f32.xlu1 %v2520_v4  ;;  %v1180_v46 = vadd.f32 %v2488_v50, %v1144_v44  ;;  %v2607_v49 = vsel %vm1185_vm0, %v1167_v43, -1e+30  ;;  %v2619_v60 = vsel %vm1185_vm0, %v1176_v57, -1e+30  ;;  %v2623_v0 = vsel %vm1185_vm0, %v1178_v58, -1e+30 }
 0x1c6   : > { %1220 = vmax.xlane.f32.xlu0 %v2524_v5  ;;  %v2611_v53 = vsel %vm1185_vm0, %v1166_v45, -1e+30  ;;  %v1170_v2 = vadd.f32 %v2488_v50, %v1134_v56  ;;  %v1143_v6 = vld [vmem:[#allocation2 + $0xa0] sm:$0xff]  ;;  %v1169_v8 = vadd.f32 %v2488_v50, %v1133_v59  ;;  %v2641_v16 = vsel %vm1185_vm0, %v1171_v1, -1e+30  ;;  %v1137_v20 = vld [vmem:[#allocation2 + $0x70] sm:$0xff] }
 0x1c7   : > { %v2599_v47 = vsel %vm1185_vm0, %v1180_v46, -1e+30  ;;  %v1145_v7 = vld [vmem:[#allocation2 + $0x20] sm:$0xff]  ;;  %v1179_v9 = vadd.f32 %v2488_v50, %v1143_v6  ;;  %v1136_v24 = vld [vmem:[#allocation2 + $0x90] sm:$0xff]  ;;  %v1173_v26 = vadd.f32 %v2488_v50, %v1137_v20  ;;  %v1146_v27 = vld [vmem:[#allocation2 + $0x98] sm:$0xff] }
 0x1c8   : > { %v1181_v10 = vadd.f32 %v2488_v50, %v1145_v7  ;;  %v2645_v17 = vsel %vm1185_vm0, %v1170_v2, -1e+30  ;;  %v2649_v18 = vsel %vm1185_vm0, %v1169_v8, -1e+30  ;;  %v1138_v19 = vld [vmem:[#allocation2 + $0xc0] sm:$0xff]  ;;  %v1172_v28 = vadd.f32 %v2488_v50, %v1136_v24 }
 0x1c9   : > { %v2633_v11 = vsel %vm1185_vm0, %v1179_v9, -1e+30  ;;  %v1174_v25 = vadd.f32 %v2488_v50, %v1138_v19  ;;  %v1182_v29 = vadd.f32 %v2488_v50, %v1146_v27  ;;  %v2668_v35 = vsel %vm1185_vm0, %v1173_v26, -1e+30 }
 0x1ca   : > { %v2637_v15 = vsel %vm1185_vm0, %v1181_v10, -1e+30  ;;  %v2672_v37 = vsel %vm1185_vm0, %v1172_v28, -1e+30 }
 0x1cb   : > { %v2660_v30 = vsel %vm1185_vm0, %v1182_v29, -1e+30  ;;  %v2664_v31 = vsel %vm1185_vm0, %v1174_v25, -1e+30 }
 0x1cd   : > { %1234 = vmax.xlane.f32.xlu2 %v2534_v12  ;;  %1232 = vmax.xlane.f32.xlu1 %v2538_v13 }
 0x1ce   : > { %1230 = vmax.xlane.f32.xlu0 %v2542_v14 }
 0x1d5   : > { %1240 = vmax.xlane.f32.xlu2 %v2552_v21  ;;  %1238 = vmax.xlane.f32.xlu1 %v2556_v22 }
 0x1d6   : > { %1236 = vmax.xlane.f32.xlu0 %v2560_v23 }
 0x1dd   : > { %1246 = vmax.xlane.f32.xlu2 %v2575_v33  ;;  %1244 = vmax.xlane.f32.xlu1 %v2579_v34 }
 0x1de   : > { %1242 = vmax.xlane.f32.xlu0 %v2583_v36 }
 0x1e5   : > { %1252 = vmax.xlane.f32.xlu2 %v2603_v48  ;;  %1250 = vmax.xlane.f32.xlu1 %v2607_v49 }
 0x1e6   : > { %1248 = vmax.xlane.f32.xlu0 %v2611_v53 }
 0x1ed   : > { %1258 = vmax.xlane.f32.xlu2 %v2641_v16  ;;  %1256 = vmax.xlane.f32.xlu1 %v2645_v17 }
 0x1ee   : > { %1254 = vmax.xlane.f32.xlu0 %v2649_v18 }
 0x1f5   : > { %1264 = vmax.xlane.f32.xlu2 %v2664_v31  ;;  %1262 = vmax.xlane.f32.xlu1 %v2668_v35 }
 0x1f6   : > { %1260 = vmax.xlane.f32.xlu0 %v2672_v37 }
 0x1fd   : > { %1270 = vmax.xlane.f32.xlu2 %v2571_v32  ;;  %1268 = vmax.xlane.f32.xlu1 %v2619_v60 }
 0x1fe   : > { %1266 = vmax.xlane.f32.xlu0 %v2590_v41 }
 0x205   : > { %1276 = vmax.xlane.f32.xlu2 %v2599_v47  ;;  %1274 = vmax.xlane.f32.xlu1 %v2633_v11 }
 0x206   : > { %1272 = vmax.xlane.f32.xlu0 %v2623_v0 }
 0x20d   : > { %1280 = vmax.xlane.f32.xlu1 %v2660_v30 }
 0x20e   : > { %1278 = vmax.xlane.f32.xlu0 %v2637_v15 }
 0x230   : > { %v1227_v50 = vpop.xlane.xlu2 %1226  ;;  %v1223_v55 = vpop.xlane.xlu1 %1222 }
 0x231   : > { %v2686_v38 = vsub.f32 %v2502_v62, %v1223_v55  ;;  %v1219_v39 = vpop.xlane.xlu0 %1218  ;;  %v2705_v57 = vsub.f32 %v2498_v61, %v1227_v50 }
 0x232   : > { %v2689_v40 = vsub.f32 %v2506_v63, %v1219_v39 }
 0x233   : > { %v1318_v42 = vmul.f32 1.442695, %v2686_v38 }
 0x234   : > { %v1314_v43 = vmul.f32 1.442695, %v2689_v40 }
 0x235   : > { %2002 = vpow2.f32 %v1318_v42 }
 0x236   : > { %2004 = vpow2.f32 %v1314_v43 }
 0x238   : > { %v1229_v44 = vpop.xlane.xlu2 %1228  ;;  %v1225_v45 = vpop.xlane.xlu1 %1224 }
 0x239   : > { %v2694_v46 = vsub.f32 %v2516_v3, %v1229_v44  ;;  %v2697_v51 = vsub.f32 %v2520_v4, %v1225_v45  ;;  %v1221_v62 = vpop.xlane.xlu0 %1220  ;;  %v1322_v3 = vmul.f32 1.442695, %v2705_v57 }
 0x23a   : > { %v2700_v52 = vsub.f32 %v2524_v5, %v1221_v62 }
 0x23b   : > { %v1324_v63 = vmul.f32 1.442695, %v2694_v46  ;;  %v1320_v54 = vmul.f32 1.442695, %v2697_v51  ;;  %v2003_v56 = vpop.eup %2002 }
 0x23c   : > { %v1316_v58 = vmul.f32 1.442695, %v2700_v52  ;;  %v2005_v59 = vpop.eup %2004  ;;  %1382 = vadd.xlane.f32.xlu1 %v2003_v56 }
 0x23d   : > { %2006 = vpow2.f32 %v1324_v63  ;;  %1378 = vadd.xlane.f32.xlu2 %v2005_v59 }
 0x23e   : > { %2008 = vpow2.f32 %v1320_v54 }
 0x23f   : > { %2010 = vpow2.f32 %v1316_v58 }
 0x240   : > { %v1235_v4 = vpop.xlane.xlu2 %1234  ;;  %v1233_v5 = vpop.xlane.xlu1 %1232  ;;  %2012 = vpow2.f32 %v1322_v3 }
 0x241   : > { %v2710_v1 = vsub.f32 %v2534_v12, %v1235_v4  ;;  %v1231_v2 = vpop.xlane.xlu0 %1230  ;;  %v2718_v10 = vsub.f32 %v2538_v13, %v1233_v5 }
 0x242   : > { %v2713_v6 = vsub.f32 %v2542_v14, %v1231_v2 }
 0x243   : > { %v2007_v61 = vpop.eup %2006  ;;  %v1330_v7 = vmul.f32 1.442695, %v2710_v1  ;;  %v1328_v14 = vmul.f32 1.442695, %v2718_v10 }
 0x244   : > { %v2009_v8 = vpop.eup %2008  ;;  %v1326_v9 = vmul.f32 1.442695, %v2713_v6  ;;  %1388 = vadd.xlane.f32.xlu1 %v2007_v61 }
 0x245   : > { %v2011_v19 = vpop.eup %2010  ;;  %2014 = vpow2.f32 %v1330_v7  ;;  %1384 = vadd.xlane.f32.xlu2 %v2009_v8 }
 0x246   : > { %2016 = vpow2.f32 %v1326_v9  ;;  %1380 = vadd.xlane.f32.xlu0 %v2011_v19  ;;  %v2013_v26 = vpop.eup %2012 }
 0x247   : > { %2018 = vpow2.f32 %v1328_v14 }
 0x248   : > { %v1241_v12 = vpop.xlane.xlu2 %1240  ;;  %v1239_v20 = vpop.xlane.xlu1 %1238 }
 0x249   : > { %v2722_v24 = vsub.f32 %v2552_v21, %v1241_v12  ;;  %v1237_v25 = vpop.xlane.xlu0 %1236  ;;  %v2730_v55 = vsub.f32 %v2556_v22, %v1239_v20 }
 0x24a   : > { %v2725_v27 = vsub.f32 %v2560_v23, %v1237_v25 }
 0x24b   : > { %v2015_v13 = vpop.eup %2014  ;;  %v1336_v28 = vmul.f32 1.442695, %v2722_v24  ;;  %v1334_v39 = vmul.f32 1.442695, %v2730_v55 }
 0x24c   : > { %v2017_v29 = vpop.eup %2016  ;;  %v1332_v50 = vmul.f32 1.442695, %v2725_v27  ;;  %1394 = vadd.xlane.f32.xlu1 %v2015_v13 }
 0x24d   : > { %2020 = vpow2.f32 %v1336_v28  ;;  %1390 = vadd.xlane.f32.xlu2 %v2017_v29  ;;  %v2019_v44 = vpop.eup %2018 }
 0x24e   : > { %2022 = vpow2.f32 %v1332_v50  ;;  %1386 = vadd.xlane.f32.xlu0 %v2013_v26 }
 0x24f   : > { %2024 = vpow2.f32 %v1334_v39 }
 0x250   : > { %v1247_v21 = vpop.xlane.xlu2 %1246  ;;  %v1245_v23 = vpop.xlane.xlu1 %1244 }
 0x251   : > { %v2734_v42 = vsub.f32 %v2575_v33, %v1247_v21  ;;  %v1243_v43 = vpop.xlane.xlu0 %1242  ;;  %v2742_v56 = vsub.f32 %v2579_v34, %v1245_v23 }
 0x252   : > { %v2737_v45 = vsub.f32 %v2583_v36, %v1243_v43 }
 0x253   : > { %v2021_v62 = vpop.eup %2020  ;;  %v1342_v22 = vmul.f32 1.442695, %v2734_v42  ;;  %v1340_v58 = vmul.f32 1.442695, %v2742_v56 }
 0x254   : > { %v2023_v63 = vpop.eup %2022  ;;  %v1338_v54 = vmul.f32 1.442695, %v2737_v45  ;;  %1400 = vadd.xlane.f32.xlu1 %v2021_v62 }
 0x255   : > { %2026 = vpow2.f32 %v1342_v22  ;;  %1396 = vadd.xlane.f32.xlu2 %v2023_v63  ;;  %v2025_v4 = vpop.eup %2024 }
 0x256   : > { %2028 = vpow2.f32 %v1338_v54  ;;  %1392 = vadd.xlane.f32.xlu0 %v2019_v44 }
 0x257   : > { %2030 = vpow2.f32 %v1340_v58 }
 0x258   : > { %v1253_v33 = vpop.xlane.xlu2 %1252  ;;  %v1251_v36 = vpop.xlane.xlu1 %1250 }
 0x259   : > { %v2746_v59 = vsub.f32 %v2603_v48, %v1253_v33  ;;  %v1249_v3 = vpop.xlane.xlu0 %1248  ;;  %v2754_v8 = vsub.f32 %v2607_v49, %v1251_v36 }
 0x25a   : > { %v2749_v5 = vsub.f32 %v2611_v53, %v1249_v3 }
 0x25b   : > { %v2027_v2 = vpop.eup %2026  ;;  %v1348_v34 = vmul.f32 1.442695, %v2746_v59  ;;  %v1346_v9 = vmul.f32 1.442695, %v2754_v8 }
 0x25c   : > { %v2029_v61 = vpop.eup %2028  ;;  %v1344_v7 = vmul.f32 1.442695, %v2749_v5  ;;  %1406 = vadd.xlane.f32.xlu1 %v2027_v2 }
 0x25d   : > { %2032 = vpow2.f32 %v1348_v34  ;;  %1402 = vadd.xlane.f32.xlu2 %v2029_v61  ;;  %v2031_v14 = vpop.eup %2030 }
 0x25e   : > { %2034 = vpow2.f32 %v1344_v7  ;;  %1398 = vadd.xlane.f32.xlu0 %v2025_v4 }
 0x25f   : > { %2036 = vpow2.f32 %v1346_v9 }
 0x260   : > { %v1259_v48 = vpop.xlane.xlu2 %1258  ;;  %v1257_v53 = vpop.xlane.xlu1 %1256 }
 0x261   : > { %v2758_v19 = vsub.f32 %v2641_v16, %v1259_v48  ;;  %v1255_v12 = vpop.xlane.xlu0 %1254  ;;  %v2766_v28 = vsub.f32 %v2645_v17, %v1257_v53 }
 0x262   : > { %v2761_v20 = vsub.f32 %v2649_v18, %v1255_v12 }
 0x263   : > { %v2033_v25 = vpop.eup %2032  ;;  %v1354_v49 = vmul.f32 1.442695, %v2758_v19  ;;  %v1352_v29 = vmul.f32 1.442695, %v2766_v28 }
 0x264   : > { %v2035_v26 = vpop.eup %2034  ;;  %v1350_v13 = vmul.f32 1.442695, %v2761_v20  ;;  %1412 = vadd.xlane.f32.xlu1 %v2033_v25 }
 0x265   : > { %2038 = vpow2.f32 %v1354_v49  ;;  %1408 = vadd.xlane.f32.xlu2 %v2035_v26  ;;  %v2037_v39 = vpop.eup %2036 }
 0x266   : > { %2040 = vpow2.f32 %v1350_v13  ;;  %1404 = vadd.xlane.f32.xlu0 %v2031_v14 }
 0x267   : > { %2042 = vpow2.f32 %v1352_v29 }
 0x268   : > { %v1265_v16 = vpop.xlane.xlu2 %1264  ;;  %v1263_v18 = vpop.xlane.xlu1 %1262 }
 0x269   : > { %v2770_v50 = vsub.f32 %v2664_v31, %v1265_v16  ;;  %v1261_v21 = vpop.xlane.xlu0 %1260  ;;  %v2778_v22 = vsub.f32 %v2668_v35, %v1263_v18 }
 0x26a   : > { %v2773_v23 = vsub.f32 %v2672_v37, %v1261_v21 }
 0x26b   : > { %v2039_v43 = vpop.eup %2038  ;;  %v1360_v17 = vmul.f32 1.442695, %v2770_v50  ;;  %v1358_v63 = vmul.f32 1.442695, %v2778_v22 }
 0x26c   : > { %v2041_v44 = vpop.eup %2040  ;;  %v1356_v62 = vmul.f32 1.442695, %v2773_v23  ;;  %1418 = vadd.xlane.f32.xlu1 %v2039_v43 }
 0x26d   : > { %2044 = vpow2.f32 %v1360_v17  ;;  %1414 = vadd.xlane.f32.xlu2 %v2041_v44  ;;  %v2043_v58 = vpop.eup %2042 }
 0x26e   : > { %2046 = vpow2.f32 %v1356_v62  ;;  %1410 = vadd.xlane.f32.xlu0 %v2037_v39 }
 0x26f   : > { %2048 = vpow2.f32 %v1358_v63 }
 0x270   : > { %v1271_v31 = vpop.xlane.xlu2 %1270  ;;  %v1269_v37 = vpop.xlane.xlu1 %1268 }
 0x271   : > { %v2782_v54 = vsub.f32 %v2571_v32, %v1271_v31  ;;  %v1267_v33 = vpop.xlane.xlu0 %1266  ;;  %v2790_v34 = vsub.f32 %v2619_v60, %v1269_v37 }
 0x272   : > { %v2785_v36 = vsub.f32 %v2590_v41, %v1267_v33 }
 0x273   : > { %v2045_v3 = vpop.eup %2044  ;;  %v1366_v35 = vmul.f32 1.442695, %v2782_v54  ;;  %v1364_v61 = vmul.f32 1.442695, %v2790_v34 }
 0x274   : > { %v2047_v4 = vpop.eup %2046  ;;  %v1362_v2 = vmul.f32 1.442695, %v2785_v36  ;;  %1424 = vadd.xlane.f32.xlu1 %v2045_v3 }
 0x275   : > { %2050 = vpow2.f32 %v1366_v35  ;;  %1420 = vadd.xlane.f32.xlu2 %v2047_v4  ;;  %v2049_v9 = vpop.eup %2048 }
 0x276   : > { %2052 = vpow2.f32 %v1362_v2  ;;  %1416 = vadd.xlane.f32.xlu0 %v2043_v58 }
 0x277   : > { %2054 = vpow2.f32 %v1364_v61 }
 0x278   : > { %v1277_v32 = vpop.xlane.xlu2 %1276  ;;  %v1275_v41 = vpop.xlane.xlu1 %1274 }
 0x279   : > { %v2794_v7 = vsub.f32 %v2599_v47, %v1277_v32  ;;  %v1273_v48 = vpop.xlane.xlu0 %1272  ;;  %v2802_v49 = vsub.f32 %v2633_v11, %v1275_v41 }
 0x27a   : > { %v2797_v53 = vsub.f32 %v2623_v0, %v1273_v48 }
 0x27b   : > { %v2051_v12 = vpop.eup %2050  ;;  %v1372_v60 = vmul.f32 1.442695, %v2794_v7  ;;  %v1370_v47 = vmul.f32 1.442695, %v2802_v49 }
 0x27c   : > { %v2053_v14 = vpop.eup %2052  ;;  %v1368_v25 = vmul.f32 1.442695, %v2797_v53  ;;  %1430 = vadd.xlane.f32.xlu1 %v2051_v12 }
 0x27d   : > { %2056 = vpow2.f32 %v1372_v60  ;;  %1426 = vadd.xlane.f32.xlu2 %v2053_v14  ;;  %v2055_v0 = vpop.eup %2054 }
 0x27e   : > { %2058 = vpow2.f32 %v1368_v25  ;;  %1422 = vadd.xlane.f32.xlu0 %v2049_v9 }
 0x27f   : > { %2060 = vpow2.f32 %v1370_v47 }
 0x280   : > { %v1281_v16 = vpop.xlane.xlu1 %1280 }
 0x281   : > { %v1279_v26 = vpop.xlane.xlu0 %1278  ;;  %v2810_v11 = vsub.f32 %v2660_v30, %v1281_v16 }
 0x282   : > { %v2806_v13 = vsub.f32 %v2637_v15, %v1279_v26 }
 0x283   : > { %v2057_v29 = vpop.eup %2056  ;;  %v1376_v39 = vmul.f32 1.442695, %v2810_v11 }
 0x284   : > { %v2059_v18 = vpop.eup %2058  ;;  %v1374_v21 = vmul.f32 1.442695, %v2806_v13  ;;  %1436 = vadd.xlane.f32.xlu1 %v2057_v29 }
 0x285   : > { %1432 = vadd.xlane.f32.xlu2 %v2059_v18  ;;  %v2061_v43 = vpop.eup %2060 }
 0x286   : > { %2062 = vpow2.f32 %v1374_v21  ;;  %1428 = vadd.xlane.f32.xlu0 %v2055_v0 }
 0x287   : > { %2064 = vpow2.f32 %v1376_v39 }
 0x28c   : > { %v2063_v17 = vpop.eup %2062 }
 0x28d   : > { %1438 = vadd.xlane.f32.xlu2 %v2063_v17  ;;  %v2065_v15 = vpop.eup %2064 }
 0x28e   : > { %1434 = vadd.xlane.f32.xlu0 %v2061_v43 }
 0x296   : > { %1440 = vadd.xlane.f32.xlu0 %v2065_v15 }
 0x2af   : > { %v1383_v44 = vpop.xlane.xlu1 %1382 }
 0x2b0   : > { %2066 = vlog2.f32 %v1383_v44  ;;  %v1379_v62 = vpop.xlane.xlu2 %1378 }
 0x2b1   : > { %2068 = vlog2.f32 %v1379_v62 }
 0x2b6   : > { %v2067_v30 = vpop.eup %2066 }
 0x2b7   : > { %v2069_v31 = vpop.eup %2068  ;;  %v1447_v63 = vmul.f32 0.6931472, %v2067_v30  ;;  %v1389_v37 = vpop.xlane.xlu1 %1388 }
 0x2b8   : > { %v1443_v33 = vmul.f32 0.6931472, %v2069_v31  ;;  %2070 = vlog2.f32 %v1389_v37  ;;  %v1385_v58 = vpop.xlane.xlu2 %1384 }
 0x2b9   : > { %v1381_v3 = vpop.xlane.xlu0 %1380  ;;  %v1508_v35 = vsub.f32 %v2686_v38, %v1447_v63  ;;  %2072 = vlog2.f32 %v1385_v58 }
 0x2ba   : > { %v1506_v4 = vsub.f32 %v2689_v40, %v1443_v33  ;;  %2074 = vlog2.f32 %v1381_v3 }
 0x2bb   : > { %1540 = vst [vmem:[%s2392_s14 + $0x10] sm:$0xff] %v1508_v35 }
 0x2bc   : > { %1538 = vst [vmem:[%s2392_s14] sm:$0xff] %v1506_v4 }
 0x2be   : > { %v2071_v2 = vpop.eup %2070 }
 0x2bf   : > { %v2073_v32 = vpop.eup %2072  ;;  %v1453_v61 = vmul.f32 0.6931472, %v2071_v2  ;;  %v1395_v41 = vpop.xlane.xlu1 %1394 }
 0x2c0   : > { %v2075_v48 = vpop.eup %2074  ;;  %v1449_v9 = vmul.f32 0.6931472, %v2073_v32  ;;  %2076 = vlog2.f32 %v1395_v41  ;;  %v1391_v12 = vpop.xlane.xlu2 %1390 }
 0x2c1   : > { %v1387_v60 = vpop.xlane.xlu0 %1386  ;;  %v1511_v38 = vsub.f32 %v2694_v46, %v1453_v61  ;;  %v1445_v14 = vmul.f32 0.6931472, %v2075_v48  ;;  %2078 = vlog2.f32 %v1391_v12 }
 0x2c2   : > { %v1509_v40 = vsub.f32 %v2697_v51, %v1449_v9  ;;  %2080 = vlog2.f32 %v1387_v60 }
 0x2c3   : > { %1543 = vst [vmem:[%s2392_s14 + $0x28] sm:$0xff] %v1511_v38  ;;  %v1507_v25 = vsub.f32 %v2700_v52, %v1445_v14 }
 0x2c4   : > { %1541 = vst [vmem:[%s2392_s14 + $0x18] sm:$0xff] %v1509_v40 }
 0x2c5   : > { %1539 = vst [vmem:[%s2392_s14 + $0x8] sm:$0xff] %v1507_v25 }
 0x2c6   : > { %v2077_v47 = vpop.eup %2076 }
 0x2c7   : > { %v2079_v26 = vpop.eup %2078  ;;  %v1459_v0 = vmul.f32 0.6931472, %v2077_v47  ;;  %v1401_v16 = vpop.xlane.xlu1 %1400 }
 0x2c8   : > { %v2081_v29 = vpop.eup %2080  ;;  %v1455_v18 = vmul.f32 0.6931472, %v2079_v26  ;;  %2082 = vlog2.f32 %v1401_v16  ;;  %v1397_v46 = vpop.xlane.xlu2 %1396 }
 0x2c9   : > { %v1393_v21 = vpop.xlane.xlu0 %1392  ;;  %v1514_v51 = vsub.f32 %v2710_v1, %v1459_v0  ;;  %v1451_v39 = vmul.f32 0.6931472, %v2081_v29  ;;  %2084 = vlog2.f32 %v1397_v46 }
 0x2ca   : > { %v1512_v52 = vsub.f32 %v2713_v6, %v1455_v18  ;;  %2086 = vlog2.f32 %v1393_v21 }
 0x2cb   : > { %1546 = vst [vmem:[%s2392_s14 + $0x40] sm:$0xff] %v1514_v51  ;;  %v1510_v43 = vsub.f32 %v2705_v57, %v1451_v39 }
 0x2cc   : > { %1544 = vst [vmem:[%s2392_s14 + $0x30] sm:$0xff] %v1512_v52 }
 0x2cd   : > { %1542 = vst [vmem:[%s2392_s14 + $0x20] sm:$0xff] %v1510_v43 }
 0x2ce   : > { %v2083_v17 = vpop.eup %2082 }
 0x2cf   : > { %v2085_v15 = vpop.eup %2084  ;;  %v1465_v44 = vmul.f32 0.6931472, %v2083_v17  ;;  %v1407_v62 = vpop.xlane.xlu1 %1406 }
 0x2d0   : > { %v2087_v30 = vpop.eup %2086  ;;  %v1461_v31 = vmul.f32 0.6931472, %v2085_v15  ;;  %2088 = vlog2.f32 %v1407_v62  ;;  %v1403_v1 = vpop.xlane.xlu2 %1402 }
 0x2d1   : > { %v1399_v63 = vpop.xlane.xlu0 %1398  ;;  %v1517_v6 = vsub.f32 %v2722_v24, %v1465_v44  ;;  %v1457_v37 = vmul.f32 0.6931472, %v2087_v30  ;;  %2090 = vlog2.f32 %v1403_v1 }
 0x2d2   : > { %v1515_v57 = vsub.f32 %v2725_v27, %v1461_v31  ;;  %2092 = vlog2.f32 %v1399_v63 }
 0x2d3   : > { %1549 = vst [vmem:[%s2392_s14 + $0x58] sm:$0xff] %v1517_v6  ;;  %v1513_v33 = vsub.f32 %v2718_v10, %v1457_v37 }
 0x2d4   : > { %1547 = vst [vmem:[%s2392_s14 + $0x48] sm:$0xff] %v1515_v57 }
 0x2d5   : > { %1545 = vst [vmem:[%s2392_s14 + $0x38] sm:$0xff] %v1513_v33 }
 0x2d6   : > { %v2089_v58 = vpop.eup %2088 }
 0x2d7   : > { %v2091_v3 = vpop.eup %2090  ;;  %v1471_v35 = vmul.f32 0.6931472, %v2089_v58  ;;  %v1413_v4 = vpop.xlane.xlu1 %1412 }
 0x2d8   : > { %v2093_v2 = vpop.eup %2092  ;;  %v1467_v32 = vmul.f32 0.6931472, %v2091_v3  ;;  %2094 = vlog2.f32 %v1413_v4  ;;  %v1409_v24 = vpop.xlane.xlu2 %1408 }
 0x2d9   : > { %v1405_v61 = vpop.xlane.xlu0 %1404  ;;  %v1520_v27 = vsub.f32 %v2734_v42, %v1471_v35  ;;  %v1463_v41 = vmul.f32 0.6931472, %v2093_v2  ;;  %2096 = vlog2.f32 %v1409_v24 }
 0x2da   : > { %v1518_v10 = vsub.f32 %v2737_v45, %v1467_v32  ;;  %2098 = vlog2.f32 %v1405_v61 }
 0x2db   : > { %1552 = vst [vmem:[%s2392_s14 + $0x70] sm:$0xff] %v1520_v27  ;;  %v1516_v48 = vsub.f32 %v2730_v55, %v1463_v41 }
 0x2dc   : > { %1550 = vst [vmem:[%s2392_s14 + $0x60] sm:$0xff] %v1518_v10 }
 0x2dd   : > { %1548 = vst [vmem:[%s2392_s14 + $0x50] sm:$0xff] %v1516_v48 }
 0x2de   : > { %v2095_v9 = vpop.eup %2094 }
 0x2df   : > { %v2097_v12 = vpop.eup %2096  ;;  %v1477_v60 = vmul.f32 0.6931472, %v2095_v9  ;;  %v1419_v38 = vpop.xlane.xlu1 %1418 }
 0x2e0   : > { %v2099_v14 = vpop.eup %2098  ;;  %v1473_v40 = vmul.f32 0.6931472, %v2097_v12  ;;  %2100 = vlog2.f32 %v1419_v38  ;;  %v1415_v42 = vpop.xlane.xlu2 %1414 }
 0x2e1   : > { %v1411_v25 = vpop.xlane.xlu0 %1410  ;;  %v1523_v45 = vsub.f32 %v2746_v59, %v1477_v60  ;;  %v1469_v47 = vmul.f32 0.6931472, %v2099_v14  ;;  %2102 = vlog2.f32 %v1415_v42 }
 0x2e2   : > { %v1521_v55 = vsub.f32 %v2749_v5, %v1473_v40  ;;  %2104 = vlog2.f32 %v1411_v25 }
 0x2e3   : > { %1555 = vst [vmem:[%s2392_s14 + $0x88] sm:$0xff] %v1523_v45  ;;  %v1519_v26 = vsub.f32 %v2742_v56, %v1469_v47 }
 0x2e4   : > { %1553 = vst [vmem:[%s2392_s14 + $0x78] sm:$0xff] %v1521_v55 }
 0x2e5   : > { %1551 = vst [vmem:[%s2392_s14 + $0x68] sm:$0xff] %v1519_v26 }
 0x2e6   : > { %v2101_v0 = vpop.eup %2100 }
 0x2e7   : > { %v2103_v16 = vpop.eup %2102  ;;  %v1483_v29 = vmul.f32 0.6931472, %v2101_v0  ;;  %v1425_v18 = vpop.xlane.xlu1 %1424 }
 0x2e8   : > { %v2105_v46 = vpop.eup %2104  ;;  %v1479_v21 = vmul.f32 0.6931472, %v2103_v16  ;;  %2106 = vlog2.f32 %v1425_v18  ;;  %v1421_v59 = vpop.xlane.xlu2 %1420 }
 0x2e9   : > { %v1417_v51 = vpop.xlane.xlu0 %1416  ;;  %v1526_v5 = vsub.f32 %v2758_v19, %v1483_v29  ;;  %v1475_v39 = vmul.f32 0.6931472, %v2105_v46  ;;  %2108 = vlog2.f32 %v1421_v59 }
 0x2ea   : > { %v1524_v56 = vsub.f32 %v2761_v20, %v1479_v21  ;;  %2110 = vlog2.f32 %v1417_v51 }
 0x2eb   : > { %1558 = vst [vmem:[%s2392_s14 + $0xa0] sm:$0xff] %v1526_v5  ;;  %v1522_v52 = vsub.f32 %v2754_v8, %v1475_v39 }
 0x2ec   : > { %1556 = vst [vmem:[%s2392_s14 + $0x90] sm:$0xff] %v1524_v56 }
 0x2ed   : > { %1554 = vst [vmem:[%s2392_s14 + $0x80] sm:$0xff] %v1522_v52 }
 0x2ee   : > { %v2107_v43 = vpop.eup %2106 }
 0x2ef   : > { %v2109_v17 = vpop.eup %2108  ;;  %v1489_v15 = vmul.f32 0.6931472, %v2107_v43  ;;  %v1431_v44 = vpop.xlane.xlu1 %1430 }
 0x2f0   : > { %v2111_v62 = vpop.eup %2110  ;;  %v1485_v30 = vmul.f32 0.6931472, %v2109_v17  ;;  %2112 = vlog2.f32 %v1431_v44  ;;  %v1427_v19 = vpop.xlane.xlu2 %1426 }
 0x2f1   : > { %v1423_v31 = vpop.xlane.xlu0 %1422  ;;  %v1529_v20 = vsub.f32 %v2770_v50, %v1489_v15  ;;  %v1481_v1 = vmul.f32 0.6931472, %v2111_v62  ;;  %2114 = vlog2.f32 %v1427_v19 }
 0x2f2   : > { %v1527_v8 = vsub.f32 %v2773_v23, %v1485_v30  ;;  %2116 = vlog2.f32 %v1423_v31 }
 0x2f3   : > { %1561 = vst [vmem:[%s2392_s14 + $0xb8] sm:$0xff] %v1529_v20  ;;  %v1525_v63 = vsub.f32 %v2766_v28, %v1481_v1 }
 0x2f4   : > { %1559 = vst [vmem:[%s2392_s14 + $0xa8] sm:$0xff] %v1527_v8 }
 0x2f5   : > { %1557 = vst [vmem:[%s2392_s14 + $0x98] sm:$0xff] %v1525_v63 }
 0x2f6   : > { %v2113_v6 = vpop.eup %2112 }
 0x2f7   : > { %v2115_v37 = vpop.eup %2114  ;;  %v1495_v57 = vmul.f32 0.6931472, %v2113_v6  ;;  %v1437_v33 = vpop.xlane.xlu1 %1436 }
 0x2f8   : > { %v2117_v58 = vpop.eup %2116  ;;  %v1491_v3 = vmul.f32 0.6931472, %v2115_v37  ;;  %2118 = vlog2.f32 %v1437_v33  ;;  %v1433_v50 = vpop.xlane.xlu2 %1432 }
 0x2f9   : > { %v1429_v35 = vpop.xlane.xlu0 %1428  ;;  %v1532_v23 = vsub.f32 %v2782_v54, %v1495_v57  ;;  %v1487_v4 = vmul.f32 0.6931472, %v2117_v58  ;;  %2120 = vlog2.f32 %v1433_v50 }
 0x2fa   : > { %v1530_v28 = vsub.f32 %v2785_v36, %v1491_v3  ;;  %2122 = vlog2.f32 %v1429_v35 }
 0x2fb   : > { %1564 = vst [vmem:[%s2392_s14 + $0xd0] sm:$0xff] %v1532_v23  ;;  %v1528_v2 = vsub.f32 %v2778_v22, %v1487_v4 }
 0x2fc   : > { %1562 = vst [vmem:[%s2392_s14 + $0xc0] sm:$0xff] %v1530_v28 }
 0x2fd   : > { %1560 = vst [vmem:[%s2392_s14 + $0xb0] sm:$0xff] %v1528_v2 }
 0x2fe   : > { %v2119_v32 = vpop.eup %2118 }
 0x2ff   : > { %v2121_v24 = vpop.eup %2120  ;;  %v1501_v61 = vmul.f32 0.6931472, %v2119_v32 }
 0x300   : > { %v2123_v27 = vpop.eup %2122  ;;  %v1497_v41 = vmul.f32 0.6931472, %v2121_v24  ;;  %v1439_v10 = vpop.xlane.xlu2 %1438 }
 0x301   : > { %v1435_v54 = vpop.xlane.xlu0 %1434  ;;  %v1535_v48 = vsub.f32 %v2794_v7, %v1501_v61  ;;  %v1493_v9 = vmul.f32 0.6931472, %v2123_v27  ;;  %2124 = vlog2.f32 %v1439_v10 }
 0x302   : > { %v1533_v36 = vsub.f32 %v2797_v53, %v1497_v41  ;;  %2126 = vlog2.f32 %v1435_v54 }
 0x303   : > { %1567 = vst [vmem:[%s2392_s14 + $0xe8] sm:$0xff] %v1535_v48  ;;  %v1531_v22 = vsub.f32 %v2790_v34, %v1493_v9 }
 0x304   : > { %1565 = vst [vmem:[%s2392_s14 + $0xd8] sm:$0xff] %v1533_v36 }
 0x305   : > { %1563 = vst [vmem:[%s2392_s14 + $0xc8] sm:$0xff] %v1531_v22 }
 0x307   : > { %v2125_v12 = vpop.eup %2124 }
 0x308   : > { %v2127_v60 = vpop.eup %2126  ;;  %v1503_v38 = vmul.f32 0.6931472, %v2125_v12 }
 0x309   : > { %v1441_v14 = vpop.xlane.xlu0 %1440  ;;  %v1499_v40 = vmul.f32 0.6931472, %v2127_v60 }
 0x30a   : > { %2128 = vlog2.f32 %v1441_v14  ;;  %v1536_v7 = vsub.f32 %v2806_v13, %v1503_v38 }
 0x30b   : > { %v1534_v42 = vsub.f32 %v2802_v49, %v1499_v40 }
 0x30c   : > { %1568 = vst [vmem:[%s2392_s14 + $0xf0] sm:$0xff] %v1536_v7 }
 0x30d   : > { %1566 = vst [vmem:[%s2392_s14 + $0xe0] sm:$0xff] %v1534_v42 }
 0x310   : > { %v2129_v53 = vpop.eup %2128 }
 0x311   : > { %v1505_v25 = vmul.f32 0.6931472, %v2129_v53 }
 0x313   : > { %v1537_v45 = vsub.f32 %v2810_v11, %v1505_v25 }
 0x315   : > { %1569 = vst [vmem:[%s2392_s14 + $0xf8] sm:$0xff] %v1537_v45 }
 0x316 PF: > { %s28_s30 = sadd.s32 1, %s2210_s30   ;;  %s2904_s26 = smov %s2190_s27 }
 0x317   : > { %p25_p1 = scmp.ge.s32.totalorder %s28_s30, 6   ;;  %s2905_s27 = smov %s2306_s24 }
 0x318   : > { %s2906_s28 = smov %s2202_s29  ;;  %s2907_s0 = smov %s2206_s1 }
 0x319   : > { %s2908_s29 = smov %s2911_s6  ;;  %s2909_s1 = smov %s2915_s7 }
 0x31a   :  { %27 = sbr.rel (!%p25_p1) target bundleno = 11 (0xb), region = 120 }

</bundles_post_ra>
